<compile_context>
chip_gen: v7x
topology: tpu7x:2x2x1
jax: 0.10.0
libtpu: 0.0.40
codegen_flags: <defaults>
</compile_context>

<pallas_src>
import jax
import jax.numpy as jnp
from jax.experimental import pallas as pl
from jax.experimental.pallas import tpu as pltpu


# ---------------------------------------------------------------------------
# Static model geometry (fixed by GRUDefault) and packed-parameter layout.
# ---------------------------------------------------------------------------
_LAYER_DIMS = ((8, 20), (20, 20), (20, 10), (10, 10))   # (Din, H) per GRU layer
_GL = 128                  # lane slot per gate -> gate slices are vreg-aligned
_NL = 3 * _GL              # packed weight lane width, gate order [r, z, n]
_B_PAD = 8                 # batch padded to one full sublane tile in-kernel


def _r8(n):
    return ((n + 7) // 8) * 8


def _build_layout():
    """Row offsets of every sub-block inside the single packed param buffer."""
    off = 0
    layers = []
    for din, h in _LAYER_DIMS:
        lay = {"din": din, "h": h, "wih": off}
        off += _r8(din)                       # W_ih block: (Din, 384)
        lay["whh"] = off
        off += _r8(h)                         # W_hh block: (H, 384)
        layers.append(lay)
    for lay in layers:
        lay["gb"] = off                       # folded gate biases row (1, 384)
        off += 1
        lay["bhn"] = off                      # b_hh_n row (1, H)
        off += 1
    fc_w = _r8(off)                           # fc weight block (H4, 128), col 0
    fc_b = fc_w + _LAYER_DIMS[-1][1]          # fc bias row (lane 0)
    rows = _r8(fc_b + 1)
    return tuple(layers), fc_w, fc_b, rows


_LAYERS, _FC_W, _FC_B, _PARAM_ROWS = _build_layout()


# ---------------------------------------------------------------------------
# One GRU layer, traced inside the fused kernel.
# ---------------------------------------------------------------------------
def _gru_layer(x2, p_ref, lay, T, out_ref=None):
    """x2: (T*_B_PAD, Din) time-major slab.  Returns last hidden (B_PAD, H).

    If out_ref is given, h_t is stored at rows [t*_B_PAD, (t+1)*_B_PAD) so the
    next layer can consume the slab directly for its hoisted projection.
    """
    din, H = lay["din"], lay["h"]
    wih = p_ref[lay["wih"]:lay["wih"] + din, :]            # (Din, 384)
    whh = p_ref[lay["whh"]:lay["whh"] + H, :]              # (H,   384)
    gb = p_ref[lay["gb"]:lay["gb"] + 1, :]                 # (1,   384) folded
    bhn = jnp.broadcast_to(                                # hoisted broadcast
        p_ref[lay["bhn"]:lay["bhn"] + 1, 0:H], (_B_PAD, H))

    # Hoisted input projection for all timesteps at once (off the serial path).
    gi = jnp.dot(x2, wih, preferred_element_type=jnp.float32) + gb
    gi_r = gi[:, 0:H]
    gi_z = gi[:, _GL:_GL + H]
    gi_n = gi[:, 2 * _GL:2 * _GL + H]

    h = jnp.zeros((_B_PAD, H), jnp.float32)
    for t in range(T):                                     # static unroll
        rows = slice(t * _B_PAD, (t + 1) * _B_PAD)
        # ONE merged recurrent matmul per step; each gate lands in its own
        # 128-lane slot so the slices below are vreg-aligned (no rotates).
        gh = jnp.dot(h, whh, preferred_element_type=jnp.float32)   # (8, 384)
        r = jax.nn.sigmoid(gi_r[rows] + gh[:, 0:H])
        z = jax.nn.sigmoid(gi_z[rows] + gh[:, _GL:_GL + H])
        n = jnp.tanh(gi_n[rows] + r * (gh[:, 2 * _GL:2 * _GL + H] + bhn))
        h = (1.0 - z) * n + z * h
        if out_ref is not None:
            out_ref[rows, 0:H] = h         # projection-ready layout, no stack
    return h


# ---------------------------------------------------------------------------
# Fused kernel: input staging + 4 GRU layers + Linear(10 -> 1) + Sigmoid.
# ---------------------------------------------------------------------------
def _make_kernel(B, T):
    L1, L2, L3, L4 = _LAYERS
    H4 = L4["h"]
    din1 = L1["din"]

    def kernel(x_ref, p_ref, out_ref, s0, s1):
        # Stage the raw batch-first (B, T, Din) input into a time-major,
        # batch-padded (T*B_PAD, Din) slab (one-time, off the serial path).
        if B < _B_PAD:
            zpad = jnp.zeros((_B_PAD - B, din1), jnp.float32)
            pieces = [blk for t in range(T) for blk in (x_ref[:, t, :], zpad)]
        else:
            pieces = [x_ref[:, t, :] for t in range(T)]
        x1 = jnp.concatenate(pieces, axis=0)               # (T*B_PAD, Din)

        # 4 stacked GRU layers (dropout layers are identity at inference).
        _gru_layer(x1, p_ref, L1, T, out_ref=s0)
        _gru_layer(s0[:, 0:L2["din"]], p_ref, L2, T, out_ref=s1)
        _gru_layer(s1[:, 0:L3["din"]], p_ref, L3, T, out_ref=s0)
        h4 = _gru_layer(s0[:, 0:L4["din"]], p_ref, L4, T, out_ref=None)

        # Linear + Sigmoid.  fc weight block is (H4, 128) with the real weights
        # in column 0; result is written directly as (B, 1) — no host slice.
        fcw = p_ref[_FC_W:_FC_W + H4, 0:_GL]               # (10, 128)
        fcb = p_ref[_FC_B:_FC_B + 1, 0:1]                  # (1, 1)
        y = jnp.dot(h4, fcw, preferred_element_type=jnp.float32)
        out_ref[...] = jax.nn.sigmoid(y[0:B, 0:1] + fcb)

    return kernel


# ---------------------------------------------------------------------------
# Forward wrapper: a single pallas_call, 2 input operands, (B, 1) output.
# ---------------------------------------------------------------------------
def gru_default_forward(x, params_buf):
    """x: (B, T, 8) batch-first -> (B, 1).  Dropout layers are identity."""
    B, T, din1 = x.shape
    assert din1 == _LAYER_DIMS[0][0] and B <= _B_PAD
    kernel = _make_kernel(B, T)
    return pl.pallas_call(
        kernel,
        out_shape=jax.ShapeDtypeStruct((B, 1), jnp.float32),
        in_specs=[pl.BlockSpec(memory_space=pltpu.MemorySpace.VMEM),
                  pl.BlockSpec(memory_space=pltpu.MemorySpace.VMEM)],
        out_specs=pl.BlockSpec(memory_space=pltpu.MemorySpace.VMEM),
        scratch_shapes=[pltpu.VMEM((T * _B_PAD, _GL), jnp.float32),
                        pltpu.VMEM((T * _B_PAD, _GL), jnp.float32)],
    )(x.astype(jnp.float32), params_buf)


# ---------------------------------------------------------------------------
# Parameter packing: PyTorch layout -> one flat (rows, 384) f32 buffer.
# Done once, outside the jitted forward.
# ---------------------------------------------------------------------------
def pack_params(raw_params):
    gru_params = raw_params[:4]
    fcw, fcb = raw_params[4], raw_params[5]
    buf = jnp.zeros((_PARAM_ROWS, _NL), jnp.float32)
    for lay, (w_ih, w_hh, b_ih, b_hh) in zip(_LAYERS, gru_params):
        din, h = lay["din"], lay["h"]
        w_ih = jnp.asarray(w_ih, jnp.float32)
        w_hh = jnp.asarray(w_hh, jnp.float32)
        b_ih = jnp.asarray(b_ih, jnp.float32)
        b_hh = jnp.asarray(b_hh, jnp.float32)
        for g in range(3):                                 # gate order r, z, n
            buf = buf.at[lay["wih"]:lay["wih"] + din,
                         g * _GL:g * _GL + h].set(w_ih[g * h:(g + 1) * h, :].T)
            buf = buf.at[lay["whh"]:lay["whh"] + h,
                         g * _GL:g * _GL + h].set(w_hh[g * h:(g + 1) * h, :].T)
        # Folded projection biases: [b_ih_r+b_hh_r | b_ih_z+b_hh_z | b_ih_n].
        buf = buf.at[lay["gb"], 0:h].set(b_ih[0:h] + b_hh[0:h])
        buf = buf.at[lay["gb"], _GL:_GL + h].set(b_ih[h:2 * h] + b_hh[h:2 * h])
        buf = buf.at[lay["gb"], 2 * _GL:2 * _GL + h].set(b_ih[2 * h:3 * h])
        # b_hh_n stays inside r * (h @ W_hn + b_hh_n).
        buf = buf.at[lay["bhn"], 0:h].set(b_hh[2 * h:3 * h])
    h4 = _LAYER_DIMS[-1][1]
    buf = buf.at[_FC_W:_FC_W + h4, 0].set(jnp.asarray(fcw, jnp.float32)[0, :])
    buf = buf.at[_FC_B, 0].set(jnp.asarray(fcb, jnp.float32)[0])
    return buf


# ---------------------------------------------------------------------------
# Parameter construction (deterministic, PyTorch shapes / init range).
# ---------------------------------------------------------------------------
def init_gru_params(key, input_size, hidden_size):
    k = 1.0 / jnp.sqrt(jnp.float32(hidden_size))
    k1, k2, k3, k4 = jax.random.split(key, 4)
    w_ih = jax.random.uniform(k1, (3 * hidden_size, input_size), jnp.float32, -k, k)
    w_hh = jax.random.uniform(k2, (3 * hidden_size, hidden_size), jnp.float32, -k, k)
    b_ih = jax.random.uniform(k3, (3 * hidden_size,), jnp.float32, -k, k)
    b_hh = jax.random.uniform(k4, (3 * hidden_size,), jnp.float32, -k, k)
    return w_ih, w_hh, b_ih, b_hh


def init_fc_params(key, in_features, out_features):
    k = 1.0 / jnp.sqrt(jnp.float32(in_features))
    k1, k2 = jax.random.split(key)
    w = jax.random.uniform(k1, (out_features, in_features), jnp.float32, -k, k)
    b = jax.random.uniform(k2, (out_features,), jnp.float32, -k, k)
    return w, b


# ---------------------------------------------------------------------------
# Pure-JAX reference (PyTorch-layout params) for the correctness check.
# ---------------------------------------------------------------------------
def gru_layer_ref(x, w_ih, w_hh, b_ih, b_hh):
    B, T, _ = x.shape
    H = w_hh.shape[1]
    h = jnp.zeros((B, H), jnp.float32)
    outs = []
    for t in range(T):
        gi = x[:, t, :] @ w_ih.T + b_ih
        gh = h @ w_hh.T + b_hh
        r = jax.nn.sigmoid(gi[:, 0:H] + gh[:, 0:H])
        z = jax.nn.sigmoid(gi[:, H:2 * H] + gh[:, H:2 * H])
        n = jnp.tanh(gi[:, 2 * H:] + r * gh[:, 2 * H:])
        h = (1.0 - z) * n + z * h
        outs.append(h)
    return jnp.stack(outs, axis=1)


def forward_ref(x, params):
    g1, g2, g3, g4, fcw, fcb = params
    x = gru_layer_ref(x, *g1)
    x = gru_layer_ref(x, *g2)
    x = gru_layer_ref(x, *g3)
    x = gru_layer_ref(x, *g4)
    x = x[:, -1, :]
    return jax.nn.sigmoid(x @ fcw.T + fcb)


if __name__ == "__main__":
    key = jax.random.PRNGKey(0)
    k_x, k1, k2, k3, k4, k5 = jax.random.split(key, 6)

    B, T, D_IN = 2, 8, 8
    x = jax.random.normal(k_x, (B, T, D_IN), jnp.float32)

    raw_params = (
        init_gru_params(k1, 8, 20),
        init_gru_params(k2, 20, 20),
        init_gru_params(k3, 20, 10),
        init_gru_params(k4, 10, 10),
        *init_fc_params(k5, 10, 1),
    )
    packed = pack_params(raw_params)       # one flat f32 buffer, built once

    fwd = jax.jit(gru_default_forward)
    out = jax.block_until_ready(fwd(x, packed))

    ref = jax.block_until_ready(forward_ref(x, raw_params))
    assert out.shape == (B, 1)
    assert jnp.allclose(out, ref, atol=1e-4, rtol=1e-4), (out, ref)

    print("KERNEL_OK")
</pallas_src>

<mosaic_0001>
module attributes {stable_mosaic.version = 11 : i64} {
  func.func @kernel(%arg0: memref<2x8x8xf32, #tpu.memory_space<vmem>>, %arg1: memref<176x384xf32, #tpu.memory_space<vmem>>, %arg2: memref<2x1xf32, #tpu.memory_space<vmem>>, %arg3: memref<64x128xf32, #tpu.memory_space<vmem>>, %arg4: memref<64x128xf32, #tpu.memory_space<vmem>>) attributes {dimension_semantics = [], scalar_prefetch = 0 : i64, scratch_operands = 2 : i64, tpu.core_type = #tpu.core_type<tc>} {
    %cst = arith.constant 0.000000e+00 : f32
    %0 = vector.broadcast %cst : f32 to vector<6x8xf32>
    %c0 = arith.constant 0 : index
    %c0_0 = arith.constant 0 : index
    %c0_1 = arith.constant 0 : index
    %1 = vector.load %arg0[%c0, %c0_0, %c0_1] : memref<2x8x8xf32, #tpu.memory_space<vmem>>, vector<2x1x8xf32>
    %2 = vector.shape_cast %1 : vector<2x1x8xf32> to vector<2x8xf32>
    %c0_2 = arith.constant 0 : index
    %c1 = arith.constant 1 : index
    %c0_3 = arith.constant 0 : index
    %3 = vector.load %arg0[%c0_2, %c1, %c0_3] : memref<2x8x8xf32, #tpu.memory_space<vmem>>, vector<2x1x8xf32>
    %4 = vector.shape_cast %3 : vector<2x1x8xf32> to vector<2x8xf32>
    %c0_4 = arith.constant 0 : index
    %c2 = arith.constant 2 : index
    %c0_5 = arith.constant 0 : index
    %5 = vector.load %arg0[%c0_4, %c2, %c0_5] : memref<2x8x8xf32, #tpu.memory_space<vmem>>, vector<2x1x8xf32>
    %6 = vector.shape_cast %5 : vector<2x1x8xf32> to vector<2x8xf32>
    %c0_6 = arith.constant 0 : index
    %c3 = arith.constant 3 : index
    %c0_7 = arith.constant 0 : index
    %7 = vector.load %arg0[%c0_6, %c3, %c0_7] : memref<2x8x8xf32, #tpu.memory_space<vmem>>, vector<2x1x8xf32>
    %8 = vector.shape_cast %7 : vector<2x1x8xf32> to vector<2x8xf32>
    %c0_8 = arith.constant 0 : index
    %c4 = arith.constant 4 : index
    %c0_9 = arith.constant 0 : index
    %9 = vector.load %arg0[%c0_8, %c4, %c0_9] : memref<2x8x8xf32, #tpu.memory_space<vmem>>, vector<2x1x8xf32>
    %10 = vector.shape_cast %9 : vector<2x1x8xf32> to vector<2x8xf32>
    %c0_10 = arith.constant 0 : index
    %c5 = arith.constant 5 : index
    %c0_11 = arith.constant 0 : index
    %11 = vector.load %arg0[%c0_10, %c5, %c0_11] : memref<2x8x8xf32, #tpu.memory_space<vmem>>, vector<2x1x8xf32>
    %12 = vector.shape_cast %11 : vector<2x1x8xf32> to vector<2x8xf32>
    %c0_12 = arith.constant 0 : index
    %c6 = arith.constant 6 : index
    %c0_13 = arith.constant 0 : index
    %13 = vector.load %arg0[%c0_12, %c6, %c0_13] : memref<2x8x8xf32, #tpu.memory_space<vmem>>, vector<2x1x8xf32>
    %14 = vector.shape_cast %13 : vector<2x1x8xf32> to vector<2x8xf32>
    %c0_14 = arith.constant 0 : index
    %c7 = arith.constant 7 : index
    %c0_15 = arith.constant 0 : index
    %15 = vector.load %arg0[%c0_14, %c7, %c0_15] : memref<2x8x8xf32, #tpu.memory_space<vmem>>, vector<2x1x8xf32>
    %16 = vector.shape_cast %15 : vector<2x1x8xf32> to vector<2x8xf32>
    %17 = tpu.concatenate %2, %0, %4, %0, %6, %0, %8, %0, %10, %0, %12, %0, %14, %0, %16, %0 in 0 : vector<2x8xf32>, vector<6x8xf32>, vector<2x8xf32>, vector<6x8xf32>, vector<2x8xf32>, vector<6x8xf32>, vector<2x8xf32>, vector<6x8xf32>, vector<2x8xf32>, vector<6x8xf32>, vector<2x8xf32>, vector<6x8xf32>, vector<2x8xf32>, vector<6x8xf32>, vector<2x8xf32>, vector<6x8xf32> -> vector<64x8xf32>
    %c0_16 = arith.constant 0 : index
    %c0_17 = arith.constant 0 : index
    %18 = vector.load %arg1[%c0_16, %c0_17] : memref<176x384xf32, #tpu.memory_space<vmem>>, vector<8x384xf32>
    %c8 = arith.constant 8 : index
    %c0_18 = arith.constant 0 : index
    %19 = vector.load %arg1[%c8, %c0_18] : memref<176x384xf32, #tpu.memory_space<vmem>>, vector<20x384xf32>
    %c152 = arith.constant 152 : index
    %c0_19 = arith.constant 0 : index
    %20 = vector.load %arg1[%c152, %c0_19] : memref<176x384xf32, #tpu.memory_space<vmem>>, vector<1x384xf32>
    %c153 = arith.constant 153 : index
    %c0_20 = arith.constant 0 : index
    %21 = vector.load %arg1[%c153, %c0_20] : memref<176x384xf32, #tpu.memory_space<vmem>>, vector<1x20xf32>
    %22 = vector.shape_cast %21 : vector<1x20xf32> to vector<1x20xf32>
    %23 = vector.broadcast %22 : vector<1x20xf32> to vector<8x20xf32>
    %cst_21 = arith.constant dense<0.000000e+00> : vector<64x384xf32>
    %24 = tpu.matmul %17, %18, %cst_21 {dimension_numbers = #tpu.dot_dimension_numbers<[1], [0], [0], [1], [0, 0, 1, 1], [], []>} : vector<64x8xf32>, vector<8x384xf32>, vector<64x384xf32> -> vector<64x384xf32>
    %25 = vector.broadcast %20 : vector<1x384xf32> to vector<64x384xf32>
    %26 = arith.addf %24, %25 : vector<64x384xf32>
    %27 = vector.extract_strided_slice %26 {offsets = [0, 0], sizes = [64, 20], strides = [1, 1]} : vector<64x384xf32> to vector<64x20xf32>
    %28 = vector.extract_strided_slice %26 {offsets = [0, 128], sizes = [64, 20], strides = [1, 1]} : vector<64x384xf32> to vector<64x20xf32>
    %29 = vector.extract_strided_slice %26 {offsets = [0, 256], sizes = [64, 20], strides = [1, 1]} : vector<64x384xf32> to vector<64x20xf32>
    %cst_22 = arith.constant 0.000000e+00 : f32
    %30 = vector.broadcast %cst_22 : f32 to vector<8x20xf32>
    %cst_23 = arith.constant dense<0.000000e+00> : vector<8x384xf32>
    %31 = tpu.matmul %30, %19, %cst_23 {dimension_numbers = #tpu.dot_dimension_numbers<[1], [0], [0], [1], [0, 0, 1, 1], [], []>} : vector<8x20xf32>, vector<20x384xf32>, vector<8x384xf32> -> vector<8x384xf32>
    %32 = vector.extract_strided_slice %27 {offsets = [0, 0], sizes = [8, 20], strides = [1, 1]} : vector<64x20xf32> to vector<8x20xf32>
    %33 = vector.extract_strided_slice %31 {offsets = [0, 0], sizes = [8, 20], strides = [1, 1]} : vector<8x384xf32> to vector<8x20xf32>
    %34 = arith.addf %32, %33 : vector<8x20xf32>
    %35 = arith.negf %34 : vector<8x20xf32>
    %36 = math.exp %35 : vector<8x20xf32>
    %cst_24 = arith.constant 1.000000e+00 : f32
    %37 = vector.broadcast %cst_24 : f32 to vector<8x20xf32>
    %38 = arith.addf %37, %36 : vector<8x20xf32>
    %39 = arith.divf %37, %38 : vector<8x20xf32>
    %40 = vector.extract_strided_slice %28 {offsets = [0, 0], sizes = [8, 20], strides = [1, 1]} : vector<64x20xf32> to vector<8x20xf32>
    %41 = vector.extract_strided_slice %31 {offsets = [0, 128], sizes = [8, 20], strides = [1, 1]} : vector<8x384xf32> to vector<8x20xf32>
    %42 = arith.addf %40, %41 : vector<8x20xf32>
    %43 = arith.negf %42 : vector<8x20xf32>
    %44 = math.exp %43 : vector<8x20xf32>
    %cst_25 = arith.constant 1.000000e+00 : f32
    %45 = vector.broadcast %cst_25 : f32 to vector<8x20xf32>
    %46 = arith.addf %45, %44 : vector<8x20xf32>
    %47 = arith.divf %45, %46 : vector<8x20xf32>
    %48 = vector.extract_strided_slice %29 {offsets = [0, 0], sizes = [8, 20], strides = [1, 1]} : vector<64x20xf32> to vector<8x20xf32>
    %49 = vector.extract_strided_slice %31 {offsets = [0, 256], sizes = [8, 20], strides = [1, 1]} : vector<8x384xf32> to vector<8x20xf32>
    %50 = arith.addf %49, %23 : vector<8x20xf32>
    %51 = arith.mulf %39, %50 : vector<8x20xf32>
    %52 = arith.addf %48, %51 : vector<8x20xf32>
    %53 = math.tanh %52 : vector<8x20xf32>
    %cst_26 = arith.constant 1.000000e+00 : f32
    %54 = vector.broadcast %cst_26 : f32 to vector<8x20xf32>
    %55 = arith.subf %54, %47 : vector<8x20xf32>
    %56 = arith.mulf %55, %53 : vector<8x20xf32>
    %57 = arith.mulf %47, %30 : vector<8x20xf32>
    %58 = arith.addf %56, %57 : vector<8x20xf32>
    %c0_27 = arith.constant 0 : index
    %c0_28 = arith.constant 0 : index
    %59 = vector.load %arg3[%c0_27, %c0_28] : memref<64x128xf32, #tpu.memory_space<vmem>>, vector<8x20xf32>
    tpu.vector_store %arg3[%c0_27, %c0_28], %58 {strides = array<i32>} : memref<64x128xf32, #tpu.memory_space<vmem>>, vector<8x20xf32>,
    %cst_29 = arith.constant dense<0.000000e+00> : vector<8x384xf32>
    %60 = tpu.matmul %58, %19, %cst_29 {dimension_numbers = #tpu.dot_dimension_numbers<[1], [0], [0], [1], [0, 0, 1, 1], [], []>} : vector<8x20xf32>, vector<20x384xf32>, vector<8x384xf32> -> vector<8x384xf32>
    %61 = vector.extract_strided_slice %27 {offsets = [8, 0], sizes = [8, 20], strides = [1, 1]} : vector<64x20xf32> to vector<8x20xf32>
    %62 = vector.extract_strided_slice %60 {offsets = [0, 0], sizes = [8, 20], strides = [1, 1]} : vector<8x384xf32> to vector<8x20xf32>
    %63 = arith.addf %61, %62 : vector<8x20xf32>
    %64 = arith.negf %63 : vector<8x20xf32>
    %65 = math.exp %64 : vector<8x20xf32>
    %cst_30 = arith.constant 1.000000e+00 : f32
    %66 = vector.broadcast %cst_30 : f32 to vector<8x20xf32>
    %67 = arith.addf %66, %65 : vector<8x20xf32>
    %68 = arith.divf %66, %67 : vector<8x20xf32>
    %69 = vector.extract_strided_slice %28 {offsets = [8, 0], sizes = [8, 20], strides = [1, 1]} : vector<64x20xf32> to vector<8x20xf32>
    %70 = vector.extract_strided_slice %60 {offsets = [0, 128], sizes = [8, 20], strides = [1, 1]} : vector<8x384xf32> to vector<8x20xf32>
    %71 = arith.addf %69, %70 : vector<8x20xf32>
    %72 = arith.negf %71 : vector<8x20xf32>
    %73 = math.exp %72 : vector<8x20xf32>
    %cst_31 = arith.constant 1.000000e+00 : f32
    %74 = vector.broadcast %cst_31 : f32 to vector<8x20xf32>
    %75 = arith.addf %74, %73 : vector<8x20xf32>
    %76 = arith.divf %74, %75 : vector<8x20xf32>
    %77 = vector.extract_strided_slice %29 {offsets = [8, 0], sizes = [8, 20], strides = [1, 1]} : vector<64x20xf32> to vector<8x20xf32>
    %78 = vector.extract_strided_slice %60 {offsets = [0, 256], sizes = [8, 20], strides = [1, 1]} : vector<8x384xf32> to vector<8x20xf32>
    %79 = arith.addf %78, %23 : vector<8x20xf32>
    %80 = arith.mulf %68, %79 : vector<8x20xf32>
    %81 = arith.addf %77, %80 : vector<8x20xf32>
    %82 = math.tanh %81 : vector<8x20xf32>
    %cst_32 = arith.constant 1.000000e+00 : f32
    %83 = vector.broadcast %cst_32 : f32 to vector<8x20xf32>
    %84 = arith.subf %83, %76 : vector<8x20xf32>
    %85 = arith.mulf %84, %82 : vector<8x20xf32>
    %86 = arith.mulf %76, %58 : vector<8x20xf32>
    %87 = arith.addf %85, %86 : vector<8x20xf32>
    %c8_33 = arith.constant 8 : index
    %c0_34 = arith.constant 0 : index
    %88 = vector.load %arg3[%c8_33, %c0_34] : memref<64x128xf32, #tpu.memory_space<vmem>>, vector<8x20xf32>
    tpu.vector_store %arg3[%c8_33, %c0_34], %87 {strides = array<i32>} : memref<64x128xf32, #tpu.memory_space<vmem>>, vector<8x20xf32>,
    %cst_35 = arith.constant dense<0.000000e+00> : vector<8x384xf32>
    %89 = tpu.matmul %87, %19, %cst_35 {dimension_numbers = #tpu.dot_dimension_numbers<[1], [0], [0], [1], [0, 0, 1, 1], [], []>} : vector<8x20xf32>, vector<20x384xf32>, vector<8x384xf32> -> vector<8x384xf32>
    %90 = vector.extract_strided_slice %27 {offsets = [16, 0], sizes = [8, 20], strides = [1, 1]} : vector<64x20xf32> to vector<8x20xf32>
    %91 = vector.extract_strided_slice %89 {offsets = [0, 0], sizes = [8, 20], strides = [1, 1]} : vector<8x384xf32> to vector<8x20xf32>
    %92 = arith.addf %90, %91 : vector<8x20xf32>
    %93 = arith.negf %92 : vector<8x20xf32>
    %94 = math.exp %93 : vector<8x20xf32>
    %cst_36 = arith.constant 1.000000e+00 : f32
    %95 = vector.broadcast %cst_36 : f32 to vector<8x20xf32>
    %96 = arith.addf %95, %94 : vector<8x20xf32>
    %97 = arith.divf %95, %96 : vector<8x20xf32>
    %98 = vector.extract_strided_slice %28 {offsets = [16, 0], sizes = [8, 20], strides = [1, 1]} : vector<64x20xf32> to vector<8x20xf32>
    %99 = vector.extract_strided_slice %89 {offsets = [0, 128], sizes = [8, 20], strides = [1, 1]} : vector<8x384xf32> to vector<8x20xf32>
    %100 = arith.addf %98, %99 : vector<8x20xf32>
    %101 = arith.negf %100 : vector<8x20xf32>
    %102 = math.exp %101 : vector<8x20xf32>
    %cst_37 = arith.constant 1.000000e+00 : f32
    %103 = vector.broadcast %cst_37 : f32 to vector<8x20xf32>
    %104 = arith.addf %103, %102 : vector<8x20xf32>
    %105 = arith.divf %103, %104 : vector<8x20xf32>
    %106 = vector.extract_strided_slice %29 {offsets = [16, 0], sizes = [8, 20], strides = [1, 1]} : vector<64x20xf32> to vector<8x20xf32>
    %107 = vector.extract_strided_slice %89 {offsets = [0, 256], sizes = [8, 20], strides = [1, 1]} : vector<8x384xf32> to vector<8x20xf32>
    %108 = arith.addf %107, %23 : vector<8x20xf32>
    %109 = arith.mulf %97, %108 : vector<8x20xf32>
    %110 = arith.addf %106, %109 : vector<8x20xf32>
    %111 = math.tanh %110 : vector<8x20xf32>
    %cst_38 = arith.constant 1.000000e+00 : f32
    %112 = vector.broadcast %cst_38 : f32 to vector<8x20xf32>
    %113 = arith.subf %112, %105 : vector<8x20xf32>
    %114 = arith.mulf %113, %111 : vector<8x20xf32>
    %115 = arith.mulf %105, %87 : vector<8x20xf32>
    %116 = arith.addf %114, %115 : vector<8x20xf32>
    %c16 = arith.constant 16 : index
    %c0_39 = arith.constant 0 : index
    %117 = vector.load %arg3[%c16, %c0_39] : memref<64x128xf32, #tpu.memory_space<vmem>>, vector<8x20xf32>
    tpu.vector_store %arg3[%c16, %c0_39], %116 {strides = array<i32>} : memref<64x128xf32, #tpu.memory_space<vmem>>, vector<8x20xf32>,
    %cst_40 = arith.constant dense<0.000000e+00> : vector<8x384xf32>
    %118 = tpu.matmul %116, %19, %cst_40 {dimension_numbers = #tpu.dot_dimension_numbers<[1], [0], [0], [1], [0, 0, 1, 1], [], []>} : vector<8x20xf32>, vector<20x384xf32>, vector<8x384xf32> -> vector<8x384xf32>
    %119 = vector.extract_strided_slice %27 {offsets = [24, 0], sizes = [8, 20], strides = [1, 1]} : vector<64x20xf32> to vector<8x20xf32>
    %120 = vector.extract_strided_slice %118 {offsets = [0, 0], sizes = [8, 20], strides = [1, 1]} : vector<8x384xf32> to vector<8x20xf32>
    %121 = arith.addf %119, %120 : vector<8x20xf32>
    %122 = arith.negf %121 : vector<8x20xf32>
    %123 = math.exp %122 : vector<8x20xf32>
    %cst_41 = arith.constant 1.000000e+00 : f32
    %124 = vector.broadcast %cst_41 : f32 to vector<8x20xf32>
    %125 = arith.addf %124, %123 : vector<8x20xf32>
    %126 = arith.divf %124, %125 : vector<8x20xf32>
    %127 = vector.extract_strided_slice %28 {offsets = [24, 0], sizes = [8, 20], strides = [1, 1]} : vector<64x20xf32> to vector<8x20xf32>
    %128 = vector.extract_strided_slice %118 {offsets = [0, 128], sizes = [8, 20], strides = [1, 1]} : vector<8x384xf32> to vector<8x20xf32>
    %129 = arith.addf %127, %128 : vector<8x20xf32>
    %130 = arith.negf %129 : vector<8x20xf32>
    %131 = math.exp %130 : vector<8x20xf32>
    %cst_42 = arith.constant 1.000000e+00 : f32
    %132 = vector.broadcast %cst_42 : f32 to vector<8x20xf32>
    %133 = arith.addf %132, %131 : vector<8x20xf32>
    %134 = arith.divf %132, %133 : vector<8x20xf32>
    %135 = vector.extract_strided_slice %29 {offsets = [24, 0], sizes = [8, 20], strides = [1, 1]} : vector<64x20xf32> to vector<8x20xf32>
    %136 = vector.extract_strided_slice %118 {offsets = [0, 256], sizes = [8, 20], strides = [1, 1]} : vector<8x384xf32> to vector<8x20xf32>
    %137 = arith.addf %136, %23 : vector<8x20xf32>
    %138 = arith.mulf %126, %137 : vector<8x20xf32>
    %139 = arith.addf %135, %138 : vector<8x20xf32>
    %140 = math.tanh %139 : vector<8x20xf32>
    %cst_43 = arith.constant 1.000000e+00 : f32
    %141 = vector.broadcast %cst_43 : f32 to vector<8x20xf32>
    %142 = arith.subf %141, %134 : vector<8x20xf32>
    %143 = arith.mulf %142, %140 : vector<8x20xf32>
    %144 = arith.mulf %134, %116 : vector<8x20xf32>
    %145 = arith.addf %143, %144 : vector<8x20xf32>
    %c24 = arith.constant 24 : index
    %c0_44 = arith.constant 0 : index
    %146 = vector.load %arg3[%c24, %c0_44] : memref<64x128xf32, #tpu.memory_space<vmem>>, vector<8x20xf32>
    tpu.vector_store %arg3[%c24, %c0_44], %145 {strides = array<i32>} : memref<64x128xf32, #tpu.memory_space<vmem>>, vector<8x20xf32>,
    %cst_45 = arith.constant dense<0.000000e+00> : vector<8x384xf32>
    %147 = tpu.matmul %145, %19, %cst_45 {dimension_numbers = #tpu.dot_dimension_numbers<[1], [0], [0], [1], [0, 0, 1, 1], [], []>} : vector<8x20xf32>, vector<20x384xf32>, vector<8x384xf32> -> vector<8x384xf32>
    %148 = vector.extract_strided_slice %27 {offsets = [32, 0], sizes = [8, 20], strides = [1, 1]} : vector<64x20xf32> to vector<8x20xf32>
    %149 = vector.extract_strided_slice %147 {offsets = [0, 0], sizes = [8, 20], strides = [1, 1]} : vector<8x384xf32> to vector<8x20xf32>
    %150 = arith.addf %148, %149 : vector<8x20xf32>
    %151 = arith.negf %150 : vector<8x20xf32>
    %152 = math.exp %151 : vector<8x20xf32>
    %cst_46 = arith.constant 1.000000e+00 : f32
    %153 = vector.broadcast %cst_46 : f32 to vector<8x20xf32>
    %154 = arith.addf %153, %152 : vector<8x20xf32>
    %155 = arith.divf %153, %154 : vector<8x20xf32>
    %156 = vector.extract_strided_slice %28 {offsets = [32, 0], sizes = [8, 20], strides = [1, 1]} : vector<64x20xf32> to vector<8x20xf32>
    %157 = vector.extract_strided_slice %147 {offsets = [0, 128], sizes = [8, 20], strides = [1, 1]} : vector<8x384xf32> to vector<8x20xf32>
    %158 = arith.addf %156, %157 : vector<8x20xf32>
    %159 = arith.negf %158 : vector<8x20xf32>
    %160 = math.exp %159 : vector<8x20xf32>
    %cst_47 = arith.constant 1.000000e+00 : f32
    %161 = vector.broadcast %cst_47 : f32 to vector<8x20xf32>
    %162 = arith.addf %161, %160 : vector<8x20xf32>
    %163 = arith.divf %161, %162 : vector<8x20xf32>
    %164 = vector.extract_strided_slice %29 {offsets = [32, 0], sizes = [8, 20], strides = [1, 1]} : vector<64x20xf32> to vector<8x20xf32>
    %165 = vector.extract_strided_slice %147 {offsets = [0, 256], sizes = [8, 20], strides = [1, 1]} : vector<8x384xf32> to vector<8x20xf32>
    %166 = arith.addf %165, %23 : vector<8x20xf32>
    %167 = arith.mulf %155, %166 : vector<8x20xf32>
    %168 = arith.addf %164, %167 : vector<8x20xf32>
    %169 = math.tanh %168 : vector<8x20xf32>
    %cst_48 = arith.constant 1.000000e+00 : f32
    %170 = vector.broadcast %cst_48 : f32 to vector<8x20xf32>
    %171 = arith.subf %170, %163 : vector<8x20xf32>
    %172 = arith.mulf %171, %169 : vector<8x20xf32>
    %173 = arith.mulf %163, %145 : vector<8x20xf32>
    %174 = arith.addf %172, %173 : vector<8x20xf32>
    %c32 = arith.constant 32 : index
    %c0_49 = arith.constant 0 : index
    %175 = vector.load %arg3[%c32, %c0_49] : memref<64x128xf32, #tpu.memory_space<vmem>>, vector<8x20xf32>
    tpu.vector_store %arg3[%c32, %c0_49], %174 {strides = array<i32>} : memref<64x128xf32, #tpu.memory_space<vmem>>, vector<8x20xf32>,
    %cst_50 = arith.constant dense<0.000000e+00> : vector<8x384xf32>
    %176 = tpu.matmul %174, %19, %cst_50 {dimension_numbers = #tpu.dot_dimension_numbers<[1], [0], [0], [1], [0, 0, 1, 1], [], []>} : vector<8x20xf32>, vector<20x384xf32>, vector<8x384xf32> -> vector<8x384xf32>
    %177 = vector.extract_strided_slice %27 {offsets = [40, 0], sizes = [8, 20], strides = [1, 1]} : vector<64x20xf32> to vector<8x20xf32>
    %178 = vector.extract_strided_slice %176 {offsets = [0, 0], sizes = [8, 20], strides = [1, 1]} : vector<8x384xf32> to vector<8x20xf32>
    %179 = arith.addf %177, %178 : vector<8x20xf32>
    %180 = arith.negf %179 : vector<8x20xf32>
    %181 = math.exp %180 : vector<8x20xf32>
    %cst_51 = arith.constant 1.000000e+00 : f32
    %182 = vector.broadcast %cst_51 : f32 to vector<8x20xf32>
    %183 = arith.addf %182, %181 : vector<8x20xf32>
    %184 = arith.divf %182, %183 : vector<8x20xf32>
    %185 = vector.extract_strided_slice %28 {offsets = [40, 0], sizes = [8, 20], strides = [1, 1]} : vector<64x20xf32> to vector<8x20xf32>
    %186 = vector.extract_strided_slice %176 {offsets = [0, 128], sizes = [8, 20], strides = [1, 1]} : vector<8x384xf32> to vector<8x20xf32>
    %187 = arith.addf %185, %186 : vector<8x20xf32>
    %188 = arith.negf %187 : vector<8x20xf32>
    %189 = math.exp %188 : vector<8x20xf32>
    %cst_52 = arith.constant 1.000000e+00 : f32
    %190 = vector.broadcast %cst_52 : f32 to vector<8x20xf32>
    %191 = arith.addf %190, %189 : vector<8x20xf32>
    %192 = arith.divf %190, %191 : vector<8x20xf32>
    %193 = vector.extract_strided_slice %29 {offsets = [40, 0], sizes = [8, 20], strides = [1, 1]} : vector<64x20xf32> to vector<8x20xf32>
    %194 = vector.extract_strided_slice %176 {offsets = [0, 256], sizes = [8, 20], strides = [1, 1]} : vector<8x384xf32> to vector<8x20xf32>
    %195 = arith.addf %194, %23 : vector<8x20xf32>
    %196 = arith.mulf %184, %195 : vector<8x20xf32>
    %197 = arith.addf %193, %196 : vector<8x20xf32>
    %198 = math.tanh %197 : vector<8x20xf32>
    %cst_53 = arith.constant 1.000000e+00 : f32
    %199 = vector.broadcast %cst_53 : f32 to vector<8x20xf32>
    %200 = arith.subf %199, %192 : vector<8x20xf32>
    %201 = arith.mulf %200, %198 : vector<8x20xf32>
    %202 = arith.mulf %192, %174 : vector<8x20xf32>
    %203 = arith.addf %201, %202 : vector<8x20xf32>
    %c40 = arith.constant 40 : index
    %c0_54 = arith.constant 0 : index
    %204 = vector.load %arg3[%c40, %c0_54] : memref<64x128xf32, #tpu.memory_space<vmem>>, vector<8x20xf32>
    tpu.vector_store %arg3[%c40, %c0_54], %203 {strides = array<i32>} : memref<64x128xf32, #tpu.memory_space<vmem>>, vector<8x20xf32>,
    %cst_55 = arith.constant dense<0.000000e+00> : vector<8x384xf32>
    %205 = tpu.matmul %203, %19, %cst_55 {dimension_numbers = #tpu.dot_dimension_numbers<[1], [0], [0], [1], [0, 0, 1, 1], [], []>} : vector<8x20xf32>, vector<20x384xf32>, vector<8x384xf32> -> vector<8x384xf32>
    %206 = vector.extract_strided_slice %27 {offsets = [48, 0], sizes = [8, 20], strides = [1, 1]} : vector<64x20xf32> to vector<8x20xf32>
    %207 = vector.extract_strided_slice %205 {offsets = [0, 0], sizes = [8, 20], strides = [1, 1]} : vector<8x384xf32> to vector<8x20xf32>
    %208 = arith.addf %206, %207 : vector<8x20xf32>
    %209 = arith.negf %208 : vector<8x20xf32>
    %210 = math.exp %209 : vector<8x20xf32>
    %cst_56 = arith.constant 1.000000e+00 : f32
    %211 = vector.broadcast %cst_56 : f32 to vector<8x20xf32>
    %212 = arith.addf %211, %210 : vector<8x20xf32>
    %213 = arith.divf %211, %212 : vector<8x20xf32>
    %214 = vector.extract_strided_slice %28 {offsets = [48, 0], sizes = [8, 20], strides = [1, 1]} : vector<64x20xf32> to vector<8x20xf32>
    %215 = vector.extract_strided_slice %205 {offsets = [0, 128], sizes = [8, 20], strides = [1, 1]} : vector<8x384xf32> to vector<8x20xf32>
    %216 = arith.addf %214, %215 : vector<8x20xf32>
    %217 = arith.negf %216 : vector<8x20xf32>
    %218 = math.exp %217 : vector<8x20xf32>
    %cst_57 = arith.constant 1.000000e+00 : f32
    %219 = vector.broadcast %cst_57 : f32 to vector<8x20xf32>
    %220 = arith.addf %219, %218 : vector<8x20xf32>
    %221 = arith.divf %219, %220 : vector<8x20xf32>
    %222 = vector.extract_strided_slice %29 {offsets = [48, 0], sizes = [8, 20], strides = [1, 1]} : vector<64x20xf32> to vector<8x20xf32>
    %223 = vector.extract_strided_slice %205 {offsets = [0, 256], sizes = [8, 20], strides = [1, 1]} : vector<8x384xf32> to vector<8x20xf32>
    %224 = arith.addf %223, %23 : vector<8x20xf32>
    %225 = arith.mulf %213, %224 : vector<8x20xf32>
    %226 = arith.addf %222, %225 : vector<8x20xf32>
    %227 = math.tanh %226 : vector<8x20xf32>
    %cst_58 = arith.constant 1.000000e+00 : f32
    %228 = vector.broadcast %cst_58 : f32 to vector<8x20xf32>
    %229 = arith.subf %228, %221 : vector<8x20xf32>
    %230 = arith.mulf %229, %227 : vector<8x20xf32>
    %231 = arith.mulf %221, %203 : vector<8x20xf32>
    %232 = arith.addf %230, %231 : vector<8x20xf32>
    %c48 = arith.constant 48 : index
    %c0_59 = arith.constant 0 : index
    %233 = vector.load %arg3[%c48, %c0_59] : memref<64x128xf32, #tpu.memory_space<vmem>>, vector<8x20xf32>
    tpu.vector_store %arg3[%c48, %c0_59], %232 {strides = array<i32>} : memref<64x128xf32, #tpu.memory_space<vmem>>, vector<8x20xf32>,
    %cst_60 = arith.constant dense<0.000000e+00> : vector<8x384xf32>
    %234 = tpu.matmul %232, %19, %cst_60 {dimension_numbers = #tpu.dot_dimension_numbers<[1], [0], [0], [1], [0, 0, 1, 1], [], []>} : vector<8x20xf32>, vector<20x384xf32>, vector<8x384xf32> -> vector<8x384xf32>
    %235 = vector.extract_strided_slice %27 {offsets = [56, 0], sizes = [8, 20], strides = [1, 1]} : vector<64x20xf32> to vector<8x20xf32>
    %236 = vector.extract_strided_slice %234 {offsets = [0, 0], sizes = [8, 20], strides = [1, 1]} : vector<8x384xf32> to vector<8x20xf32>
    %237 = arith.addf %235, %236 : vector<8x20xf32>
    %238 = arith.negf %237 : vector<8x20xf32>
    %239 = math.exp %238 : vector<8x20xf32>
    %cst_61 = arith.constant 1.000000e+00 : f32
    %240 = vector.broadcast %cst_61 : f32 to vector<8x20xf32>
    %241 = arith.addf %240, %239 : vector<8x20xf32>
    %242 = arith.divf %240, %241 : vector<8x20xf32>
    %243 = vector.extract_strided_slice %28 {offsets = [56, 0], sizes = [8, 20], strides = [1, 1]} : vector<64x20xf32> to vector<8x20xf32>
    %244 = vector.extract_strided_slice %234 {offsets = [0, 128], sizes = [8, 20], strides = [1, 1]} : vector<8x384xf32> to vector<8x20xf32>
    %245 = arith.addf %243, %244 : vector<8x20xf32>
    %246 = arith.negf %245 : vector<8x20xf32>
    %247 = math.exp %246 : vector<8x20xf32>
    %cst_62 = arith.constant 1.000000e+00 : f32
    %248 = vector.broadcast %cst_62 : f32 to vector<8x20xf32>
    %249 = arith.addf %248, %247 : vector<8x20xf32>
    %250 = arith.divf %248, %249 : vector<8x20xf32>
    %251 = vector.extract_strided_slice %29 {offsets = [56, 0], sizes = [8, 20], strides = [1, 1]} : vector<64x20xf32> to vector<8x20xf32>
    %252 = vector.extract_strided_slice %234 {offsets = [0, 256], sizes = [8, 20], strides = [1, 1]} : vector<8x384xf32> to vector<8x20xf32>
    %253 = arith.addf %252, %23 : vector<8x20xf32>
    %254 = arith.mulf %242, %253 : vector<8x20xf32>
    %255 = arith.addf %251, %254 : vector<8x20xf32>
    %256 = math.tanh %255 : vector<8x20xf32>
    %cst_63 = arith.constant 1.000000e+00 : f32
    %257 = vector.broadcast %cst_63 : f32 to vector<8x20xf32>
    %258 = arith.subf %257, %250 : vector<8x20xf32>
    %259 = arith.mulf %258, %256 : vector<8x20xf32>
    %260 = arith.mulf %250, %232 : vector<8x20xf32>
    %261 = arith.addf %259, %260 : vector<8x20xf32>
    %c56 = arith.constant 56 : index
    %c0_64 = arith.constant 0 : index
    %262 = vector.load %arg3[%c56, %c0_64] : memref<64x128xf32, #tpu.memory_space<vmem>>, vector<8x20xf32>
    tpu.vector_store %arg3[%c56, %c0_64], %261 {strides = array<i32>} : memref<64x128xf32, #tpu.memory_space<vmem>>, vector<8x20xf32>,
    %c0_65 = arith.constant 0 : index
    %c0_66 = arith.constant 0 : index
    %263 = vector.load %arg3[%c0_65, %c0_66] : memref<64x128xf32, #tpu.memory_space<vmem>>, vector<64x20xf32>
    %c32_67 = arith.constant 32 : index
    %c0_68 = arith.constant 0 : index
    %264 = vector.load %arg1[%c32_67, %c0_68] : memref<176x384xf32, #tpu.memory_space<vmem>>, vector<20x384xf32>
    %c56_69 = arith.constant 56 : index
    %c0_70 = arith.constant 0 : index
    %265 = vector.load %arg1[%c56_69, %c0_70] : memref<176x384xf32, #tpu.memory_space<vmem>>, vector<20x384xf32>
    %c154 = arith.constant 154 : index
    %c0_71 = arith.constant 0 : index
    %266 = vector.load %arg1[%c154, %c0_71] : memref<176x384xf32, #tpu.memory_space<vmem>>, vector<1x384xf32>
    %c155 = arith.constant 155 : index
    %c0_72 = arith.constant 0 : index
    %267 = vector.load %arg1[%c155, %c0_72] : memref<176x384xf32, #tpu.memory_space<vmem>>, vector<1x20xf32>
    %268 = vector.shape_cast %267 : vector<1x20xf32> to vector<1x20xf32>
    %269 = vector.broadcast %268 : vector<1x20xf32> to vector<8x20xf32>
    %cst_73 = arith.constant dense<0.000000e+00> : vector<64x384xf32>
    %270 = tpu.matmul %263, %264, %cst_73 {dimension_numbers = #tpu.dot_dimension_numbers<[1], [0], [0], [1], [0, 0, 1, 1], [], []>} : vector<64x20xf32>, vector<20x384xf32>, vector<64x384xf32> -> vector<64x384xf32>
    %271 = vector.broadcast %266 : vector<1x384xf32> to vector<64x384xf32>
    %272 = arith.addf %270, %271 : vector<64x384xf32>
    %273 = vector.extract_strided_slice %272 {offsets = [0, 0], sizes = [64, 20], strides = [1, 1]} : vector<64x384xf32> to vector<64x20xf32>
    %274 = vector.extract_strided_slice %272 {offsets = [0, 128], sizes = [64, 20], strides = [1, 1]} : vector<64x384xf32> to vector<64x20xf32>
    %275 = vector.extract_strided_slice %272 {offsets = [0, 256], sizes = [64, 20], strides = [1, 1]} : vector<64x384xf32> to vector<64x20xf32>
    %cst_74 = arith.constant 0.000000e+00 : f32
    %276 = vector.broadcast %cst_74 : f32 to vector<8x20xf32>
    %cst_75 = arith.constant dense<0.000000e+00> : vector<8x384xf32>
    %277 = tpu.matmul %276, %265, %cst_75 {dimension_numbers = #tpu.dot_dimension_numbers<[1], [0], [0], [1], [0, 0, 1, 1], [], []>} : vector<8x20xf32>, vector<20x384xf32>, vector<8x384xf32> -> vector<8x384xf32>
    %278 = vector.extract_strided_slice %273 {offsets = [0, 0], sizes = [8, 20], strides = [1, 1]} : vector<64x20xf32> to vector<8x20xf32>
    %279 = vector.extract_strided_slice %277 {offsets = [0, 0], sizes = [8, 20], strides = [1, 1]} : vector<8x384xf32> to vector<8x20xf32>
    %280 = arith.addf %278, %279 : vector<8x20xf32>
    %281 = arith.negf %280 : vector<8x20xf32>
    %282 = math.exp %281 : vector<8x20xf32>
    %cst_76 = arith.constant 1.000000e+00 : f32
    %283 = vector.broadcast %cst_76 : f32 to vector<8x20xf32>
    %284 = arith.addf %283, %282 : vector<8x20xf32>
    %285 = arith.divf %283, %284 : vector<8x20xf32>
    %286 = vector.extract_strided_slice %274 {offsets = [0, 0], sizes = [8, 20], strides = [1, 1]} : vector<64x20xf32> to vector<8x20xf32>
    %287 = vector.extract_strided_slice %277 {offsets = [0, 128], sizes = [8, 20], strides = [1, 1]} : vector<8x384xf32> to vector<8x20xf32>
    %288 = arith.addf %286, %287 : vector<8x20xf32>
    %289 = arith.negf %288 : vector<8x20xf32>
    %290 = math.exp %289 : vector<8x20xf32>
    %cst_77 = arith.constant 1.000000e+00 : f32
    %291 = vector.broadcast %cst_77 : f32 to vector<8x20xf32>
    %292 = arith.addf %291, %290 : vector<8x20xf32>
    %293 = arith.divf %291, %292 : vector<8x20xf32>
    %294 = vector.extract_strided_slice %275 {offsets = [0, 0], sizes = [8, 20], strides = [1, 1]} : vector<64x20xf32> to vector<8x20xf32>
    %295 = vector.extract_strided_slice %277 {offsets = [0, 256], sizes = [8, 20], strides = [1, 1]} : vector<8x384xf32> to vector<8x20xf32>
    %296 = arith.addf %295, %269 : vector<8x20xf32>
    %297 = arith.mulf %285, %296 : vector<8x20xf32>
    %298 = arith.addf %294, %297 : vector<8x20xf32>
    %299 = math.tanh %298 : vector<8x20xf32>
    %cst_78 = arith.constant 1.000000e+00 : f32
    %300 = vector.broadcast %cst_78 : f32 to vector<8x20xf32>
    %301 = arith.subf %300, %293 : vector<8x20xf32>
    %302 = arith.mulf %301, %299 : vector<8x20xf32>
    %303 = arith.mulf %293, %276 : vector<8x20xf32>
    %304 = arith.addf %302, %303 : vector<8x20xf32>
    %c0_79 = arith.constant 0 : index
    %c0_80 = arith.constant 0 : index
    %305 = vector.load %arg4[%c0_79, %c0_80] : memref<64x128xf32, #tpu.memory_space<vmem>>, vector<8x20xf32>
    tpu.vector_store %arg4[%c0_79, %c0_80], %304 {strides = array<i32>} : memref<64x128xf32, #tpu.memory_space<vmem>>, vector<8x20xf32>,
    %cst_81 = arith.constant dense<0.000000e+00> : vector<8x384xf32>
    %306 = tpu.matmul %304, %265, %cst_81 {dimension_numbers = #tpu.dot_dimension_numbers<[1], [0], [0], [1], [0, 0, 1, 1], [], []>} : vector<8x20xf32>, vector<20x384xf32>, vector<8x384xf32> -> vector<8x384xf32>
    %307 = vector.extract_strided_slice %273 {offsets = [8, 0], sizes = [8, 20], strides = [1, 1]} : vector<64x20xf32> to vector<8x20xf32>
    %308 = vector.extract_strided_slice %306 {offsets = [0, 0], sizes = [8, 20], strides = [1, 1]} : vector<8x384xf32> to vector<8x20xf32>
    %309 = arith.addf %307, %308 : vector<8x20xf32>
    %310 = arith.negf %309 : vector<8x20xf32>
    %311 = math.exp %310 : vector<8x20xf32>
    %cst_82 = arith.constant 1.000000e+00 : f32
    %312 = vector.broadcast %cst_82 : f32 to vector<8x20xf32>
    %313 = arith.addf %312, %311 : vector<8x20xf32>
    %314 = arith.divf %312, %313 : vector<8x20xf32>
    %315 = vector.extract_strided_slice %274 {offsets = [8, 0], sizes = [8, 20], strides = [1, 1]} : vector<64x20xf32> to vector<8x20xf32>
    %316 = vector.extract_strided_slice %306 {offsets = [0, 128], sizes = [8, 20], strides = [1, 1]} : vector<8x384xf32> to vector<8x20xf32>
    %317 = arith.addf %315, %316 : vector<8x20xf32>
    %318 = arith.negf %317 : vector<8x20xf32>
    %319 = math.exp %318 : vector<8x20xf32>
    %cst_83 = arith.constant 1.000000e+00 : f32
    %320 = vector.broadcast %cst_83 : f32 to vector<8x20xf32>
    %321 = arith.addf %320, %319 : vector<8x20xf32>
    %322 = arith.divf %320, %321 : vector<8x20xf32>
    %323 = vector.extract_strided_slice %275 {offsets = [8, 0], sizes = [8, 20], strides = [1, 1]} : vector<64x20xf32> to vector<8x20xf32>
    %324 = vector.extract_strided_slice %306 {offsets = [0, 256], sizes = [8, 20], strides = [1, 1]} : vector<8x384xf32> to vector<8x20xf32>
    %325 = arith.addf %324, %269 : vector<8x20xf32>
    %326 = arith.mulf %314, %325 : vector<8x20xf32>
    %327 = arith.addf %323, %326 : vector<8x20xf32>
    %328 = math.tanh %327 : vector<8x20xf32>
    %cst_84 = arith.constant 1.000000e+00 : f32
    %329 = vector.broadcast %cst_84 : f32 to vector<8x20xf32>
    %330 = arith.subf %329, %322 : vector<8x20xf32>
    %331 = arith.mulf %330, %328 : vector<8x20xf32>
    %332 = arith.mulf %322, %304 : vector<8x20xf32>
    %333 = arith.addf %331, %332 : vector<8x20xf32>
    %c8_85 = arith.constant 8 : index
    %c0_86 = arith.constant 0 : index
    %334 = vector.load %arg4[%c8_85, %c0_86] : memref<64x128xf32, #tpu.memory_space<vmem>>, vector<8x20xf32>
    tpu.vector_store %arg4[%c8_85, %c0_86], %333 {strides = array<i32>} : memref<64x128xf32, #tpu.memory_space<vmem>>, vector<8x20xf32>,
    %cst_87 = arith.constant dense<0.000000e+00> : vector<8x384xf32>
    %335 = tpu.matmul %333, %265, %cst_87 {dimension_numbers = #tpu.dot_dimension_numbers<[1], [0], [0], [1], [0, 0, 1, 1], [], []>} : vector<8x20xf32>, vector<20x384xf32>, vector<8x384xf32> -> vector<8x384xf32>
    %336 = vector.extract_strided_slice %273 {offsets = [16, 0], sizes = [8, 20], strides = [1, 1]} : vector<64x20xf32> to vector<8x20xf32>
    %337 = vector.extract_strided_slice %335 {offsets = [0, 0], sizes = [8, 20], strides = [1, 1]} : vector<8x384xf32> to vector<8x20xf32>
    %338 = arith.addf %336, %337 : vector<8x20xf32>
    %339 = arith.negf %338 : vector<8x20xf32>
    %340 = math.exp %339 : vector<8x20xf32>
    %cst_88 = arith.constant 1.000000e+00 : f32
    %341 = vector.broadcast %cst_88 : f32 to vector<8x20xf32>
    %342 = arith.addf %341, %340 : vector<8x20xf32>
    %343 = arith.divf %341, %342 : vector<8x20xf32>
    %344 = vector.extract_strided_slice %274 {offsets = [16, 0], sizes = [8, 20], strides = [1, 1]} : vector<64x20xf32> to vector<8x20xf32>
    %345 = vector.extract_strided_slice %335 {offsets = [0, 128], sizes = [8, 20], strides = [1, 1]} : vector<8x384xf32> to vector<8x20xf32>
    %346 = arith.addf %344, %345 : vector<8x20xf32>
    %347 = arith.negf %346 : vector<8x20xf32>
    %348 = math.exp %347 : vector<8x20xf32>
    %cst_89 = arith.constant 1.000000e+00 : f32
    %349 = vector.broadcast %cst_89 : f32 to vector<8x20xf32>
    %350 = arith.addf %349, %348 : vector<8x20xf32>
    %351 = arith.divf %349, %350 : vector<8x20xf32>
    %352 = vector.extract_strided_slice %275 {offsets = [16, 0], sizes = [8, 20], strides = [1, 1]} : vector<64x20xf32> to vector<8x20xf32>
    %353 = vector.extract_strided_slice %335 {offsets = [0, 256], sizes = [8, 20], strides = [1, 1]} : vector<8x384xf32> to vector<8x20xf32>
    %354 = arith.addf %353, %269 : vector<8x20xf32>
    %355 = arith.mulf %343, %354 : vector<8x20xf32>
    %356 = arith.addf %352, %355 : vector<8x20xf32>
    %357 = math.tanh %356 : vector<8x20xf32>
    %cst_90 = arith.constant 1.000000e+00 : f32
    %358 = vector.broadcast %cst_90 : f32 to vector<8x20xf32>
    %359 = arith.subf %358, %351 : vector<8x20xf32>
    %360 = arith.mulf %359, %357 : vector<8x20xf32>
    %361 = arith.mulf %351, %333 : vector<8x20xf32>
    %362 = arith.addf %360, %361 : vector<8x20xf32>
    %c16_91 = arith.constant 16 : index
    %c0_92 = arith.constant 0 : index
    %363 = vector.load %arg4[%c16_91, %c0_92] : memref<64x128xf32, #tpu.memory_space<vmem>>, vector<8x20xf32>
    tpu.vector_store %arg4[%c16_91, %c0_92], %362 {strides = array<i32>} : memref<64x128xf32, #tpu.memory_space<vmem>>, vector<8x20xf32>,
    %cst_93 = arith.constant dense<0.000000e+00> : vector<8x384xf32>
    %364 = tpu.matmul %362, %265, %cst_93 {dimension_numbers = #tpu.dot_dimension_numbers<[1], [0], [0], [1], [0, 0, 1, 1], [], []>} : vector<8x20xf32>, vector<20x384xf32>, vector<8x384xf32> -> vector<8x384xf32>
    %365 = vector.extract_strided_slice %273 {offsets = [24, 0], sizes = [8, 20], strides = [1, 1]} : vector<64x20xf32> to vector<8x20xf32>
    %366 = vector.extract_strided_slice %364 {offsets = [0, 0], sizes = [8, 20], strides = [1, 1]} : vector<8x384xf32> to vector<8x20xf32>
    %367 = arith.addf %365, %366 : vector<8x20xf32>
    %368 = arith.negf %367 : vector<8x20xf32>
    %369 = math.exp %368 : vector<8x20xf32>
    %cst_94 = arith.constant 1.000000e+00 : f32
    %370 = vector.broadcast %cst_94 : f32 to vector<8x20xf32>
    %371 = arith.addf %370, %369 : vector<8x20xf32>
    %372 = arith.divf %370, %371 : vector<8x20xf32>
    %373 = vector.extract_strided_slice %274 {offsets = [24, 0], sizes = [8, 20], strides = [1, 1]} : vector<64x20xf32> to vector<8x20xf32>
    %374 = vector.extract_strided_slice %364 {offsets = [0, 128], sizes = [8, 20], strides = [1, 1]} : vector<8x384xf32> to vector<8x20xf32>
    %375 = arith.addf %373, %374 : vector<8x20xf32>
    %376 = arith.negf %375 : vector<8x20xf32>
    %377 = math.exp %376 : vector<8x20xf32>
    %cst_95 = arith.constant 1.000000e+00 : f32
    %378 = vector.broadcast %cst_95 : f32 to vector<8x20xf32>
    %379 = arith.addf %378, %377 : vector<8x20xf32>
    %380 = arith.divf %378, %379 : vector<8x20xf32>
    %381 = vector.extract_strided_slice %275 {offsets = [24, 0], sizes = [8, 20], strides = [1, 1]} : vector<64x20xf32> to vector<8x20xf32>
    %382 = vector.extract_strided_slice %364 {offsets = [0, 256], sizes = [8, 20], strides = [1, 1]} : vector<8x384xf32> to vector<8x20xf32>
    %383 = arith.addf %382, %269 : vector<8x20xf32>
    %384 = arith.mulf %372, %383 : vector<8x20xf32>
    %385 = arith.addf %381, %384 : vector<8x20xf32>
    %386 = math.tanh %385 : vector<8x20xf32>
    %cst_96 = arith.constant 1.000000e+00 : f32
    %387 = vector.broadcast %cst_96 : f32 to vector<8x20xf32>
    %388 = arith.subf %387, %380 : vector<8x20xf32>
    %389 = arith.mulf %388, %386 : vector<8x20xf32>
    %390 = arith.mulf %380, %362 : vector<8x20xf32>
    %391 = arith.addf %389, %390 : vector<8x20xf32>
    %c24_97 = arith.constant 24 : index
    %c0_98 = arith.constant 0 : index
    %392 = vector.load %arg4[%c24_97, %c0_98] : memref<64x128xf32, #tpu.memory_space<vmem>>, vector<8x20xf32>
    tpu.vector_store %arg4[%c24_97, %c0_98], %391 {strides = array<i32>} : memref<64x128xf32, #tpu.memory_space<vmem>>, vector<8x20xf32>,
    %cst_99 = arith.constant dense<0.000000e+00> : vector<8x384xf32>
    %393 = tpu.matmul %391, %265, %cst_99 {dimension_numbers = #tpu.dot_dimension_numbers<[1], [0], [0], [1], [0, 0, 1, 1], [], []>} : vector<8x20xf32>, vector<20x384xf32>, vector<8x384xf32> -> vector<8x384xf32>
    %394 = vector.extract_strided_slice %273 {offsets = [32, 0], sizes = [8, 20], strides = [1, 1]} : vector<64x20xf32> to vector<8x20xf32>
    %395 = vector.extract_strided_slice %393 {offsets = [0, 0], sizes = [8, 20], strides = [1, 1]} : vector<8x384xf32> to vector<8x20xf32>
    %396 = arith.addf %394, %395 : vector<8x20xf32>
    %397 = arith.negf %396 : vector<8x20xf32>
    %398 = math.exp %397 : vector<8x20xf32>
    %cst_100 = arith.constant 1.000000e+00 : f32
    %399 = vector.broadcast %cst_100 : f32 to vector<8x20xf32>
    %400 = arith.addf %399, %398 : vector<8x20xf32>
    %401 = arith.divf %399, %400 : vector<8x20xf32>
    %402 = vector.extract_strided_slice %274 {offsets = [32, 0], sizes = [8, 20], strides = [1, 1]} : vector<64x20xf32> to vector<8x20xf32>
    %403 = vector.extract_strided_slice %393 {offsets = [0, 128], sizes = [8, 20], strides = [1, 1]} : vector<8x384xf32> to vector<8x20xf32>
    %404 = arith.addf %402, %403 : vector<8x20xf32>
    %405 = arith.negf %404 : vector<8x20xf32>
    %406 = math.exp %405 : vector<8x20xf32>
    %cst_101 = arith.constant 1.000000e+00 : f32
    %407 = vector.broadcast %cst_101 : f32 to vector<8x20xf32>
    %408 = arith.addf %407, %406 : vector<8x20xf32>
    %409 = arith.divf %407, %408 : vector<8x20xf32>
    %410 = vector.extract_strided_slice %275 {offsets = [32, 0], sizes = [8, 20], strides = [1, 1]} : vector<64x20xf32> to vector<8x20xf32>
    %411 = vector.extract_strided_slice %393 {offsets = [0, 256], sizes = [8, 20], strides = [1, 1]} : vector<8x384xf32> to vector<8x20xf32>
    %412 = arith.addf %411, %269 : vector<8x20xf32>
    %413 = arith.mulf %401, %412 : vector<8x20xf32>
    %414 = arith.addf %410, %413 : vector<8x20xf32>
    %415 = math.tanh %414 : vector<8x20xf32>
    %cst_102 = arith.constant 1.000000e+00 : f32
    %416 = vector.broadcast %cst_102 : f32 to vector<8x20xf32>
    %417 = arith.subf %416, %409 : vector<8x20xf32>
    %418 = arith.mulf %417, %415 : vector<8x20xf32>
    %419 = arith.mulf %409, %391 : vector<8x20xf32>
    %420 = arith.addf %418, %419 : vector<8x20xf32>
    %c32_103 = arith.constant 32 : index
    %c0_104 = arith.constant 0 : index
    %421 = vector.load %arg4[%c32_103, %c0_104] : memref<64x128xf32, #tpu.memory_space<vmem>>, vector<8x20xf32>
    tpu.vector_store %arg4[%c32_103, %c0_104], %420 {strides = array<i32>} : memref<64x128xf32, #tpu.memory_space<vmem>>, vector<8x20xf32>,
    %cst_105 = arith.constant dense<0.000000e+00> : vector<8x384xf32>
    %422 = tpu.matmul %420, %265, %cst_105 {dimension_numbers = #tpu.dot_dimension_numbers<[1], [0], [0], [1], [0, 0, 1, 1], [], []>} : vector<8x20xf32>, vector<20x384xf32>, vector<8x384xf32> -> vector<8x384xf32>
    %423 = vector.extract_strided_slice %273 {offsets = [40, 0], sizes = [8, 20], strides = [1, 1]} : vector<64x20xf32> to vector<8x20xf32>
    %424 = vector.extract_strided_slice %422 {offsets = [0, 0], sizes = [8, 20], strides = [1, 1]} : vector<8x384xf32> to vector<8x20xf32>
    %425 = arith.addf %423, %424 : vector<8x20xf32>
    %426 = arith.negf %425 : vector<8x20xf32>
    %427 = math.exp %426 : vector<8x20xf32>
    %cst_106 = arith.constant 1.000000e+00 : f32
    %428 = vector.broadcast %cst_106 : f32 to vector<8x20xf32>
    %429 = arith.addf %428, %427 : vector<8x20xf32>
    %430 = arith.divf %428, %429 : vector<8x20xf32>
    %431 = vector.extract_strided_slice %274 {offsets = [40, 0], sizes = [8, 20], strides = [1, 1]} : vector<64x20xf32> to vector<8x20xf32>
    %432 = vector.extract_strided_slice %422 {offsets = [0, 128], sizes = [8, 20], strides = [1, 1]} : vector<8x384xf32> to vector<8x20xf32>
    %433 = arith.addf %431, %432 : vector<8x20xf32>
    %434 = arith.negf %433 : vector<8x20xf32>
    %435 = math.exp %434 : vector<8x20xf32>
    %cst_107 = arith.constant 1.000000e+00 : f32
    %436 = vector.broadcast %cst_107 : f32 to vector<8x20xf32>
    %437 = arith.addf %436, %435 : vector<8x20xf32>
    %438 = arith.divf %436, %437 : vector<8x20xf32>
    %439 = vector.extract_strided_slice %275 {offsets = [40, 0], sizes = [8, 20], strides = [1, 1]} : vector<64x20xf32> to vector<8x20xf32>
    %440 = vector.extract_strided_slice %422 {offsets = [0, 256], sizes = [8, 20], strides = [1, 1]} : vector<8x384xf32> to vector<8x20xf32>
    %441 = arith.addf %440, %269 : vector<8x20xf32>
    %442 = arith.mulf %430, %441 : vector<8x20xf32>
    %443 = arith.addf %439, %442 : vector<8x20xf32>
    %444 = math.tanh %443 : vector<8x20xf32>
    %cst_108 = arith.constant 1.000000e+00 : f32
    %445 = vector.broadcast %cst_108 : f32 to vector<8x20xf32>
    %446 = arith.subf %445, %438 : vector<8x20xf32>
    %447 = arith.mulf %446, %444 : vector<8x20xf32>
    %448 = arith.mulf %438, %420 : vector<8x20xf32>
    %449 = arith.addf %447, %448 : vector<8x20xf32>
    %c40_109 = arith.constant 40 : index
    %c0_110 = arith.constant 0 : index
    %450 = vector.load %arg4[%c40_109, %c0_110] : memref<64x128xf32, #tpu.memory_space<vmem>>, vector<8x20xf32>
    tpu.vector_store %arg4[%c40_109, %c0_110], %449 {strides = array<i32>} : memref<64x128xf32, #tpu.memory_space<vmem>>, vector<8x20xf32>,
    %cst_111 = arith.constant dense<0.000000e+00> : vector<8x384xf32>
    %451 = tpu.matmul %449, %265, %cst_111 {dimension_numbers = #tpu.dot_dimension_numbers<[1], [0], [0], [1], [0, 0, 1, 1], [], []>} : vector<8x20xf32>, vector<20x384xf32>, vector<8x384xf32> -> vector<8x384xf32>
    %452 = vector.extract_strided_slice %273 {offsets = [48, 0], sizes = [8, 20], strides = [1, 1]} : vector<64x20xf32> to vector<8x20xf32>
    %453 = vector.extract_strided_slice %451 {offsets = [0, 0], sizes = [8, 20], strides = [1, 1]} : vector<8x384xf32> to vector<8x20xf32>
    %454 = arith.addf %452, %453 : vector<8x20xf32>
    %455 = arith.negf %454 : vector<8x20xf32>
    %456 = math.exp %455 : vector<8x20xf32>
    %cst_112 = arith.constant 1.000000e+00 : f32
    %457 = vector.broadcast %cst_112 : f32 to vector<8x20xf32>
    %458 = arith.addf %457, %456 : vector<8x20xf32>
    %459 = arith.divf %457, %458 : vector<8x20xf32>
    %460 = vector.extract_strided_slice %274 {offsets = [48, 0], sizes = [8, 20], strides = [1, 1]} : vector<64x20xf32> to vector<8x20xf32>
    %461 = vector.extract_strided_slice %451 {offsets = [0, 128], sizes = [8, 20], strides = [1, 1]} : vector<8x384xf32> to vector<8x20xf32>
    %462 = arith.addf %460, %461 : vector<8x20xf32>
    %463 = arith.negf %462 : vector<8x20xf32>
    %464 = math.exp %463 : vector<8x20xf32>
    %cst_113 = arith.constant 1.000000e+00 : f32
    %465 = vector.broadcast %cst_113 : f32 to vector<8x20xf32>
    %466 = arith.addf %465, %464 : vector<8x20xf32>
    %467 = arith.divf %465, %466 : vector<8x20xf32>
    %468 = vector.extract_strided_slice %275 {offsets = [48, 0], sizes = [8, 20], strides = [1, 1]} : vector<64x20xf32> to vector<8x20xf32>
    %469 = vector.extract_strided_slice %451 {offsets = [0, 256], sizes = [8, 20], strides = [1, 1]} : vector<8x384xf32> to vector<8x20xf32>
    %470 = arith.addf %469, %269 : vector<8x20xf32>
    %471 = arith.mulf %459, %470 : vector<8x20xf32>
    %472 = arith.addf %468, %471 : vector<8x20xf32>
    %473 = math.tanh %472 : vector<8x20xf32>
    %cst_114 = arith.constant 1.000000e+00 : f32
    %474 = vector.broadcast %cst_114 : f32 to vector<8x20xf32>
    %475 = arith.subf %474, %467 : vector<8x20xf32>
    %476 = arith.mulf %475, %473 : vector<8x20xf32>
    %477 = arith.mulf %467, %449 : vector<8x20xf32>
    %478 = arith.addf %476, %477 : vector<8x20xf32>
    %c48_115 = arith.constant 48 : index
    %c0_116 = arith.constant 0 : index
    %479 = vector.load %arg4[%c48_115, %c0_116] : memref<64x128xf32, #tpu.memory_space<vmem>>, vector<8x20xf32>
    tpu.vector_store %arg4[%c48_115, %c0_116], %478 {strides = array<i32>} : memref<64x128xf32, #tpu.memory_space<vmem>>, vector<8x20xf32>,
    %cst_117 = arith.constant dense<0.000000e+00> : vector<8x384xf32>
    %480 = tpu.matmul %478, %265, %cst_117 {dimension_numbers = #tpu.dot_dimension_numbers<[1], [0], [0], [1], [0, 0, 1, 1], [], []>} : vector<8x20xf32>, vector<20x384xf32>, vector<8x384xf32> -> vector<8x384xf32>
    %481 = vector.extract_strided_slice %273 {offsets = [56, 0], sizes = [8, 20], strides = [1, 1]} : vector<64x20xf32> to vector<8x20xf32>
    %482 = vector.extract_strided_slice %480 {offsets = [0, 0], sizes = [8, 20], strides = [1, 1]} : vector<8x384xf32> to vector<8x20xf32>
    %483 = arith.addf %481, %482 : vector<8x20xf32>
    %484 = arith.negf %483 : vector<8x20xf32>
    %485 = math.exp %484 : vector<8x20xf32>
    %cst_118 = arith.constant 1.000000e+00 : f32
    %486 = vector.broadcast %cst_118 : f32 to vector<8x20xf32>
    %487 = arith.addf %486, %485 : vector<8x20xf32>
    %488 = arith.divf %486, %487 : vector<8x20xf32>
    %489 = vector.extract_strided_slice %274 {offsets = [56, 0], sizes = [8, 20], strides = [1, 1]} : vector<64x20xf32> to vector<8x20xf32>
    %490 = vector.extract_strided_slice %480 {offsets = [0, 128], sizes = [8, 20], strides = [1, 1]} : vector<8x384xf32> to vector<8x20xf32>
    %491 = arith.addf %489, %490 : vector<8x20xf32>
    %492 = arith.negf %491 : vector<8x20xf32>
    %493 = math.exp %492 : vector<8x20xf32>
    %cst_119 = arith.constant 1.000000e+00 : f32
    %494 = vector.broadcast %cst_119 : f32 to vector<8x20xf32>
    %495 = arith.addf %494, %493 : vector<8x20xf32>
    %496 = arith.divf %494, %495 : vector<8x20xf32>
    %497 = vector.extract_strided_slice %275 {offsets = [56, 0], sizes = [8, 20], strides = [1, 1]} : vector<64x20xf32> to vector<8x20xf32>
    %498 = vector.extract_strided_slice %480 {offsets = [0, 256], sizes = [8, 20], strides = [1, 1]} : vector<8x384xf32> to vector<8x20xf32>
    %499 = arith.addf %498, %269 : vector<8x20xf32>
    %500 = arith.mulf %488, %499 : vector<8x20xf32>
    %501 = arith.addf %497, %500 : vector<8x20xf32>
    %502 = math.tanh %501 : vector<8x20xf32>
    %cst_120 = arith.constant 1.000000e+00 : f32
    %503 = vector.broadcast %cst_120 : f32 to vector<8x20xf32>
    %504 = arith.subf %503, %496 : vector<8x20xf32>
    %505 = arith.mulf %504, %502 : vector<8x20xf32>
    %506 = arith.mulf %496, %478 : vector<8x20xf32>
    %507 = arith.addf %505, %506 : vector<8x20xf32>
    %c56_121 = arith.constant 56 : index
    %c0_122 = arith.constant 0 : index
    %508 = vector.load %arg4[%c56_121, %c0_122] : memref<64x128xf32, #tpu.memory_space<vmem>>, vector<8x20xf32>
    tpu.vector_store %arg4[%c56_121, %c0_122], %507 {strides = array<i32>} : memref<64x128xf32, #tpu.memory_space<vmem>>, vector<8x20xf32>,
    %c0_123 = arith.constant 0 : index
    %c0_124 = arith.constant 0 : index
    %509 = vector.load %arg4[%c0_123, %c0_124] : memref<64x128xf32, #tpu.memory_space<vmem>>, vector<64x20xf32>
    %c80 = arith.constant 80 : index
    %c0_125 = arith.constant 0 : index
    %510 = vector.load %arg1[%c80, %c0_125] : memref<176x384xf32, #tpu.memory_space<vmem>>, vector<20x384xf32>
    %c104 = arith.constant 104 : index
    %c0_126 = arith.constant 0 : index
    %511 = vector.load %arg1[%c104, %c0_126] : memref<176x384xf32, #tpu.memory_space<vmem>>, vector<10x384xf32>
    %c156 = arith.constant 156 : index
    %c0_127 = arith.constant 0 : index
    %512 = vector.load %arg1[%c156, %c0_127] : memref<176x384xf32, #tpu.memory_space<vmem>>, vector<1x384xf32>
    %c157 = arith.constant 157 : index
    %c0_128 = arith.constant 0 : index
    %513 = vector.load %arg1[%c157, %c0_128] : memref<176x384xf32, #tpu.memory_space<vmem>>, vector<1x10xf32>
    %514 = vector.shape_cast %513 : vector<1x10xf32> to vector<1x10xf32>
    %515 = vector.broadcast %514 : vector<1x10xf32> to vector<8x10xf32>
    %cst_129 = arith.constant dense<0.000000e+00> : vector<64x384xf32>
    %516 = tpu.matmul %509, %510, %cst_129 {dimension_numbers = #tpu.dot_dimension_numbers<[1], [0], [0], [1], [0, 0, 1, 1], [], []>} : vector<64x20xf32>, vector<20x384xf32>, vector<64x384xf32> -> vector<64x384xf32>
    %517 = vector.broadcast %512 : vector<1x384xf32> to vector<64x384xf32>
    %518 = arith.addf %516, %517 : vector<64x384xf32>
    %519 = vector.extract_strided_slice %518 {offsets = [0, 0], sizes = [64, 10], strides = [1, 1]} : vector<64x384xf32> to vector<64x10xf32>
    %520 = vector.extract_strided_slice %518 {offsets = [0, 128], sizes = [64, 10], strides = [1, 1]} : vector<64x384xf32> to vector<64x10xf32>
    %521 = vector.extract_strided_slice %518 {offsets = [0, 256], sizes = [64, 10], strides = [1, 1]} : vector<64x384xf32> to vector<64x10xf32>
    %cst_130 = arith.constant 0.000000e+00 : f32
    %522 = vector.broadcast %cst_130 : f32 to vector<8x10xf32>
    %cst_131 = arith.constant dense<0.000000e+00> : vector<8x384xf32>
    %523 = tpu.matmul %522, %511, %cst_131 {dimension_numbers = #tpu.dot_dimension_numbers<[1], [0], [0], [1], [0, 0, 1, 1], [], []>} : vector<8x10xf32>, vector<10x384xf32>, vector<8x384xf32> -> vector<8x384xf32>
    %524 = vector.extract_strided_slice %519 {offsets = [0, 0], sizes = [8, 10], strides = [1, 1]} : vector<64x10xf32> to vector<8x10xf32>
    %525 = vector.extract_strided_slice %523 {offsets = [0, 0], sizes = [8, 10], strides = [1, 1]} : vector<8x384xf32> to vector<8x10xf32>
    %526 = arith.addf %524, %525 : vector<8x10xf32>
    %527 = arith.negf %526 : vector<8x10xf32>
    %528 = math.exp %527 : vector<8x10xf32>
    %cst_132 = arith.constant 1.000000e+00 : f32
    %529 = vector.broadcast %cst_132 : f32 to vector<8x10xf32>
    %530 = arith.addf %529, %528 : vector<8x10xf32>
    %531 = arith.divf %529, %530 : vector<8x10xf32>
    %532 = vector.extract_strided_slice %520 {offsets = [0, 0], sizes = [8, 10], strides = [1, 1]} : vector<64x10xf32> to vector<8x10xf32>
    %533 = vector.extract_strided_slice %523 {offsets = [0, 128], sizes = [8, 10], strides = [1, 1]} : vector<8x384xf32> to vector<8x10xf32>
    %534 = arith.addf %532, %533 : vector<8x10xf32>
    %535 = arith.negf %534 : vector<8x10xf32>
    %536 = math.exp %535 : vector<8x10xf32>
    %cst_133 = arith.constant 1.000000e+00 : f32
    %537 = vector.broadcast %cst_133 : f32 to vector<8x10xf32>
    %538 = arith.addf %537, %536 : vector<8x10xf32>
    %539 = arith.divf %537, %538 : vector<8x10xf32>
    %540 = vector.extract_strided_slice %521 {offsets = [0, 0], sizes = [8, 10], strides = [1, 1]} : vector<64x10xf32> to vector<8x10xf32>
    %541 = vector.extract_strided_slice %523 {offsets = [0, 256], sizes = [8, 10], strides = [1, 1]} : vector<8x384xf32> to vector<8x10xf32>
    %542 = arith.addf %541, %515 : vector<8x10xf32>
    %543 = arith.mulf %531, %542 : vector<8x10xf32>
    %544 = arith.addf %540, %543 : vector<8x10xf32>
    %545 = math.tanh %544 : vector<8x10xf32>
    %cst_134 = arith.constant 1.000000e+00 : f32
    %546 = vector.broadcast %cst_134 : f32 to vector<8x10xf32>
    %547 = arith.subf %546, %539 : vector<8x10xf32>
    %548 = arith.mulf %547, %545 : vector<8x10xf32>
    %549 = arith.mulf %539, %522 : vector<8x10xf32>
    %550 = arith.addf %548, %549 : vector<8x10xf32>
    %c0_135 = arith.constant 0 : index
    %c0_136 = arith.constant 0 : index
    %551 = vector.load %arg3[%c0_135, %c0_136] : memref<64x128xf32, #tpu.memory_space<vmem>>, vector<8x10xf32>
    tpu.vector_store %arg3[%c0_135, %c0_136], %550 {strides = array<i32>} : memref<64x128xf32, #tpu.memory_space<vmem>>, vector<8x10xf32>,
    %cst_137 = arith.constant dense<0.000000e+00> : vector<8x384xf32>
    %552 = tpu.matmul %550, %511, %cst_137 {dimension_numbers = #tpu.dot_dimension_numbers<[1], [0], [0], [1], [0, 0, 1, 1], [], []>} : vector<8x10xf32>, vector<10x384xf32>, vector<8x384xf32> -> vector<8x384xf32>
    %553 = vector.extract_strided_slice %519 {offsets = [8, 0], sizes = [8, 10], strides = [1, 1]} : vector<64x10xf32> to vector<8x10xf32>
    %554 = vector.extract_strided_slice %552 {offsets = [0, 0], sizes = [8, 10], strides = [1, 1]} : vector<8x384xf32> to vector<8x10xf32>
    %555 = arith.addf %553, %554 : vector<8x10xf32>
    %556 = arith.negf %555 : vector<8x10xf32>
    %557 = math.exp %556 : vector<8x10xf32>
    %cst_138 = arith.constant 1.000000e+00 : f32
    %558 = vector.broadcast %cst_138 : f32 to vector<8x10xf32>
    %559 = arith.addf %558, %557 : vector<8x10xf32>
    %560 = arith.divf %558, %559 : vector<8x10xf32>
    %561 = vector.extract_strided_slice %520 {offsets = [8, 0], sizes = [8, 10], strides = [1, 1]} : vector<64x10xf32> to vector<8x10xf32>
    %562 = vector.extract_strided_slice %552 {offsets = [0, 128], sizes = [8, 10], strides = [1, 1]} : vector<8x384xf32> to vector<8x10xf32>
    %563 = arith.addf %561, %562 : vector<8x10xf32>
    %564 = arith.negf %563 : vector<8x10xf32>
    %565 = math.exp %564 : vector<8x10xf32>
    %cst_139 = arith.constant 1.000000e+00 : f32
    %566 = vector.broadcast %cst_139 : f32 to vector<8x10xf32>
    %567 = arith.addf %566, %565 : vector<8x10xf32>
    %568 = arith.divf %566, %567 : vector<8x10xf32>
    %569 = vector.extract_strided_slice %521 {offsets = [8, 0], sizes = [8, 10], strides = [1, 1]} : vector<64x10xf32> to vector<8x10xf32>
    %570 = vector.extract_strided_slice %552 {offsets = [0, 256], sizes = [8, 10], strides = [1, 1]} : vector<8x384xf32> to vector<8x10xf32>
    %571 = arith.addf %570, %515 : vector<8x10xf32>
    %572 = arith.mulf %560, %571 : vector<8x10xf32>
    %573 = arith.addf %569, %572 : vector<8x10xf32>
    %574 = math.tanh %573 : vector<8x10xf32>
    %cst_140 = arith.constant 1.000000e+00 : f32
    %575 = vector.broadcast %cst_140 : f32 to vector<8x10xf32>
    %576 = arith.subf %575, %568 : vector<8x10xf32>
    %577 = arith.mulf %576, %574 : vector<8x10xf32>
    %578 = arith.mulf %568, %550 : vector<8x10xf32>
    %579 = arith.addf %577, %578 : vector<8x10xf32>
    %c8_141 = arith.constant 8 : index
    %c0_142 = arith.constant 0 : index
    %580 = vector.load %arg3[%c8_141, %c0_142] : memref<64x128xf32, #tpu.memory_space<vmem>>, vector<8x10xf32>
    tpu.vector_store %arg3[%c8_141, %c0_142], %579 {strides = array<i32>} : memref<64x128xf32, #tpu.memory_space<vmem>>, vector<8x10xf32>,
    %cst_143 = arith.constant dense<0.000000e+00> : vector<8x384xf32>
    %581 = tpu.matmul %579, %511, %cst_143 {dimension_numbers = #tpu.dot_dimension_numbers<[1], [0], [0], [1], [0, 0, 1, 1], [], []>} : vector<8x10xf32>, vector<10x384xf32>, vector<8x384xf32> -> vector<8x384xf32>
    %582 = vector.extract_strided_slice %519 {offsets = [16, 0], sizes = [8, 10], strides = [1, 1]} : vector<64x10xf32> to vector<8x10xf32>
    %583 = vector.extract_strided_slice %581 {offsets = [0, 0], sizes = [8, 10], strides = [1, 1]} : vector<8x384xf32> to vector<8x10xf32>
    %584 = arith.addf %582, %583 : vector<8x10xf32>
    %585 = arith.negf %584 : vector<8x10xf32>
    %586 = math.exp %585 : vector<8x10xf32>
    %cst_144 = arith.constant 1.000000e+00 : f32
    %587 = vector.broadcast %cst_144 : f32 to vector<8x10xf32>
    %588 = arith.addf %587, %586 : vector<8x10xf32>
    %589 = arith.divf %587, %588 : vector<8x10xf32>
    %590 = vector.extract_strided_slice %520 {offsets = [16, 0], sizes = [8, 10], strides = [1, 1]} : vector<64x10xf32> to vector<8x10xf32>
    %591 = vector.extract_strided_slice %581 {offsets = [0, 128], sizes = [8, 10], strides = [1, 1]} : vector<8x384xf32> to vector<8x10xf32>
    %592 = arith.addf %590, %591 : vector<8x10xf32>
    %593 = arith.negf %592 : vector<8x10xf32>
    %594 = math.exp %593 : vector<8x10xf32>
    %cst_145 = arith.constant 1.000000e+00 : f32
    %595 = vector.broadcast %cst_145 : f32 to vector<8x10xf32>
    %596 = arith.addf %595, %594 : vector<8x10xf32>
    %597 = arith.divf %595, %596 : vector<8x10xf32>
    %598 = vector.extract_strided_slice %521 {offsets = [16, 0], sizes = [8, 10], strides = [1, 1]} : vector<64x10xf32> to vector<8x10xf32>
    %599 = vector.extract_strided_slice %581 {offsets = [0, 256], sizes = [8, 10], strides = [1, 1]} : vector<8x384xf32> to vector<8x10xf32>
    %600 = arith.addf %599, %515 : vector<8x10xf32>
    %601 = arith.mulf %589, %600 : vector<8x10xf32>
    %602 = arith.addf %598, %601 : vector<8x10xf32>
    %603 = math.tanh %602 : vector<8x10xf32>
    %cst_146 = arith.constant 1.000000e+00 : f32
    %604 = vector.broadcast %cst_146 : f32 to vector<8x10xf32>
    %605 = arith.subf %604, %597 : vector<8x10xf32>
    %606 = arith.mulf %605, %603 : vector<8x10xf32>
    %607 = arith.mulf %597, %579 : vector<8x10xf32>
    %608 = arith.addf %606, %607 : vector<8x10xf32>
    %c16_147 = arith.constant 16 : index
    %c0_148 = arith.constant 0 : index
    %609 = vector.load %arg3[%c16_147, %c0_148] : memref<64x128xf32, #tpu.memory_space<vmem>>, vector<8x10xf32>
    tpu.vector_store %arg3[%c16_147, %c0_148], %608 {strides = array<i32>} : memref<64x128xf32, #tpu.memory_space<vmem>>, vector<8x10xf32>,
    %cst_149 = arith.constant dense<0.000000e+00> : vector<8x384xf32>
    %610 = tpu.matmul %608, %511, %cst_149 {dimension_numbers = #tpu.dot_dimension_numbers<[1], [0], [0], [1], [0, 0, 1, 1], [], []>} : vector<8x10xf32>, vector<10x384xf32>, vector<8x384xf32> -> vector<8x384xf32>
    %611 = vector.extract_strided_slice %519 {offsets = [24, 0], sizes = [8, 10], strides = [1, 1]} : vector<64x10xf32> to vector<8x10xf32>
    %612 = vector.extract_strided_slice %610 {offsets = [0, 0], sizes = [8, 10], strides = [1, 1]} : vector<8x384xf32> to vector<8x10xf32>
    %613 = arith.addf %611, %612 : vector<8x10xf32>
    %614 = arith.negf %613 : vector<8x10xf32>
    %615 = math.exp %614 : vector<8x10xf32>
    %cst_150 = arith.constant 1.000000e+00 : f32
    %616 = vector.broadcast %cst_150 : f32 to vector<8x10xf32>
    %617 = arith.addf %616, %615 : vector<8x10xf32>
    %618 = arith.divf %616, %617 : vector<8x10xf32>
    %619 = vector.extract_strided_slice %520 {offsets = [24, 0], sizes = [8, 10], strides = [1, 1]} : vector<64x10xf32> to vector<8x10xf32>
    %620 = vector.extract_strided_slice %610 {offsets = [0, 128], sizes = [8, 10], strides = [1, 1]} : vector<8x384xf32> to vector<8x10xf32>
    %621 = arith.addf %619, %620 : vector<8x10xf32>
    %622 = arith.negf %621 : vector<8x10xf32>
    %623 = math.exp %622 : vector<8x10xf32>
    %cst_151 = arith.constant 1.000000e+00 : f32
    %624 = vector.broadcast %cst_151 : f32 to vector<8x10xf32>
    %625 = arith.addf %624, %623 : vector<8x10xf32>
    %626 = arith.divf %624, %625 : vector<8x10xf32>
    %627 = vector.extract_strided_slice %521 {offsets = [24, 0], sizes = [8, 10], strides = [1, 1]} : vector<64x10xf32> to vector<8x10xf32>
    %628 = vector.extract_strided_slice %610 {offsets = [0, 256], sizes = [8, 10], strides = [1, 1]} : vector<8x384xf32> to vector<8x10xf32>
    %629 = arith.addf %628, %515 : vector<8x10xf32>
    %630 = arith.mulf %618, %629 : vector<8x10xf32>
    %631 = arith.addf %627, %630 : vector<8x10xf32>
    %632 = math.tanh %631 : vector<8x10xf32>
    %cst_152 = arith.constant 1.000000e+00 : f32
    %633 = vector.broadcast %cst_152 : f32 to vector<8x10xf32>
    %634 = arith.subf %633, %626 : vector<8x10xf32>
    %635 = arith.mulf %634, %632 : vector<8x10xf32>
    %636 = arith.mulf %626, %608 : vector<8x10xf32>
    %637 = arith.addf %635, %636 : vector<8x10xf32>
    %c24_153 = arith.constant 24 : index
    %c0_154 = arith.constant 0 : index
    %638 = vector.load %arg3[%c24_153, %c0_154] : memref<64x128xf32, #tpu.memory_space<vmem>>, vector<8x10xf32>
    tpu.vector_store %arg3[%c24_153, %c0_154], %637 {strides = array<i32>} : memref<64x128xf32, #tpu.memory_space<vmem>>, vector<8x10xf32>,
    %cst_155 = arith.constant dense<0.000000e+00> : vector<8x384xf32>
    %639 = tpu.matmul %637, %511, %cst_155 {dimension_numbers = #tpu.dot_dimension_numbers<[1], [0], [0], [1], [0, 0, 1, 1], [], []>} : vector<8x10xf32>, vector<10x384xf32>, vector<8x384xf32> -> vector<8x384xf32>
    %640 = vector.extract_strided_slice %519 {offsets = [32, 0], sizes = [8, 10], strides = [1, 1]} : vector<64x10xf32> to vector<8x10xf32>
    %641 = vector.extract_strided_slice %639 {offsets = [0, 0], sizes = [8, 10], strides = [1, 1]} : vector<8x384xf32> to vector<8x10xf32>
    %642 = arith.addf %640, %641 : vector<8x10xf32>
    %643 = arith.negf %642 : vector<8x10xf32>
    %644 = math.exp %643 : vector<8x10xf32>
    %cst_156 = arith.constant 1.000000e+00 : f32
    %645 = vector.broadcast %cst_156 : f32 to vector<8x10xf32>
    %646 = arith.addf %645, %644 : vector<8x10xf32>
    %647 = arith.divf %645, %646 : vector<8x10xf32>
    %648 = vector.extract_strided_slice %520 {offsets = [32, 0], sizes = [8, 10], strides = [1, 1]} : vector<64x10xf32> to vector<8x10xf32>
    %649 = vector.extract_strided_slice %639 {offsets = [0, 128], sizes = [8, 10], strides = [1, 1]} : vector<8x384xf32> to vector<8x10xf32>
    %650 = arith.addf %648, %649 : vector<8x10xf32>
    %651 = arith.negf %650 : vector<8x10xf32>
    %652 = math.exp %651 : vector<8x10xf32>
    %cst_157 = arith.constant 1.000000e+00 : f32
    %653 = vector.broadcast %cst_157 : f32 to vector<8x10xf32>
    %654 = arith.addf %653, %652 : vector<8x10xf32>
    %655 = arith.divf %653, %654 : vector<8x10xf32>
    %656 = vector.extract_strided_slice %521 {offsets = [32, 0], sizes = [8, 10], strides = [1, 1]} : vector<64x10xf32> to vector<8x10xf32>
    %657 = vector.extract_strided_slice %639 {offsets = [0, 256], sizes = [8, 10], strides = [1, 1]} : vector<8x384xf32> to vector<8x10xf32>
    %658 = arith.addf %657, %515 : vector<8x10xf32>
    %659 = arith.mulf %647, %658 : vector<8x10xf32>
    %660 = arith.addf %656, %659 : vector<8x10xf32>
    %661 = math.tanh %660 : vector<8x10xf32>
    %cst_158 = arith.constant 1.000000e+00 : f32
    %662 = vector.broadcast %cst_158 : f32 to vector<8x10xf32>
    %663 = arith.subf %662, %655 : vector<8x10xf32>
    %664 = arith.mulf %663, %661 : vector<8x10xf32>
    %665 = arith.mulf %655, %637 : vector<8x10xf32>
    %666 = arith.addf %664, %665 : vector<8x10xf32>
    %c32_159 = arith.constant 32 : index
    %c0_160 = arith.constant 0 : index
    %667 = vector.load %arg3[%c32_159, %c0_160] : memref<64x128xf32, #tpu.memory_space<vmem>>, vector<8x10xf32>
    tpu.vector_store %arg3[%c32_159, %c0_160], %666 {strides = array<i32>} : memref<64x128xf32, #tpu.memory_space<vmem>>, vector<8x10xf32>,
    %cst_161 = arith.constant dense<0.000000e+00> : vector<8x384xf32>
    %668 = tpu.matmul %666, %511, %cst_161 {dimension_numbers = #tpu.dot_dimension_numbers<[1], [0], [0], [1], [0, 0, 1, 1], [], []>} : vector<8x10xf32>, vector<10x384xf32>, vector<8x384xf32> -> vector<8x384xf32>
    %669 = vector.extract_strided_slice %519 {offsets = [40, 0], sizes = [8, 10], strides = [1, 1]} : vector<64x10xf32> to vector<8x10xf32>
    %670 = vector.extract_strided_slice %668 {offsets = [0, 0], sizes = [8, 10], strides = [1, 1]} : vector<8x384xf32> to vector<8x10xf32>
    %671 = arith.addf %669, %670 : vector<8x10xf32>
    %672 = arith.negf %671 : vector<8x10xf32>
    %673 = math.exp %672 : vector<8x10xf32>
    %cst_162 = arith.constant 1.000000e+00 : f32
    %674 = vector.broadcast %cst_162 : f32 to vector<8x10xf32>
    %675 = arith.addf %674, %673 : vector<8x10xf32>
    %676 = arith.divf %674, %675 : vector<8x10xf32>
    %677 = vector.extract_strided_slice %520 {offsets = [40, 0], sizes = [8, 10], strides = [1, 1]} : vector<64x10xf32> to vector<8x10xf32>
    %678 = vector.extract_strided_slice %668 {offsets = [0, 128], sizes = [8, 10], strides = [1, 1]} : vector<8x384xf32> to vector<8x10xf32>
    %679 = arith.addf %677, %678 : vector<8x10xf32>
    %680 = arith.negf %679 : vector<8x10xf32>
    %681 = math.exp %680 : vector<8x10xf32>
    %cst_163 = arith.constant 1.000000e+00 : f32
    %682 = vector.broadcast %cst_163 : f32 to vector<8x10xf32>
    %683 = arith.addf %682, %681 : vector<8x10xf32>
    %684 = arith.divf %682, %683 : vector<8x10xf32>
    %685 = vector.extract_strided_slice %521 {offsets = [40, 0], sizes = [8, 10], strides = [1, 1]} : vector<64x10xf32> to vector<8x10xf32>
    %686 = vector.extract_strided_slice %668 {offsets = [0, 256], sizes = [8, 10], strides = [1, 1]} : vector<8x384xf32> to vector<8x10xf32>
    %687 = arith.addf %686, %515 : vector<8x10xf32>
    %688 = arith.mulf %676, %687 : vector<8x10xf32>
    %689 = arith.addf %685, %688 : vector<8x10xf32>
    %690 = math.tanh %689 : vector<8x10xf32>
    %cst_164 = arith.constant 1.000000e+00 : f32
    %691 = vector.broadcast %cst_164 : f32 to vector<8x10xf32>
    %692 = arith.subf %691, %684 : vector<8x10xf32>
    %693 = arith.mulf %692, %690 : vector<8x10xf32>
    %694 = arith.mulf %684, %666 : vector<8x10xf32>
    %695 = arith.addf %693, %694 : vector<8x10xf32>
    %c40_165 = arith.constant 40 : index
    %c0_166 = arith.constant 0 : index
    %696 = vector.load %arg3[%c40_165, %c0_166] : memref<64x128xf32, #tpu.memory_space<vmem>>, vector<8x10xf32>
    tpu.vector_store %arg3[%c40_165, %c0_166], %695 {strides = array<i32>} : memref<64x128xf32, #tpu.memory_space<vmem>>, vector<8x10xf32>,
    %cst_167 = arith.constant dense<0.000000e+00> : vector<8x384xf32>
    %697 = tpu.matmul %695, %511, %cst_167 {dimension_numbers = #tpu.dot_dimension_numbers<[1], [0], [0], [1], [0, 0, 1, 1], [], []>} : vector<8x10xf32>, vector<10x384xf32>, vector<8x384xf32> -> vector<8x384xf32>
    %698 = vector.extract_strided_slice %519 {offsets = [48, 0], sizes = [8, 10], strides = [1, 1]} : vector<64x10xf32> to vector<8x10xf32>
    %699 = vector.extract_strided_slice %697 {offsets = [0, 0], sizes = [8, 10], strides = [1, 1]} : vector<8x384xf32> to vector<8x10xf32>
    %700 = arith.addf %698, %699 : vector<8x10xf32>
    %701 = arith.negf %700 : vector<8x10xf32>
    %702 = math.exp %701 : vector<8x10xf32>
    %cst_168 = arith.constant 1.000000e+00 : f32
    %703 = vector.broadcast %cst_168 : f32 to vector<8x10xf32>
    %704 = arith.addf %703, %702 : vector<8x10xf32>
    %705 = arith.divf %703, %704 : vector<8x10xf32>
    %706 = vector.extract_strided_slice %520 {offsets = [48, 0], sizes = [8, 10], strides = [1, 1]} : vector<64x10xf32> to vector<8x10xf32>
    %707 = vector.extract_strided_slice %697 {offsets = [0, 128], sizes = [8, 10], strides = [1, 1]} : vector<8x384xf32> to vector<8x10xf32>
    %708 = arith.addf %706, %707 : vector<8x10xf32>
    %709 = arith.negf %708 : vector<8x10xf32>
    %710 = math.exp %709 : vector<8x10xf32>
    %cst_169 = arith.constant 1.000000e+00 : f32
    %711 = vector.broadcast %cst_169 : f32 to vector<8x10xf32>
    %712 = arith.addf %711, %710 : vector<8x10xf32>
    %713 = arith.divf %711, %712 : vector<8x10xf32>
    %714 = vector.extract_strided_slice %521 {offsets = [48, 0], sizes = [8, 10], strides = [1, 1]} : vector<64x10xf32> to vector<8x10xf32>
    %715 = vector.extract_strided_slice %697 {offsets = [0, 256], sizes = [8, 10], strides = [1, 1]} : vector<8x384xf32> to vector<8x10xf32>
    %716 = arith.addf %715, %515 : vector<8x10xf32>
    %717 = arith.mulf %705, %716 : vector<8x10xf32>
    %718 = arith.addf %714, %717 : vector<8x10xf32>
    %719 = math.tanh %718 : vector<8x10xf32>
    %cst_170 = arith.constant 1.000000e+00 : f32
    %720 = vector.broadcast %cst_170 : f32 to vector<8x10xf32>
    %721 = arith.subf %720, %713 : vector<8x10xf32>
    %722 = arith.mulf %721, %719 : vector<8x10xf32>
    %723 = arith.mulf %713, %695 : vector<8x10xf32>
    %724 = arith.addf %722, %723 : vector<8x10xf32>
    %c48_171 = arith.constant 48 : index
    %c0_172 = arith.constant 0 : index
    %725 = vector.load %arg3[%c48_171, %c0_172] : memref<64x128xf32, #tpu.memory_space<vmem>>, vector<8x10xf32>
    tpu.vector_store %arg3[%c48_171, %c0_172], %724 {strides = array<i32>} : memref<64x128xf32, #tpu.memory_space<vmem>>, vector<8x10xf32>,
    %cst_173 = arith.constant dense<0.000000e+00> : vector<8x384xf32>
    %726 = tpu.matmul %724, %511, %cst_173 {dimension_numbers = #tpu.dot_dimension_numbers<[1], [0], [0], [1], [0, 0, 1, 1], [], []>} : vector<8x10xf32>, vector<10x384xf32>, vector<8x384xf32> -> vector<8x384xf32>
    %727 = vector.extract_strided_slice %519 {offsets = [56, 0], sizes = [8, 10], strides = [1, 1]} : vector<64x10xf32> to vector<8x10xf32>
    %728 = vector.extract_strided_slice %726 {offsets = [0, 0], sizes = [8, 10], strides = [1, 1]} : vector<8x384xf32> to vector<8x10xf32>
    %729 = arith.addf %727, %728 : vector<8x10xf32>
    %730 = arith.negf %729 : vector<8x10xf32>
    %731 = math.exp %730 : vector<8x10xf32>
    %cst_174 = arith.constant 1.000000e+00 : f32
    %732 = vector.broadcast %cst_174 : f32 to vector<8x10xf32>
    %733 = arith.addf %732, %731 : vector<8x10xf32>
    %734 = arith.divf %732, %733 : vector<8x10xf32>
    %735 = vector.extract_strided_slice %520 {offsets = [56, 0], sizes = [8, 10], strides = [1, 1]} : vector<64x10xf32> to vector<8x10xf32>
    %736 = vector.extract_strided_slice %726 {offsets = [0, 128], sizes = [8, 10], strides = [1, 1]} : vector<8x384xf32> to vector<8x10xf32>
    %737 = arith.addf %735, %736 : vector<8x10xf32>
    %738 = arith.negf %737 : vector<8x10xf32>
    %739 = math.exp %738 : vector<8x10xf32>
    %cst_175 = arith.constant 1.000000e+00 : f32
    %740 = vector.broadcast %cst_175 : f32 to vector<8x10xf32>
    %741 = arith.addf %740, %739 : vector<8x10xf32>
    %742 = arith.divf %740, %741 : vector<8x10xf32>
    %743 = vector.extract_strided_slice %521 {offsets = [56, 0], sizes = [8, 10], strides = [1, 1]} : vector<64x10xf32> to vector<8x10xf32>
    %744 = vector.extract_strided_slice %726 {offsets = [0, 256], sizes = [8, 10], strides = [1, 1]} : vector<8x384xf32> to vector<8x10xf32>
    %745 = arith.addf %744, %515 : vector<8x10xf32>
    %746 = arith.mulf %734, %745 : vector<8x10xf32>
    %747 = arith.addf %743, %746 : vector<8x10xf32>
    %748 = math.tanh %747 : vector<8x10xf32>
    %cst_176 = arith.constant 1.000000e+00 : f32
    %749 = vector.broadcast %cst_176 : f32 to vector<8x10xf32>
    %750 = arith.subf %749, %742 : vector<8x10xf32>
    %751 = arith.mulf %750, %748 : vector<8x10xf32>
    %752 = arith.mulf %742, %724 : vector<8x10xf32>
    %753 = arith.addf %751, %752 : vector<8x10xf32>
    %c56_177 = arith.constant 56 : index
    %c0_178 = arith.constant 0 : index
    %754 = vector.load %arg3[%c56_177, %c0_178] : memref<64x128xf32, #tpu.memory_space<vmem>>, vector<8x10xf32>
    tpu.vector_store %arg3[%c56_177, %c0_178], %753 {strides = array<i32>} : memref<64x128xf32, #tpu.memory_space<vmem>>, vector<8x10xf32>,
    %c0_179 = arith.constant 0 : index
    %c0_180 = arith.constant 0 : index
    %755 = vector.load %arg3[%c0_179, %c0_180] : memref<64x128xf32, #tpu.memory_space<vmem>>, vector<64x10xf32>
    %c120 = arith.constant 120 : index
    %c0_181 = arith.constant 0 : index
    %756 = vector.load %arg1[%c120, %c0_181] : memref<176x384xf32, #tpu.memory_space<vmem>>, vector<10x384xf32>
    %c136 = arith.constant 136 : index
    %c0_182 = arith.constant 0 : index
    %757 = vector.load %arg1[%c136, %c0_182] : memref<176x384xf32, #tpu.memory_space<vmem>>, vector<10x384xf32>
    %c158 = arith.constant 158 : index
    %c0_183 = arith.constant 0 : index
    %758 = vector.load %arg1[%c158, %c0_183] : memref<176x384xf32, #tpu.memory_space<vmem>>, vector<1x384xf32>
    %c159 = arith.constant 159 : index
    %c0_184 = arith.constant 0 : index
    %759 = vector.load %arg1[%c159, %c0_184] : memref<176x384xf32, #tpu.memory_space<vmem>>, vector<1x10xf32>
    %760 = vector.shape_cast %759 : vector<1x10xf32> to vector<1x10xf32>
    %761 = vector.broadcast %760 : vector<1x10xf32> to vector<8x10xf32>
    %cst_185 = arith.constant dense<0.000000e+00> : vector<64x384xf32>
    %762 = tpu.matmul %755, %756, %cst_185 {dimension_numbers = #tpu.dot_dimension_numbers<[1], [0], [0], [1], [0, 0, 1, 1], [], []>} : vector<64x10xf32>, vector<10x384xf32>, vector<64x384xf32> -> vector<64x384xf32>
    %763 = vector.broadcast %758 : vector<1x384xf32> to vector<64x384xf32>
    %764 = arith.addf %762, %763 : vector<64x384xf32>
    %765 = vector.extract_strided_slice %764 {offsets = [0, 0], sizes = [64, 10], strides = [1, 1]} : vector<64x384xf32> to vector<64x10xf32>
    %766 = vector.extract_strided_slice %764 {offsets = [0, 128], sizes = [64, 10], strides = [1, 1]} : vector<64x384xf32> to vector<64x10xf32>
    %767 = vector.extract_strided_slice %764 {offsets = [0, 256], sizes = [64, 10], strides = [1, 1]} : vector<64x384xf32> to vector<64x10xf32>
    %cst_186 = arith.constant 0.000000e+00 : f32
    %768 = vector.broadcast %cst_186 : f32 to vector<8x10xf32>
    %cst_187 = arith.constant dense<0.000000e+00> : vector<8x384xf32>
    %769 = tpu.matmul %768, %757, %cst_187 {dimension_numbers = #tpu.dot_dimension_numbers<[1], [0], [0], [1], [0, 0, 1, 1], [], []>} : vector<8x10xf32>, vector<10x384xf32>, vector<8x384xf32> -> vector<8x384xf32>
    %770 = vector.extract_strided_slice %765 {offsets = [0, 0], sizes = [8, 10], strides = [1, 1]} : vector<64x10xf32> to vector<8x10xf32>
    %771 = vector.extract_strided_slice %769 {offsets = [0, 0], sizes = [8, 10], strides = [1, 1]} : vector<8x384xf32> to vector<8x10xf32>
    %772 = arith.addf %770, %771 : vector<8x10xf32>
    %773 = arith.negf %772 : vector<8x10xf32>
    %774 = math.exp %773 : vector<8x10xf32>
    %cst_188 = arith.constant 1.000000e+00 : f32
    %775 = vector.broadcast %cst_188 : f32 to vector<8x10xf32>
    %776 = arith.addf %775, %774 : vector<8x10xf32>
    %777 = arith.divf %775, %776 : vector<8x10xf32>
    %778 = vector.extract_strided_slice %766 {offsets = [0, 0], sizes = [8, 10], strides = [1, 1]} : vector<64x10xf32> to vector<8x10xf32>
    %779 = vector.extract_strided_slice %769 {offsets = [0, 128], sizes = [8, 10], strides = [1, 1]} : vector<8x384xf32> to vector<8x10xf32>
    %780 = arith.addf %778, %779 : vector<8x10xf32>
    %781 = arith.negf %780 : vector<8x10xf32>
    %782 = math.exp %781 : vector<8x10xf32>
    %cst_189 = arith.constant 1.000000e+00 : f32
    %783 = vector.broadcast %cst_189 : f32 to vector<8x10xf32>
    %784 = arith.addf %783, %782 : vector<8x10xf32>
    %785 = arith.divf %783, %784 : vector<8x10xf32>
    %786 = vector.extract_strided_slice %767 {offsets = [0, 0], sizes = [8, 10], strides = [1, 1]} : vector<64x10xf32> to vector<8x10xf32>
    %787 = vector.extract_strided_slice %769 {offsets = [0, 256], sizes = [8, 10], strides = [1, 1]} : vector<8x384xf32> to vector<8x10xf32>
    %788 = arith.addf %787, %761 : vector<8x10xf32>
    %789 = arith.mulf %777, %788 : vector<8x10xf32>
    %790 = arith.addf %786, %789 : vector<8x10xf32>
    %791 = math.tanh %790 : vector<8x10xf32>
    %cst_190 = arith.constant 1.000000e+00 : f32
    %792 = vector.broadcast %cst_190 : f32 to vector<8x10xf32>
    %793 = arith.subf %792, %785 : vector<8x10xf32>
    %794 = arith.mulf %793, %791 : vector<8x10xf32>
    %795 = arith.mulf %785, %768 : vector<8x10xf32>
    %796 = arith.addf %794, %795 : vector<8x10xf32>
    %cst_191 = arith.constant dense<0.000000e+00> : vector<8x384xf32>
    %797 = tpu.matmul %796, %757, %cst_191 {dimension_numbers = #tpu.dot_dimension_numbers<[1], [0], [0], [1], [0, 0, 1, 1], [], []>} : vector<8x10xf32>, vector<10x384xf32>, vector<8x384xf32> -> vector<8x384xf32>
    %798 = vector.extract_strided_slice %765 {offsets = [8, 0], sizes = [8, 10], strides = [1, 1]} : vector<64x10xf32> to vector<8x10xf32>
    %799 = vector.extract_strided_slice %797 {offsets = [0, 0], sizes = [8, 10], strides = [1, 1]} : vector<8x384xf32> to vector<8x10xf32>
    %800 = arith.addf %798, %799 : vector<8x10xf32>
    %801 = arith.negf %800 : vector<8x10xf32>
    %802 = math.exp %801 : vector<8x10xf32>
    %cst_192 = arith.constant 1.000000e+00 : f32
    %803 = vector.broadcast %cst_192 : f32 to vector<8x10xf32>
    %804 = arith.addf %803, %802 : vector<8x10xf32>
    %805 = arith.divf %803, %804 : vector<8x10xf32>
    %806 = vector.extract_strided_slice %766 {offsets = [8, 0], sizes = [8, 10], strides = [1, 1]} : vector<64x10xf32> to vector<8x10xf32>
    %807 = vector.extract_strided_slice %797 {offsets = [0, 128], sizes = [8, 10], strides = [1, 1]} : vector<8x384xf32> to vector<8x10xf32>
    %808 = arith.addf %806, %807 : vector<8x10xf32>
    %809 = arith.negf %808 : vector<8x10xf32>
    %810 = math.exp %809 : vector<8x10xf32>
    %cst_193 = arith.constant 1.000000e+00 : f32
    %811 = vector.broadcast %cst_193 : f32 to vector<8x10xf32>
    %812 = arith.addf %811, %810 : vector<8x10xf32>
    %813 = arith.divf %811, %812 : vector<8x10xf32>
    %814 = vector.extract_strided_slice %767 {offsets = [8, 0], sizes = [8, 10], strides = [1, 1]} : vector<64x10xf32> to vector<8x10xf32>
    %815 = vector.extract_strided_slice %797 {offsets = [0, 256], sizes = [8, 10], strides = [1, 1]} : vector<8x384xf32> to vector<8x10xf32>
    %816 = arith.addf %815, %761 : vector<8x10xf32>
    %817 = arith.mulf %805, %816 : vector<8x10xf32>
    %818 = arith.addf %814, %817 : vector<8x10xf32>
    %819 = math.tanh %818 : vector<8x10xf32>
    %cst_194 = arith.constant 1.000000e+00 : f32
    %820 = vector.broadcast %cst_194 : f32 to vector<8x10xf32>
    %821 = arith.subf %820, %813 : vector<8x10xf32>
    %822 = arith.mulf %821, %819 : vector<8x10xf32>
    %823 = arith.mulf %813, %796 : vector<8x10xf32>
    %824 = arith.addf %822, %823 : vector<8x10xf32>
    %cst_195 = arith.constant dense<0.000000e+00> : vector<8x384xf32>
    %825 = tpu.matmul %824, %757, %cst_195 {dimension_numbers = #tpu.dot_dimension_numbers<[1], [0], [0], [1], [0, 0, 1, 1], [], []>} : vector<8x10xf32>, vector<10x384xf32>, vector<8x384xf32> -> vector<8x384xf32>
    %826 = vector.extract_strided_slice %765 {offsets = [16, 0], sizes = [8, 10], strides = [1, 1]} : vector<64x10xf32> to vector<8x10xf32>
    %827 = vector.extract_strided_slice %825 {offsets = [0, 0], sizes = [8, 10], strides = [1, 1]} : vector<8x384xf32> to vector<8x10xf32>
    %828 = arith.addf %826, %827 : vector<8x10xf32>
    %829 = arith.negf %828 : vector<8x10xf32>
    %830 = math.exp %829 : vector<8x10xf32>
    %cst_196 = arith.constant 1.000000e+00 : f32
    %831 = vector.broadcast %cst_196 : f32 to vector<8x10xf32>
    %832 = arith.addf %831, %830 : vector<8x10xf32>
    %833 = arith.divf %831, %832 : vector<8x10xf32>
    %834 = vector.extract_strided_slice %766 {offsets = [16, 0], sizes = [8, 10], strides = [1, 1]} : vector<64x10xf32> to vector<8x10xf32>
    %835 = vector.extract_strided_slice %825 {offsets = [0, 128], sizes = [8, 10], strides = [1, 1]} : vector<8x384xf32> to vector<8x10xf32>
    %836 = arith.addf %834, %835 : vector<8x10xf32>
    %837 = arith.negf %836 : vector<8x10xf32>
    %838 = math.exp %837 : vector<8x10xf32>
    %cst_197 = arith.constant 1.000000e+00 : f32
    %839 = vector.broadcast %cst_197 : f32 to vector<8x10xf32>
    %840 = arith.addf %839, %838 : vector<8x10xf32>
    %841 = arith.divf %839, %840 : vector<8x10xf32>
    %842 = vector.extract_strided_slice %767 {offsets = [16, 0], sizes = [8, 10], strides = [1, 1]} : vector<64x10xf32> to vector<8x10xf32>
    %843 = vector.extract_strided_slice %825 {offsets = [0, 256], sizes = [8, 10], strides = [1, 1]} : vector<8x384xf32> to vector<8x10xf32>
    %844 = arith.addf %843, %761 : vector<8x10xf32>
    %845 = arith.mulf %833, %844 : vector<8x10xf32>
    %846 = arith.addf %842, %845 : vector<8x10xf32>
    %847 = math.tanh %846 : vector<8x10xf32>
    %cst_198 = arith.constant 1.000000e+00 : f32
    %848 = vector.broadcast %cst_198 : f32 to vector<8x10xf32>
    %849 = arith.subf %848, %841 : vector<8x10xf32>
    %850 = arith.mulf %849, %847 : vector<8x10xf32>
    %851 = arith.mulf %841, %824 : vector<8x10xf32>
    %852 = arith.addf %850, %851 : vector<8x10xf32>
    %cst_199 = arith.constant dense<0.000000e+00> : vector<8x384xf32>
    %853 = tpu.matmul %852, %757, %cst_199 {dimension_numbers = #tpu.dot_dimension_numbers<[1], [0], [0], [1], [0, 0, 1, 1], [], []>} : vector<8x10xf32>, vector<10x384xf32>, vector<8x384xf32> -> vector<8x384xf32>
    %854 = vector.extract_strided_slice %765 {offsets = [24, 0], sizes = [8, 10], strides = [1, 1]} : vector<64x10xf32> to vector<8x10xf32>
    %855 = vector.extract_strided_slice %853 {offsets = [0, 0], sizes = [8, 10], strides = [1, 1]} : vector<8x384xf32> to vector<8x10xf32>
    %856 = arith.addf %854, %855 : vector<8x10xf32>
    %857 = arith.negf %856 : vector<8x10xf32>
    %858 = math.exp %857 : vector<8x10xf32>
    %cst_200 = arith.constant 1.000000e+00 : f32
    %859 = vector.broadcast %cst_200 : f32 to vector<8x10xf32>
    %860 = arith.addf %859, %858 : vector<8x10xf32>
    %861 = arith.divf %859, %860 : vector<8x10xf32>
    %862 = vector.extract_strided_slice %766 {offsets = [24, 0], sizes = [8, 10], strides = [1, 1]} : vector<64x10xf32> to vector<8x10xf32>
    %863 = vector.extract_strided_slice %853 {offsets = [0, 128], sizes = [8, 10], strides = [1, 1]} : vector<8x384xf32> to vector<8x10xf32>
    %864 = arith.addf %862, %863 : vector<8x10xf32>
    %865 = arith.negf %864 : vector<8x10xf32>
    %866 = math.exp %865 : vector<8x10xf32>
    %cst_201 = arith.constant 1.000000e+00 : f32
    %867 = vector.broadcast %cst_201 : f32 to vector<8x10xf32>
    %868 = arith.addf %867, %866 : vector<8x10xf32>
    %869 = arith.divf %867, %868 : vector<8x10xf32>
    %870 = vector.extract_strided_slice %767 {offsets = [24, 0], sizes = [8, 10], strides = [1, 1]} : vector<64x10xf32> to vector<8x10xf32>
    %871 = vector.extract_strided_slice %853 {offsets = [0, 256], sizes = [8, 10], strides = [1, 1]} : vector<8x384xf32> to vector<8x10xf32>
    %872 = arith.addf %871, %761 : vector<8x10xf32>
    %873 = arith.mulf %861, %872 : vector<8x10xf32>
    %874 = arith.addf %870, %873 : vector<8x10xf32>
    %875 = math.tanh %874 : vector<8x10xf32>
    %cst_202 = arith.constant 1.000000e+00 : f32
    %876 = vector.broadcast %cst_202 : f32 to vector<8x10xf32>
    %877 = arith.subf %876, %869 : vector<8x10xf32>
    %878 = arith.mulf %877, %875 : vector<8x10xf32>
    %879 = arith.mulf %869, %852 : vector<8x10xf32>
    %880 = arith.addf %878, %879 : vector<8x10xf32>
    %cst_203 = arith.constant dense<0.000000e+00> : vector<8x384xf32>
    %881 = tpu.matmul %880, %757, %cst_203 {dimension_numbers = #tpu.dot_dimension_numbers<[1], [0], [0], [1], [0, 0, 1, 1], [], []>} : vector<8x10xf32>, vector<10x384xf32>, vector<8x384xf32> -> vector<8x384xf32>
    %882 = vector.extract_strided_slice %765 {offsets = [32, 0], sizes = [8, 10], strides = [1, 1]} : vector<64x10xf32> to vector<8x10xf32>
    %883 = vector.extract_strided_slice %881 {offsets = [0, 0], sizes = [8, 10], strides = [1, 1]} : vector<8x384xf32> to vector<8x10xf32>
    %884 = arith.addf %882, %883 : vector<8x10xf32>
    %885 = arith.negf %884 : vector<8x10xf32>
    %886 = math.exp %885 : vector<8x10xf32>
    %cst_204 = arith.constant 1.000000e+00 : f32
    %887 = vector.broadcast %cst_204 : f32 to vector<8x10xf32>
    %888 = arith.addf %887, %886 : vector<8x10xf32>
    %889 = arith.divf %887, %888 : vector<8x10xf32>
    %890 = vector.extract_strided_slice %766 {offsets = [32, 0], sizes = [8, 10], strides = [1, 1]} : vector<64x10xf32> to vector<8x10xf32>
    %891 = vector.extract_strided_slice %881 {offsets = [0, 128], sizes = [8, 10], strides = [1, 1]} : vector<8x384xf32> to vector<8x10xf32>
    %892 = arith.addf %890, %891 : vector<8x10xf32>
    %893 = arith.negf %892 : vector<8x10xf32>
    %894 = math.exp %893 : vector<8x10xf32>
    %cst_205 = arith.constant 1.000000e+00 : f32
    %895 = vector.broadcast %cst_205 : f32 to vector<8x10xf32>
    %896 = arith.addf %895, %894 : vector<8x10xf32>
    %897 = arith.divf %895, %896 : vector<8x10xf32>
    %898 = vector.extract_strided_slice %767 {offsets = [32, 0], sizes = [8, 10], strides = [1, 1]} : vector<64x10xf32> to vector<8x10xf32>
    %899 = vector.extract_strided_slice %881 {offsets = [0, 256], sizes = [8, 10], strides = [1, 1]} : vector<8x384xf32> to vector<8x10xf32>
    %900 = arith.addf %899, %761 : vector<8x10xf32>
    %901 = arith.mulf %889, %900 : vector<8x10xf32>
    %902 = arith.addf %898, %901 : vector<8x10xf32>
    %903 = math.tanh %902 : vector<8x10xf32>
    %cst_206 = arith.constant 1.000000e+00 : f32
    %904 = vector.broadcast %cst_206 : f32 to vector<8x10xf32>
    %905 = arith.subf %904, %897 : vector<8x10xf32>
    %906 = arith.mulf %905, %903 : vector<8x10xf32>
    %907 = arith.mulf %897, %880 : vector<8x10xf32>
    %908 = arith.addf %906, %907 : vector<8x10xf32>
    %cst_207 = arith.constant dense<0.000000e+00> : vector<8x384xf32>
    %909 = tpu.matmul %908, %757, %cst_207 {dimension_numbers = #tpu.dot_dimension_numbers<[1], [0], [0], [1], [0, 0, 1, 1], [], []>} : vector<8x10xf32>, vector<10x384xf32>, vector<8x384xf32> -> vector<8x384xf32>
    %910 = vector.extract_strided_slice %765 {offsets = [40, 0], sizes = [8, 10], strides = [1, 1]} : vector<64x10xf32> to vector<8x10xf32>
    %911 = vector.extract_strided_slice %909 {offsets = [0, 0], sizes = [8, 10], strides = [1, 1]} : vector<8x384xf32> to vector<8x10xf32>
    %912 = arith.addf %910, %911 : vector<8x10xf32>
    %913 = arith.negf %912 : vector<8x10xf32>
    %914 = math.exp %913 : vector<8x10xf32>
    %cst_208 = arith.constant 1.000000e+00 : f32
    %915 = vector.broadcast %cst_208 : f32 to vector<8x10xf32>
    %916 = arith.addf %915, %914 : vector<8x10xf32>
    %917 = arith.divf %915, %916 : vector<8x10xf32>
    %918 = vector.extract_strided_slice %766 {offsets = [40, 0], sizes = [8, 10], strides = [1, 1]} : vector<64x10xf32> to vector<8x10xf32>
    %919 = vector.extract_strided_slice %909 {offsets = [0, 128], sizes = [8, 10], strides = [1, 1]} : vector<8x384xf32> to vector<8x10xf32>
    %920 = arith.addf %918, %919 : vector<8x10xf32>
    %921 = arith.negf %920 : vector<8x10xf32>
    %922 = math.exp %921 : vector<8x10xf32>
    %cst_209 = arith.constant 1.000000e+00 : f32
    %923 = vector.broadcast %cst_209 : f32 to vector<8x10xf32>
    %924 = arith.addf %923, %922 : vector<8x10xf32>
    %925 = arith.divf %923, %924 : vector<8x10xf32>
    %926 = vector.extract_strided_slice %767 {offsets = [40, 0], sizes = [8, 10], strides = [1, 1]} : vector<64x10xf32> to vector<8x10xf32>
    %927 = vector.extract_strided_slice %909 {offsets = [0, 256], sizes = [8, 10], strides = [1, 1]} : vector<8x384xf32> to vector<8x10xf32>
    %928 = arith.addf %927, %761 : vector<8x10xf32>
    %929 = arith.mulf %917, %928 : vector<8x10xf32>
    %930 = arith.addf %926, %929 : vector<8x10xf32>
    %931 = math.tanh %930 : vector<8x10xf32>
    %cst_210 = arith.constant 1.000000e+00 : f32
    %932 = vector.broadcast %cst_210 : f32 to vector<8x10xf32>
    %933 = arith.subf %932, %925 : vector<8x10xf32>
    %934 = arith.mulf %933, %931 : vector<8x10xf32>
    %935 = arith.mulf %925, %908 : vector<8x10xf32>
    %936 = arith.addf %934, %935 : vector<8x10xf32>
    %cst_211 = arith.constant dense<0.000000e+00> : vector<8x384xf32>
    %937 = tpu.matmul %936, %757, %cst_211 {dimension_numbers = #tpu.dot_dimension_numbers<[1], [0], [0], [1], [0, 0, 1, 1], [], []>} : vector<8x10xf32>, vector<10x384xf32>, vector<8x384xf32> -> vector<8x384xf32>
    %938 = vector.extract_strided_slice %765 {offsets = [48, 0], sizes = [8, 10], strides = [1, 1]} : vector<64x10xf32> to vector<8x10xf32>
    %939 = vector.extract_strided_slice %937 {offsets = [0, 0], sizes = [8, 10], strides = [1, 1]} : vector<8x384xf32> to vector<8x10xf32>
    %940 = arith.addf %938, %939 : vector<8x10xf32>
    %941 = arith.negf %940 : vector<8x10xf32>
    %942 = math.exp %941 : vector<8x10xf32>
    %cst_212 = arith.constant 1.000000e+00 : f32
    %943 = vector.broadcast %cst_212 : f32 to vector<8x10xf32>
    %944 = arith.addf %943, %942 : vector<8x10xf32>
    %945 = arith.divf %943, %944 : vector<8x10xf32>
    %946 = vector.extract_strided_slice %766 {offsets = [48, 0], sizes = [8, 10], strides = [1, 1]} : vector<64x10xf32> to vector<8x10xf32>
    %947 = vector.extract_strided_slice %937 {offsets = [0, 128], sizes = [8, 10], strides = [1, 1]} : vector<8x384xf32> to vector<8x10xf32>
    %948 = arith.addf %946, %947 : vector<8x10xf32>
    %949 = arith.negf %948 : vector<8x10xf32>
    %950 = math.exp %949 : vector<8x10xf32>
    %cst_213 = arith.constant 1.000000e+00 : f32
    %951 = vector.broadcast %cst_213 : f32 to vector<8x10xf32>
    %952 = arith.addf %951, %950 : vector<8x10xf32>
    %953 = arith.divf %951, %952 : vector<8x10xf32>
    %954 = vector.extract_strided_slice %767 {offsets = [48, 0], sizes = [8, 10], strides = [1, 1]} : vector<64x10xf32> to vector<8x10xf32>
    %955 = vector.extract_strided_slice %937 {offsets = [0, 256], sizes = [8, 10], strides = [1, 1]} : vector<8x384xf32> to vector<8x10xf32>
    %956 = arith.addf %955, %761 : vector<8x10xf32>
    %957 = arith.mulf %945, %956 : vector<8x10xf32>
    %958 = arith.addf %954, %957 : vector<8x10xf32>
    %959 = math.tanh %958 : vector<8x10xf32>
    %cst_214 = arith.constant 1.000000e+00 : f32
    %960 = vector.broadcast %cst_214 : f32 to vector<8x10xf32>
    %961 = arith.subf %960, %953 : vector<8x10xf32>
    %962 = arith.mulf %961, %959 : vector<8x10xf32>
    %963 = arith.mulf %953, %936 : vector<8x10xf32>
    %964 = arith.addf %962, %963 : vector<8x10xf32>
    %cst_215 = arith.constant dense<0.000000e+00> : vector<8x384xf32>
    %965 = tpu.matmul %964, %757, %cst_215 {dimension_numbers = #tpu.dot_dimension_numbers<[1], [0], [0], [1], [0, 0, 1, 1], [], []>} : vector<8x10xf32>, vector<10x384xf32>, vector<8x384xf32> -> vector<8x384xf32>
    %966 = vector.extract_strided_slice %765 {offsets = [56, 0], sizes = [8, 10], strides = [1, 1]} : vector<64x10xf32> to vector<8x10xf32>
    %967 = vector.extract_strided_slice %965 {offsets = [0, 0], sizes = [8, 10], strides = [1, 1]} : vector<8x384xf32> to vector<8x10xf32>
    %968 = arith.addf %966, %967 : vector<8x10xf32>
    %969 = arith.negf %968 : vector<8x10xf32>
    %970 = math.exp %969 : vector<8x10xf32>
    %cst_216 = arith.constant 1.000000e+00 : f32
    %971 = vector.broadcast %cst_216 : f32 to vector<8x10xf32>
    %972 = arith.addf %971, %970 : vector<8x10xf32>
    %973 = arith.divf %971, %972 : vector<8x10xf32>
    %974 = vector.extract_strided_slice %766 {offsets = [56, 0], sizes = [8, 10], strides = [1, 1]} : vector<64x10xf32> to vector<8x10xf32>
    %975 = vector.extract_strided_slice %965 {offsets = [0, 128], sizes = [8, 10], strides = [1, 1]} : vector<8x384xf32> to vector<8x10xf32>
    %976 = arith.addf %974, %975 : vector<8x10xf32>
    %977 = arith.negf %976 : vector<8x10xf32>
    %978 = math.exp %977 : vector<8x10xf32>
    %cst_217 = arith.constant 1.000000e+00 : f32
    %979 = vector.broadcast %cst_217 : f32 to vector<8x10xf32>
    %980 = arith.addf %979, %978 : vector<8x10xf32>
    %981 = arith.divf %979, %980 : vector<8x10xf32>
    %982 = vector.extract_strided_slice %767 {offsets = [56, 0], sizes = [8, 10], strides = [1, 1]} : vector<64x10xf32> to vector<8x10xf32>
    %983 = vector.extract_strided_slice %965 {offsets = [0, 256], sizes = [8, 10], strides = [1, 1]} : vector<8x384xf32> to vector<8x10xf32>
    %984 = arith.addf %983, %761 : vector<8x10xf32>
    %985 = arith.mulf %973, %984 : vector<8x10xf32>
    %986 = arith.addf %982, %985 : vector<8x10xf32>
    %987 = math.tanh %986 : vector<8x10xf32>
    %cst_218 = arith.constant 1.000000e+00 : f32
    %988 = vector.broadcast %cst_218 : f32 to vector<8x10xf32>
    %989 = arith.subf %988, %981 : vector<8x10xf32>
    %990 = arith.mulf %989, %987 : vector<8x10xf32>
    %991 = arith.mulf %981, %964 : vector<8x10xf32>
    %992 = arith.addf %990, %991 : vector<8x10xf32>
    %c160 = arith.constant 160 : index
    %c0_219 = arith.constant 0 : index
    %993 = vector.load %arg1[%c160, %c0_219] : memref<176x384xf32, #tpu.memory_space<vmem>>, vector<10x128xf32>
    %c170 = arith.constant 170 : index
    %c0_220 = arith.constant 0 : index
    %994 = vector.load %arg1[%c170, %c0_220] : memref<176x384xf32, #tpu.memory_space<vmem>>, vector<1x1xf32>
    %cst_221 = arith.constant dense<0.000000e+00> : vector<8x128xf32>
    %995 = tpu.matmul %992, %993, %cst_221 {dimension_numbers = #tpu.dot_dimension_numbers<[1], [0], [0], [1], [0, 0, 1, 1], [], []>} : vector<8x10xf32>, vector<10x128xf32>, vector<8x128xf32> -> vector<8x128xf32>
    %996 = vector.extract_strided_slice %995 {offsets = [0, 0], sizes = [2, 1], strides = [1, 1]} : vector<8x128xf32> to vector<2x1xf32>
    %997 = vector.broadcast %994 : vector<1x1xf32> to vector<2x1xf32>
    %998 = arith.addf %996, %997 : vector<2x1xf32>
    %999 = arith.negf %998 : vector<2x1xf32>
    %1000 = math.exp %999 : vector<2x1xf32>
    %cst_222 = arith.constant 1.000000e+00 : f32
    %1001 = vector.broadcast %cst_222 : f32 to vector<2x1xf32>
    %1002 = arith.addf %1001, %1000 : vector<2x1xf32>
    %1003 = arith.divf %1001, %1002 : vector<2x1xf32>
    %c0_223 = arith.constant 0 : index
    %c0_224 = arith.constant 0 : index
    %1004 = vector.load %arg2[%c0_223, %c0_224] : memref<2x1xf32, #tpu.memory_space<vmem>>, vector<2x1xf32>
    tpu.vector_store %arg2[%c0_223, %c0_224], %1003 {strides = array<i32>} : memref<2x1xf32, #tpu.memory_space<vmem>>, vector<2x1xf32>,
    return
  }
}

</mosaic_0001>

<bundles_post_ra>
// kernel: gru_default_forward.1
= control target key start
LH: loop header
LB: loop body
LE: loop exit
PB: predicated region body
PF: predicated region fallthrough
CT: control target
= control target key end

     0   :  { %7 = vsyncpa [#allocation5], 0  ;;  %s9337_s0 = inlined_call_operand.hbm [shape: f32[2,8,8], index: 0, kind: input, shape index: {}]   ;;  %s9338_s1 = inlined_call_operand.hbm [shape: f32[176,384], index: 1, kind: input, shape index: {}]   ;;  %s9339_s2 = inlined_call_operand.vmem [shape: f32[2,1], index: 2, kind: output, shape index: {}]  }
   0x1   :  { %8 = vsyncpa [#allocation7], 0  ;;  %s8311_s9 = smov [#allocation4]   ;;  %s8263_s13 = scalar_lea.hbm %s9337_s0, 256 }
   0x2   :  { %s14_s10 = sshll.u32 %s8311_s9, 4  ;;  %p8264_p0 = scmp.ne.s32.totalorder %s9337_s0, %s8263_s13  ;;  %s15_s10 = int_to_ptr.vmem [resolvable:$true] %s14_s10 }
   0x3   :  { %p8267_p1 = scmp.lt.u32.totalorder %s8263_s13, %s9337_s0 }
   0x5   :  { %p8269_p2 = pnand %p8267_p1, %p8264_p0 }
   0x7   :  { %8272 = shalt.err (!%p8269_p2)
}
   0x8   :  { %s8273_s18 = scalar_lea.vmem %s15_s10, 256  ;;  %p8278_p4 = scmp.lt.s32.totalorder %s15_s10, %s15_s10 }
   0x9   :  { %p8274_p3 = scmp.ne.s32.totalorder %s15_s10, %s8273_s18  ;;  %p8279_p5 = scmp.lt.s32.totalorder %s8273_s18, %s8273_s18 }
   0xb   :  { %p8280_p6 = por %p8279_p5, %p8278_p4 }
   0xd   :  { %p8281_p7 = pnand %p8280_p6, %p8274_p3 }
   0xf   :  { %8284 = shalt.err (!%p8281_p7)
}
  0x10   :  { %s8312_s19 = smov 128   ;;  %s8313_s20 = smov 8  }
  0x11   :  { %20 = dma.hbm_to_vmem [thread:$0]  %s9337_s0, 256, %s15_s10, [#allocation5], %s8312_s19, %s8312_s19, %s8313_s20  }
  0x12   :  { %s8314_s23 = smov [#allocation6]   ;;  %s8285_s27 = scalar_lea.hbm %s9338_s1, 8448 }
  0x13   :  { %s26_s24 = sshll.u32 %s8314_s23, 4  ;;  %p8286_p8 = scmp.ne.s32.totalorder %s9338_s1, %s8285_s27  ;;  %s27_s24 = int_to_ptr.vmem [resolvable:$true] %s26_s24 }
  0x14   :  { %p8289_p9 = scmp.lt.u32.totalorder %s8285_s27, %s9338_s1 }
  0x16   :  { %p8291_p10 = pnand %p8289_p9, %p8286_p8 }
  0x18   :  { %8294 = shalt.err (!%p8291_p10)
}
  0x19   :  { %s8295_s4 = scalar_lea.vmem %s27_s24, 8448  ;;  %p8300_p12 = scmp.lt.s32.totalorder %s27_s24, %s27_s24 }
  0x1a   :  { %p8296_p11 = scmp.ne.s32.totalorder %s27_s24, %s8295_s4  ;;  %p8301_p13 = scmp.lt.s32.totalorder %s8295_s4, %s8295_s4 }
  0x1c   :  { %p8302_p0 = por %p8301_p13, %p8300_p12 }
  0x1e   :  { %p8303_p1 = pnand %p8302_p0, %p8296_p11 }
  0x20   :  { %8306 = shalt.err (!%p8303_p1)
}
  0x21   :  { %s8315_s0 = smov 384   ;;  %s8316_s5 = smov 24  }
  0x22   :  { %32 = dma.hbm_to_vmem [thread:$0]  %s9338_s1, 8448, %s27_s24, [#allocation7], %s8315_s0, %s8315_s0, %s8316_s5  }
  0x23   :  { %8307 = dma.done.wait [#allocation5], 256  }
  0x24   :  { %8308 = vsyncadd [#allocation5], 4294967040 }
  0x25   :  { %8309 = dma.done.wait [#allocation7], 8448  }
  0x26   :  { %8310 = vsyncadd [#allocation7], 4294958848  ;;  %v8317_v0 = vmov 0.0   ;;  %v106_v1 = vld [vmem:[#allocation6 + $0x8] sm:$0xff]  ;;  %v105_v2 = vld [vmem:[#allocation6] sm:$0xff]  ;;  %vm58_vm0 = vcmask 1041409   ;;  %v121_v57 = vlaneseq }
  0x27   :  { %225 = vmatprep.mubr.f32.mxu0 %v8317_v0  ;;  %v109_v3 = vld [vmem:[#allocation6 + $0x20] sm:$0xff]  ;;  %161 = vmatprep.subr.mxu0 %v106_v1  ;;  %v112_v4 = vld [vmem:[#allocation6 + $0x38] sm:$0xff]  ;;  %v39_v5 = vld [vmem:[#allocation4] sm:$0x1]  ;;  %vm96_vm1 = vcmask 1041408   ;;  %vm136_vm2 = vcmask 64512  }
  0x28   :  { %v40_v6 = vld [vmem:[#allocation4 + $0x8] sm:$0x1]  ;;  %162 = vmatpush1.msra.mxu0 %v105_v2  ;;  %v8361_v7 = vpack.c.bf16 %v112_v4, %v109_v3  ;;  %v111_v10 = vld [vmem:[#allocation6 + $0x30] sm:$0xff]  ;;  %v42_v13 = vld [vmem:[#allocation4 + $0x9] sm:$0x1]  ;;  %vm383_vm3 = vcmask 1043456  }
  0x29   :  { %v57_v8 = vrot.slane %v40_v6, 7  ;;  %v108_v9 = vld [vmem:[#allocation6 + $0x18] sm:$0xff]  ;;  %v41_v12 = vld [vmem:[#allocation4 + $0x1] sm:$0x1]  ;;  %v63_v16 = vrot.slane %v42_v13, 7  ;;  %v110_v34 = vld [vmem:[#allocation6 + $0x28] sm:$0xff] }
  0x2a   :  { %v8363_v11 = vpack.c.bf16 %v111_v10, %v108_v9  ;;  %v44_v14 = vld [vmem:[#allocation4 + $0xa] sm:$0x1]  ;;  %7498 = vmatprep.subr.bf16.mxu0 %v8361_v7  ;;  %v46_v18 = vld [vmem:[#allocation4 + $0xb] sm:$0x1]  ;;  %v43_v20 = vld [vmem:[#allocation4 + $0x2] sm:$0x1] }
  0x2b   :  { %v59_v15 = vsel %vm58_vm0, %v57_v8, %v39_v5  ;;  %v68_v17 = vrot.slane %v44_v14, 7  ;;  %v8368_v21 = vld [vmem:[#allocation6 + $0x50] sm:$0xf]  ;;  %v64_v22 = vsel %vm58_vm0, %v63_v16, %v41_v12  ;;  %v73_v24 = vrot.slane %v46_v18, 7  ;;  %v48_v25 = vld [vmem:[#allocation4 + $0xc] sm:$0x1] }
  0x2c   :  { %v97_v19 = vsel %vm96_vm1, %v59_v15, 0.0  ;;  %v45_v23 = vld [vmem:[#allocation4 + $0x3] sm:$0x1]  ;;  %v98_v26 = vsel %vm96_vm1, %v64_v22, 0.0  ;;  %v78_v27 = vrot.slane %v48_v25, 7  ;;  %v113_v37 = vld [vmem:[#allocation6 + $0x40] sm:$0xff] }
  0x2d   :  { %6720 = vmatmul.mubr.msk.f32.vlgmr.msra.gmra.mrb[0].mxu0 %vm136_vm2, %v97_v19  ;;  %7170 = vmatprep.mubr.msk.f32.mxu1 %vm136_vm2, %v97_v19  ;;  %v50_v28 = vld [vmem:[#allocation4 + $0xd] sm:$0x1]  ;;  %v107_v29 = vld [vmem:[#allocation6 + $0x10] sm:$0xff]  ;;  %v69_v30 = vsel %vm58_vm0, %v68_v17, %v43_v20  ;;  %v8379_v32 = vld [vmem:[#allocation6 + $0x48] sm:$0xf]  ;;  %v74_v35 = vsel %vm58_vm0, %v73_v24, %v45_v23  ;;  %v8389_v43 = vpack.c.bf16 %v113_v37, %v110_v34  ;;  %v8318_v45 = vmov 0.0|0.0  }
  0x2e   :  { %7500 = vmatpush1.bf16.msra.mxu0 %v8363_v11  ;;  %231 = vmatprep.mubr.f32.mxu0 %v8317_v0  ;;  %v47_v31 = vld [vmem:[#allocation4 + $0x4] sm:$0x1]  ;;  %v52_v33 = vld [vmem:[#allocation4 + $0xe] sm:$0x1]  ;;  %v83_v36 = vrot.slane %v50_v28, 7  ;;  %v99_v38 = vsel %vm96_vm1, %v69_v30, 0.0 }
  0x2f   :  { %6736 = vmatprep.subr.msk.mxu0 %vm383_vm3, %v8368_v21  ;;  %7168 = vmatprep.subr.mxu1 %v107_v29  ;;  %v79_v39 = vsel %vm58_vm0, %v78_v27, %v47_v31  ;;  %v49_v40 = vld [vmem:[#allocation4 + $0x5] sm:$0x1]  ;;  %v88_v41 = vrot.slane %v52_v33, 7  ;;  %v54_v42 = vld [vmem:[#allocation4 + $0xf] sm:$0x1]  ;;  %v100_v46 = vsel %vm96_vm1, %v74_v35, 0.0 }
  0x30   :  { %7169 = vmatpush3.msra.mxu1 %v107_v29  ;;  %v51_v44 = vld [vmem:[#allocation4 + $0x6] sm:$0x1]  ;;  %v101_v47 = vsel %vm96_vm1, %v79_v39, 0.0  ;;  %v84_v48 = vsel %vm58_vm0, %v83_v36, %v49_v40  ;;  %v93_v49 = vrot.slane %v54_v42, 7  ;;  %v8400_v50 = vld [vmem:[#allocation6 + $0x58] sm:$0xf] }
  0x31   :  { %6721 = vmatmul.mubr.msk.f32.gmra.mrb[2].mxu0 %vm136_vm2, %v98_v26  ;;  %7171 = vmatmul.mubr.msk.f32.vlgmr.msra.gmra.mrb[0].mxu1 %vm136_vm2, %v98_v26  ;;  %v89_v51 = vsel %vm58_vm0, %v88_v41, %v51_v44  ;;  %v53_v52 = vld [vmem:[#allocation4 + $0x7] sm:$0x1]  ;;  %v102_v53 = vsel %vm96_vm1, %v84_v48, 0.0  ;;  %vm8319_vm4 = vmmov 0   ;;  %v122_v58 = vshrl.u32 %v121_v57, 7 }
  0x32   :  { %237 = vmatprep.mubr.f32.mxu0 %v8317_v0  ;;  %6737 = vmatpush1.msk.msra.mxu0 %vm383_vm3, %v8379_v32  ;;  %v103_v54 = vsel %vm96_vm1, %v89_v51, 0.0  ;;  %v94_v55 = vsel %vm58_vm0, %v93_v49, %v53_v52  ;;  %v118_v60 = vld [vmem:[#allocation6 + $0x1c8] ss:$8 sm:$0x7]  ;;  %v8473_v33 = vld [vmem:[#allocation6 + $0x1c9] ss:$0 sm:$0xff] }
  0x33   :  { %7501 = vmatprep.subr.bf16.mxu1 %v8318_v45  ;;  %7173 = vmatprep.mubr.msk.f32.mxu1 %vm136_vm2, %v99_v38  ;;  %v104_v56 = vsel %vm96_vm1, %v94_v55, 0.0  ;;  %v8444_v59 = vsub.s32 2, %v122_v58  ;;  %v8461_v18 = vsub.s32 0, %v122_v58  ;;  %v8463_v19 = vsub.s32 1, %v122_v58 }
  0x34   :  { %7503 = vmatpush3.bf16.msra.mxu1 %v8389_v43  ;;  %7505 = vmatprep.subr.bf16.mxu0 %v8361_v7  ;;  %vm379_vm5 = vcmask 162816   ;;  %vm8320_vm6 = vmmov 1   ;;  %vm3657_vm8 = vcmask 80896   ;;  %vm6712_vm9 = vcmask 1024  }
  0x35   :  { %6722 = vmatmul.mubr.msk.f32.gmra.mrb[4].mxu0 %vm136_vm2, %v99_v38  ;;  %7174 = vmatmul.mubr.msk.f32.gmra.mrb[2].mxu1 %vm136_vm2, %v100_v46  ;;  %v132_v61 = vrot.slane %v118_v60, %v8444_v59  ;;  %v8466_v20 = vrot.slane %v118_v60, %v8461_v18  ;;  %v8469_v23 = vrot.slane %v118_v60, %v8463_v19  ;;  %vm8884_vm7 = vmpackc.low %vm96_vm1, %vm8320_vm6 }
  0x36   :  { %243 = vmatprep.mubr.f32.mxu0 %v8317_v0  ;;  %7176 = vmatprep.mubr.msk.f32.mxu1 %vm136_vm2, %v101_v47 }
  0x37   :  { %7186 = vmatprep.subr.mxu1 %v8317_v0 }
  0x38   :  { %7187 = vmatpush3.msk.msra.mxu1 %vm383_vm3, %v8400_v50 }
  0x39   :  { %6723 = vmatmul.mubr.msk.f32.gmra.mrb[6].mxu0 %vm136_vm2, %v100_v46  ;;  %7177 = vmatmul.mubr.msk.f32.gmra.mrb[4].mxu1 %vm136_vm2, %v102_v53 }
  0x3a   :  { %249 = vmatprep.mubr.f32.mxu0 %v8317_v0  ;;  %7179 = vmatprep.mubr.msk.f32.mxu1 %vm136_vm2, %v103_v54 }
  0x3b   :  { %7508 = vmatprep.subr.bf16.mxu1 %v8318_v45 }
  0x3d   :  { %6724 = vmatmul.mubr.msk.f32.gmra.mrb[8].mxu0 %vm136_vm2, %v101_v47  ;;  %7180 = vmatmul.mubr.msk.f32.gmra.mrb[6].mxu1 %vm136_vm2, %v104_v56 }
  0x3e   :  { %255 = vmatprep.mubr.f32.mxu0 %v8317_v0  ;;  %7188 = vmatprep.mubr.msk.f32.mxu1 %vm8319_vm4, %v8317_v0 }
  0x41   :  { %6725 = vmatmul.mubr.msk.f32.gmra.mrb[10].mxu0 %vm136_vm2, %v102_v53  ;;  %7189 = vmatmul.mubr.f32.vlgmr.msra.gmra.mrb[8].mxu1 %v8317_v0 }
  0x42   :  { %261 = vmatprep.mubr.f32.mxu0 %v8317_v0  ;;  %7510 = vmatpush3.bf16.msra.mxu1 %v8389_v43 }
  0x43   :  { %7195 = vmatprep.subr.mxu1 %v8317_v0  ;;  %7197 = vmatprep.mubr.msk.f32.mxu1 %vm8319_vm4, %v8317_v0 }
  0x45   :  { %6726 = vmatmul.mubr.msk.f32.gmra.mrb[12].mxu0 %vm136_vm2, %v103_v54 }
  0x46   :  { %267 = vmatprep.mubr.f32.mxu0 %v8317_v0  ;;  %7196 = vmatpush3.msk.msra.mxu1 %vm383_vm3, %v8400_v50 }
  0x47   :  { %7515 = vmatprep.subr.bf16.mxu1 %v8318_v45 }
  0x49   :  { %6727 = vmatmul.mubr.msk.f32.gmra.mrb[14].mxu0 %vm136_vm2, %v104_v56 }
  0x4a   :  { %457 = vmatprep.mubr.f32.mxu0 %v8317_v0 }
  0x4d   :  { %458 = vmatmul.mubr.f32.vlgmr.msra.gmra.mrb[0].mxu0 %v8317_v0 }
  0x4e   :  { %7507 = vmatpush1.bf16.msra.mxu0 %v8363_v11  ;;  %624 = vmatprep.mubr.f32.mxu0 %v8317_v0 }
  0x4f   :  { %6741 = vmatprep.subr.msk.mxu0 %vm383_vm3, %v8368_v21 }
  0x52   :  { %6742 = vmatpush1.msk.msra.mxu0 %vm383_vm3, %v8379_v32 }
  0x53   :  { %7512 = vmatprep.subr.bf16.mxu0 %v8361_v7 }
 0x104   :  { %v7172_v62 = vpop.f32.mrb[0].mxu1 }
 0x105   :  { %v8447_v63 = vadd.f32 %v7172_v62, %v132_v61  ;;  %v340_v1 = vpop.f32.mrb[1].mxu1 }
 0x106   :  { %v341_v37 = vadd.f32 %v340_v1, %v132_v61 }
 0x108   :  { %v7175_v2 = vpop.f32.mrb[2].mxu1 }
 0x109   :  { %v8449_v3 = vadd.f32 %v7175_v2, %v132_v61  ;;  %v350_v4 = vpop.f32.mrb[3].mxu1 }
 0x10a   :  { %v8451_v5 = vadd.f32 %v350_v4, %v132_v61 }
 0x10c   :  { %v7178_v6 = vpop.f32.mrb[4].mxu1 }
 0x10d   :  { %v8453_v8 = vadd.f32 %v7178_v6, %v132_v61  ;;  %v360_v9 = vpop.f32.mrb[5].mxu1 }
 0x10e   :  { %v8455_v10 = vadd.f32 %v360_v9, %v132_v61 }
 0x110   :  { %v7181_v12 = vpop.f32.mrb[6].mxu1 }
 0x111   :  { %v8457_v13 = vadd.f32 %v7181_v12, %v132_v61  ;;  %v370_v14 = vpop.f32.mrb[7].mxu1 }
 0x112   :  { %v8459_v15 = vadd.f32 %v370_v14, %v132_v61 }
 0x114   :  { %v530_v16 = vpop.f32.mrb[8].mxu1 }
 0x115   :  { %v7190_v17 = vpop.f32.mrb[9].mxu1  ;;  %v548_v35 = vadd.f32 %v530_v16, %v8473_v33 }
 0x120   :  { %v459_v22 = vpop.f32.mrb[0].mxu0 }
 0x121   :  { %v7801_v24 = vadd.f32 %v459_v22, %v8466_v20  ;;  %v461_v25 = vpop.f32.mrb[1].mxu0 }
 0x122   :  { %v7802_v27 = vadd.f32 %v461_v25, %v8469_v23 }
 0x123   :  { %v6739_v26 = vmul.f32 -1.442695, %v7801_v24 }
 0x124   :  { %v6740_v28 = vmul.f32 -1.442695, %v7802_v27 }
 0x125   :  { %7939 = vpow2.f32 %v6739_v26 }
 0x126   :  { %7941 = vpow2.f32 %v6740_v28 }
 0x12f   :  { %v7940_v29 = vpop.eup %7939 }
 0x130   :  { %v538_v30 = vadd.f32 1.0, %v7940_v29  ;;  %v7942_v31 = vpop.eup %7941 }
 0x131   :  { %v545_v34 = vadd.f32 1.0, %v7942_v31 }
 0x132   :  { %7943 = vrcp.f32 %v538_v30 }
 0x133   :  { %7945 = vrcp.f32 %v545_v34 }
 0x13c   :  { %v7944_v36 = vpop.eup %7943 }
 0x13d   :  { %v549_v38 = vmul.f32 %v7944_v36, %v548_v35  ;;  %v7946_v40 = vpop.eup %7945 }
 0x13e   :  { %v552_v41 = vsub.f32 1.0, %v7946_v40  ;;  %v554_v46 = vmul.f32 0.0, %v7946_v40 }
 0x13f   :  { %v550_v39 = vadd.f32 %v549_v38, %v341_v37 }
 0x141   :  { %7947 = vtanh.f32 %v550_v39 }
 0x14b   :  { %v7948_v42 = vpop.eup %7947 }
 0x14c   :  { %v553_v44 = vmul.f32 %v7948_v42, %v552_v41 }
 0x14e   :  { %v555_v47 = vadd.f32 %v554_v46, %v553_v44 }
 0x150   :  { %556 = vst.msk [vmem:[#allocation2] sm:$0xff] %vm379_vm5, %v555_v47  ;;  %6743 = vmatmul.mubr.msk.f32.vlgmr.msra.gmra.mrb[2].mxu0 %vm379_vm5, %v555_v47  ;;  %7198 = vmatmul.mubr.msk.f32.vlgmr.msra.gmra.mrb[10].mxu1 %vm379_vm5, %v555_v47 }
 0x151   :  { %7514 = vmatpush1.bf16.msra.mxu0 %v8363_v11  ;;  %7517 = vmatpush3.bf16.msra.mxu1 %v8389_v43 }
 0x152   :  { %6748 = vmatprep.subr.msk.mxu0 %vm383_vm3, %v8368_v21  ;;  %7204 = vmatprep.subr.mxu1 %v8317_v0 }
 0x153   :  { %791 = vmatprep.mubr.f32.mxu0 %v8317_v0  ;;  %7206 = vmatprep.mubr.msk.f32.mxu1 %vm8319_vm4, %v8317_v0 }
 0x155   :  { %6749 = vmatpush1.msk.msra.mxu0 %vm383_vm3, %v8379_v32  ;;  %7205 = vmatpush3.msk.msra.mxu1 %vm383_vm3, %v8400_v50 }
 0x156   :  { %7519 = vmatprep.subr.bf16.mxu0 %v8361_v7  ;;  %7522 = vmatprep.subr.bf16.mxu1 %v8318_v45 }
 0x223   :  { %v626_v48 = vpop.f32.mrb[2].mxu0  ;;  %v697_v49 = vpop.f32.mrb[10].mxu1 }
 0x224   :  { %v7803_v51 = vadd.f32 %v626_v48, %v8466_v20  ;;  %v628_v52 = vpop.f32.mrb[3].mxu0  ;;  %v7199_v53 = vpop.f32.mrb[11].mxu1  ;;  %v715_v62 = vadd.f32 %v697_v49, %v8473_v33 }
 0x225   :  { %v7804_v55 = vadd.f32 %v628_v52, %v8469_v23 }
 0x226   :  { %v6746_v54 = vmul.f32 -1.442695, %v7803_v51 }
 0x227   :  { %v6747_v56 = vmul.f32 -1.442695, %v7804_v55 }
 0x228   :  { %7949 = vpow2.f32 %v6746_v54 }
 0x229   :  { %7951 = vpow2.f32 %v6747_v56 }
 0x232   :  { %v7950_v57 = vpop.eup %7949 }
 0x233   :  { %v705_v58 = vadd.f32 1.0, %v7950_v57  ;;  %v7952_v60 = vpop.eup %7951 }
 0x234   :  { %v712_v61 = vadd.f32 1.0, %v7952_v60 }
 0x235   :  { %7953 = vrcp.f32 %v705_v58 }
 0x236   :  { %7955 = vrcp.f32 %v712_v61 }
 0x23f   :  { %v7954_v1 = vpop.eup %7953 }
 0x240   :  { %v716_v2 = vmul.f32 %v7954_v1, %v715_v62  ;;  %v7956_v6 = vpop.eup %7955 }
 0x241   :  { %v719_v9 = vsub.f32 1.0, %v7956_v6  ;;  %v721_v16 = vmul.f32 %v7956_v6, %v555_v47 }
 0x242   :  { %v717_v4 = vadd.f32 %v716_v2, %v8447_v63 }
 0x244   :  { %7957 = vtanh.f32 %v717_v4 }
 0x24e   :  { %v7958_v12 = vpop.eup %7957 }
 0x24f   :  { %v720_v14 = vmul.f32 %v7958_v12, %v719_v9 }
 0x251   :  { %v722_v17 = vadd.f32 %v721_v16, %v720_v14 }
 0x253   :  { %723 = vst.msk [vmem:[#allocation2 + $0x8] sm:$0xff] %vm379_vm5, %v722_v17  ;;  %6750 = vmatmul.mubr.msk.f32.vlgmr.msra.gmra.mrb[4].mxu0 %vm379_vm5, %v722_v17  ;;  %7207 = vmatmul.mubr.msk.f32.vlgmr.msra.gmra.mrb[12].mxu1 %vm379_vm5, %v722_v17 }
 0x254   :  { %7521 = vmatpush1.bf16.msra.mxu0 %v8363_v11  ;;  %7524 = vmatpush3.bf16.msra.mxu1 %v8389_v43 }
 0x255   :  { %6755 = vmatprep.subr.msk.mxu0 %vm383_vm3, %v8368_v21  ;;  %7213 = vmatprep.subr.mxu1 %v8317_v0 }
 0x256   :  { %958 = vmatprep.mubr.f32.mxu0 %v8317_v0  ;;  %7215 = vmatprep.mubr.msk.f32.mxu1 %vm8319_vm4, %v8317_v0 }
 0x258   :  { %6756 = vmatpush1.msk.msra.mxu0 %vm383_vm3, %v8379_v32  ;;  %7214 = vmatpush3.msk.msra.mxu1 %vm383_vm3, %v8400_v50 }
 0x259   :  { %7526 = vmatprep.subr.bf16.mxu0 %v8361_v7  ;;  %7529 = vmatprep.subr.bf16.mxu1 %v8318_v45 }
 0x326   :  { %v793_v63 = vpop.f32.mrb[4].mxu0  ;;  %v864_v22 = vpop.f32.mrb[12].mxu1 }
 0x327   :  { %v7805_v24 = vadd.f32 %v793_v63, %v8466_v20  ;;  %v795_v25 = vpop.f32.mrb[5].mxu0  ;;  %v7208_v26 = vpop.f32.mrb[13].mxu1  ;;  %v882_v36 = vadd.f32 %v864_v22, %v8473_v33 }
 0x328   :  { %v7806_v28 = vadd.f32 %v795_v25, %v8469_v23 }
 0x329   :  { %v6753_v27 = vmul.f32 -1.442695, %v7805_v24 }
 0x32a   :  { %v6754_v29 = vmul.f32 -1.442695, %v7806_v28 }
 0x32b   :  { %7959 = vpow2.f32 %v6753_v27 }
 0x32c   :  { %7961 = vpow2.f32 %v6754_v29 }
 0x335   :  { %v7960_v30 = vpop.eup %7959 }
 0x336   :  { %v872_v31 = vadd.f32 1.0, %v7960_v30  ;;  %v7962_v34 = vpop.eup %7961 }
 0x337   :  { %v879_v35 = vadd.f32 1.0, %v7962_v34 }
 0x338   :  { %7963 = vrcp.f32 %v872_v31 }
 0x339   :  { %7965 = vrcp.f32 %v879_v35 }
 0x342   :  { %v7964_v37 = vpop.eup %7963 }
 0x343   :  { %v883_v38 = vmul.f32 %v7964_v37, %v882_v36  ;;  %v7966_v40 = vpop.eup %7965 }
 0x344   :  { %v886_v41 = vsub.f32 1.0, %v7966_v40  ;;  %v888_v46 = vmul.f32 %v7966_v40, %v722_v17 }
 0x345   :  { %v884_v39 = vadd.f32 %v883_v38, %v8451_v5 }
 0x347   :  { %7967 = vtanh.f32 %v884_v39 }
 0x351   :  { %v7968_v42 = vpop.eup %7967 }
 0x352   :  { %v887_v44 = vmul.f32 %v7968_v42, %v886_v41 }
 0x354   :  { %v889_v47 = vadd.f32 %v888_v46, %v887_v44 }
 0x356   :  { %890 = vst.msk [vmem:[#allocation2 + $0x10] sm:$0xff] %vm379_vm5, %v889_v47  ;;  %6757 = vmatmul.mubr.msk.f32.vlgmr.msra.gmra.mrb[6].mxu0 %vm379_vm5, %v889_v47  ;;  %7216 = vmatmul.mubr.msk.f32.vlgmr.msra.gmra.mrb[14].mxu1 %vm379_vm5, %v889_v47 }
 0x357   :  { %7528 = vmatpush1.bf16.msra.mxu0 %v8363_v11  ;;  %7531 = vmatpush3.bf16.msra.mxu1 %v8389_v43 }
 0x358   :  { %6762 = vmatprep.subr.msk.mxu0 %vm383_vm3, %v8368_v21  ;;  %7222 = vmatprep.subr.mxu1 %v8317_v0 }
 0x359   :  { %1125 = vmatprep.mubr.f32.mxu0 %v8317_v0  ;;  %7224 = vmatprep.mubr.msk.f32.mxu1 %vm8319_vm4, %v8317_v0 }
 0x35b   :  { %6763 = vmatpush1.msk.msra.mxu0 %vm383_vm3, %v8379_v32  ;;  %7223 = vmatpush3.msk.msra.mxu1 %vm383_vm3, %v8400_v50 }
 0x35c   :  { %7533 = vmatprep.subr.bf16.mxu0 %v8361_v7  ;;  %7536 = vmatprep.subr.bf16.mxu1 %v8318_v45 }
 0x429   :  { %v960_v5 = vpop.f32.mrb[6].mxu0  ;;  %v1031_v48 = vpop.f32.mrb[14].mxu1 }
 0x42a   :  { %v7807_v49 = vadd.f32 %v960_v5, %v8466_v20  ;;  %v962_v51 = vpop.f32.mrb[7].mxu0  ;;  %v7217_v52 = vpop.f32.mrb[15].mxu1  ;;  %v1049_v61 = vadd.f32 %v1031_v48, %v8473_v33 }
 0x42b   :  { %v7808_v54 = vadd.f32 %v962_v51, %v8469_v23 }
 0x42c   :  { %v6760_v53 = vmul.f32 -1.442695, %v7807_v49 }
 0x42d   :  { %v6761_v55 = vmul.f32 -1.442695, %v7808_v54 }
 0x42e   :  { %7969 = vpow2.f32 %v6760_v53 }
 0x42f   :  { %7971 = vpow2.f32 %v6761_v55 }
 0x438   :  { %v7970_v56 = vpop.eup %7969 }
 0x439   :  { %v1039_v57 = vadd.f32 1.0, %v7970_v56  ;;  %v7972_v58 = vpop.eup %7971 }
 0x43a   :  { %v1046_v60 = vadd.f32 1.0, %v7972_v58 }
 0x43b   :  { %7973 = vrcp.f32 %v1039_v57 }
 0x43c   :  { %7975 = vrcp.f32 %v1046_v60 }
 0x445   :  { %v7974_v62 = vpop.eup %7973 }
 0x446   :  { %v1050_v1 = vmul.f32 %v7974_v62, %v1049_v61  ;;  %v7976_v4 = vpop.eup %7975 }
 0x447   :  { %v1053_v6 = vsub.f32 1.0, %v7976_v4  ;;  %v1055_v14 = vmul.f32 %v7976_v4, %v889_v47 }
 0x448   :  { %v1051_v2 = vadd.f32 %v1050_v1, %v8449_v3 }
 0x44a   :  { %7977 = vtanh.f32 %v1051_v2 }
 0x454   :  { %v7978_v9 = vpop.eup %7977 }
 0x455   :  { %v1054_v12 = vmul.f32 %v7978_v9, %v1053_v6  ;;  %v1736_v9 = vld [vmem:[#allocation6 + $0x70] sm:$0xff] }
 0x457   :  { %v1056_v16 = vadd.f32 %v1055_v14, %v1054_v12  ;;  %v1739_v12 = vld [vmem:[#allocation6 + $0x88] sm:$0xff] }
 0x458   :  { %v7557_v14 = vpack.c.bf16 %v1739_v12, %v1736_v9 }
 0x459   :  { %1057 = vst.msk [vmem:[#allocation2 + $0x18] sm:$0xff] %vm379_vm5, %v1056_v16  ;;  %6764 = vmatmul.mubr.msk.f32.vlgmr.msra.gmra.mrb[8].mxu0 %vm379_vm5, %v1056_v16  ;;  %7225 = vmatmul.mubr.msk.f32.vlgmr.msra.gmra.mrb[16].mxu1 %vm379_vm5, %v1056_v16 }
 0x45a   :  { %7535 = vmatpush1.bf16.msra.mxu0 %v8363_v11  ;;  %7538 = vmatpush3.bf16.msra.mxu1 %v8389_v43 }
 0x45b   :  { %6769 = vmatprep.subr.msk.mxu0 %vm383_vm3, %v8368_v21  ;;  %7231 = vmatprep.subr.mxu1 %v8317_v0 }
 0x45c   :  { %1292 = vmatprep.mubr.f32.mxu0 %v8317_v0  ;;  %7233 = vmatprep.mubr.msk.f32.mxu1 %vm8319_vm4, %v8317_v0 }
 0x45e   :  { %6770 = vmatpush1.msk.msra.mxu0 %vm383_vm3, %v8379_v32  ;;  %7232 = vmatpush3.msk.msra.mxu1 %vm383_vm3, %v8400_v50 }
 0x45f   :  { %7540 = vmatprep.subr.bf16.mxu0 %v8361_v7  ;;  %7543 = vmatprep.subr.bf16.mxu1 %v8318_v45 }
 0x52c   :  { %v1127_v3 = vpop.f32.mrb[8].mxu0  ;;  %v1198_v17 = vpop.f32.mrb[16].mxu1 }
 0x52d   :  { %v7809_v63 = vadd.f32 %v1127_v3, %v8466_v20  ;;  %v1129_v22 = vpop.f32.mrb[9].mxu0  ;;  %v7226_v24 = vpop.f32.mrb[17].mxu1  ;;  %v1216_v34 = vadd.f32 %v1198_v17, %v8473_v33 }
 0x52e   :  { %v7810_v26 = vadd.f32 %v1129_v22, %v8469_v23 }
 0x52f   :  { %v6767_v25 = vmul.f32 -1.442695, %v7809_v63 }
 0x530   :  { %v6768_v27 = vmul.f32 -1.442695, %v7810_v26 }
 0x531   :  { %7979 = vpow2.f32 %v6767_v25 }
 0x532   :  { %7981 = vpow2.f32 %v6768_v27 }
 0x53b   :  { %v7980_v28 = vpop.eup %7979 }
 0x53c   :  { %v1206_v29 = vadd.f32 1.0, %v7980_v28  ;;  %v7982_v30 = vpop.eup %7981 }
 0x53d   :  { %v1213_v31 = vadd.f32 1.0, %v7982_v30 }
 0x53e   :  { %7983 = vrcp.f32 %v1206_v29 }
 0x53f   :  { %7985 = vrcp.f32 %v1213_v31 }
 0x548   :  { %v7984_v35 = vpop.eup %7983 }
 0x549   :  { %v1217_v36 = vmul.f32 %v7984_v35, %v1216_v34  ;;  %v7986_v38 = vpop.eup %7985 }
 0x54a   :  { %v1220_v39 = vsub.f32 1.0, %v7986_v38  ;;  %v1222_v42 = vmul.f32 %v7986_v38, %v1056_v16 }
 0x54b   :  { %v1218_v37 = vadd.f32 %v1217_v36, %v8455_v10  ;;  %v1734_v36 = vld [vmem:[#allocation6 + $0x60] sm:$0xff] }
 0x54d   :  { %7987 = vtanh.f32 %v1218_v37  ;;  %v1737_v37 = vld [vmem:[#allocation6 + $0x78] sm:$0xff] }
 0x557   :  { %v7988_v40 = vpop.eup %7987 }
 0x558   :  { %v1221_v41 = vmul.f32 %v7988_v40, %v1220_v39 }
 0x55a   :  { %v1223_v44 = vadd.f32 %v1222_v42, %v1221_v41  ;;  %v7555_v41 = vpack.c.bf16 %v1737_v37, %v1734_v36 }
 0x55c   :  { %1224 = vst.msk [vmem:[#allocation2 + $0x20] sm:$0xff] %vm379_vm5, %v1223_v44  ;;  %6771 = vmatmul.mubr.msk.f32.vlgmr.msra.gmra.mrb[10].mxu0 %vm379_vm5, %v1223_v44  ;;  %7234 = vmatmul.mubr.msk.f32.vlgmr.msra.gmra.mrb[18].mxu1 %vm379_vm5, %v1223_v44 }
 0x55d   :  { %7542 = vmatpush1.bf16.msra.mxu0 %v8363_v11  ;;  %7545 = vmatpush3.bf16.msra.mxu1 %v8389_v43 }
 0x55e   :  { %6776 = vmatprep.subr.msk.mxu0 %vm383_vm3, %v8368_v21  ;;  %7240 = vmatprep.subr.mxu1 %v8317_v0 }
 0x55f   :  { %1459 = vmatprep.mubr.f32.mxu0 %v8317_v0  ;;  %7242 = vmatprep.mubr.msk.f32.mxu1 %vm8319_vm4, %v8317_v0 }
 0x561   :  { %6777 = vmatpush1.msk.msra.mxu0 %vm383_vm3, %v8379_v32  ;;  %7241 = vmatpush3.msk.msra.mxu1 %vm383_vm3, %v8400_v50 }
 0x562   :  { %7547 = vmatprep.subr.bf16.mxu0 %v8361_v7  ;;  %7550 = vmatprep.subr.bf16.mxu1 %v8318_v45 }
 0x62f   :  { %v1294_v10 = vpop.f32.mrb[10].mxu0  ;;  %v1365_v46 = vpop.f32.mrb[18].mxu1 }
 0x630   :  { %v7811_v47 = vadd.f32 %v1294_v10, %v8466_v20  ;;  %v1296_v5 = vpop.f32.mrb[11].mxu0  ;;  %v7235_v48 = vpop.f32.mrb[19].mxu1  ;;  %v1383_v7 = vadd.f32 %v1365_v46, %v8473_v33  ;;  %v1726_v10 = vld [vmem:[#allocation2] sm:$0xff] }
 0x631   :  { %v7812_v51 = vadd.f32 %v1296_v5, %v8469_v23  ;;  %v1740_v46 = vld [vmem:[#allocation6 + $0x90] sm:$0xf]  ;;  %v1728_v5 = vld [vmem:[#allocation2 + $0x10] sm:$0xff]  ;;  %v1729_v48 = vld [vmem:[#allocation2 + $0x18] sm:$0xff] }
 0x632   :  { %v6774_v49 = vmul.f32 -1.442695, %v7811_v47  ;;  %v1727_v47 = vld [vmem:[#allocation2 + $0x8] sm:$0xff] }
 0x633   :  { %v6775_v52 = vmul.f32 -1.442695, %v7812_v51 }
 0x634   :  { %7989 = vpow2.f32 %v6774_v49  ;;  %v1730_v49 = vld [vmem:[#allocation2 + $0x20] sm:$0xff] }
 0x635   :  { %7991 = vpow2.f32 %v6775_v52 }
 0x63e   :  { %v7990_v53 = vpop.eup %7989 }
 0x63f   :  { %v1373_v54 = vadd.f32 1.0, %v7990_v53  ;;  %v7992_v55 = vpop.eup %7991  ;;  %v1744_v53 = vld [vmem:[#allocation6 + $0xb0] sm:$0xff] }
 0x640   :  { %v1380_v56 = vadd.f32 1.0, %v7992_v55  ;;  %v1743_v55 = vld [vmem:[#allocation6 + $0xa8] sm:$0xff] }
 0x641   :  { %7993 = vrcp.f32 %v1373_v54  ;;  %v1747_v54 = vld [vmem:[#allocation6 + $0xc8] sm:$0xff] }
 0x642   :  { %7995 = vrcp.f32 %v1380_v56  ;;  %v8635_v56 = vpack.c.bf16 %v1747_v54, %v1744_v53 }
 0x64b   :  { %v7994_v57 = vpop.eup %7993 }
 0x64c   :  { %v1384_v58 = vmul.f32 %v7994_v57, %v1383_v7  ;;  %v7996_v61 = vpop.eup %7995  ;;  %v1746_v7 = vld [vmem:[#allocation6 + $0xc0] sm:$0xff] }
 0x64d   :  { %v1387_v62 = vsub.f32 1.0, %v7996_v61  ;;  %v1389_v4 = vmul.f32 %v7996_v61, %v1223_v44  ;;  %v1741_v44 = vld [vmem:[#allocation6 + $0x98] sm:$0xf]  ;;  %v8637_v57 = vpack.c.bf16 %v1746_v7, %v1743_v55 }
 0x64e   :  { %v1385_v60 = vadd.f32 %v1384_v58, %v8453_v8  ;;  %v1735_v8 = vld [vmem:[#allocation6 + $0x68] sm:$0xff]  ;;  %v8639_v58 = vld [vmem:[#allocation6 + $0xe0] sm:$0xf]  ;;  %v1745_v61 = vld [vmem:[#allocation6 + $0xb8] sm:$0xff] }
 0x650   :  { %7997 = vtanh.f32 %v1385_v60  ;;  %v8645_v60 = vld [vmem:[#allocation6 + $0xd8] sm:$0xf] }
 0x65a   :  { %v7998_v1 = vpop.eup %7997 }
 0x65b   :  { %v1388_v2 = vmul.f32 %v7998_v1, %v1387_v62  ;;  %v1748_v62 = vld [vmem:[#allocation6 + $0xd0] sm:$0xff] }
 0x65c   :  { %v8650_v1 = vpack.c.bf16 %v1748_v62, %v1745_v61 }
 0x65d   :  { %v1390_v6 = vadd.f32 %v1389_v4, %v1388_v2  ;;  %v8654_v2 = vld [vmem:[#allocation6 + $0xe8] sm:$0xf] }
 0x65f   :  { %1391 = vst.msk [vmem:[#allocation2 + $0x28] sm:$0xff] %vm379_vm5, %v1390_v6  ;;  %6778 = vmatmul.mubr.msk.f32.vlgmr.msra.gmra.mrb[12].mxu0 %vm379_vm5, %v1390_v6  ;;  %7243 = vmatmul.mubr.msk.f32.vlgmr.msra.gmra.mrb[20].mxu1 %vm379_vm5, %v1390_v6 }
 0x660   :  { %7549 = vmatpush1.bf16.msra.mxu0 %v8363_v11  ;;  %7552 = vmatpush3.bf16.msra.mxu1 %v8389_v43  ;;  %v1738_v11 = vld [vmem:[#allocation6 + $0x80] sm:$0xff] }
 0x661   :  { %6783 = vmatprep.subr.msk.mxu0 %vm383_vm3, %v8368_v21  ;;  %7249 = vmatprep.subr.mxu1 %v8317_v0  ;;  %v7553_v43 = vpack.c.bf16 %v1738_v11, %v1735_v8 }
 0x662   :  { %1626 = vmatprep.mubr.f32.mxu0 %v8317_v0  ;;  %7251 = vmatprep.mubr.msk.f32.mxu1 %vm8319_vm4, %v8317_v0 }
 0x664   :  { %6784 = vmatpush1.msk.msra.mxu0 %vm383_vm3, %v8379_v32  ;;  %7250 = vmatpush3.msk.msra.mxu1 %vm383_vm3, %v8400_v50 }
 0x665   :  { %7554 = vmatprep.subr.bf16.mxu1 %v7553_v43  ;;  %7558 = vmatprep.subr.bf16.mxu0 %v7557_v14 }
 0x666   :  { %v1731_v51 = vld [vmem:[#allocation2 + $0x28] sm:$0xff] }
 0x732   :  { %v1461_v21 = vpop.f32.mrb[12].mxu0  ;;  %v1532_v16 = vpop.f32.mrb[20].mxu1 }
 0x733   :  { %v7813_v3 = vadd.f32 %v1461_v21, %v8466_v20  ;;  %v1463_v17 = vpop.f32.mrb[13].mxu0  ;;  %v7244_v63 = vpop.f32.mrb[21].mxu1  ;;  %v1550_v28 = vadd.f32 %v1532_v16, %v8473_v33 }
 0x734   :  { %v7814_v32 = vadd.f32 %v1463_v17, %v8469_v23 }
 0x735   :  { %v6781_v22 = vmul.f32 -1.442695, %v7813_v3 }
 0x736   :  { %v6782_v24 = vmul.f32 -1.442695, %v7814_v32 }
 0x737   :  { %7999 = vpow2.f32 %v6781_v22 }
 0x738   :  { %8001 = vpow2.f32 %v6782_v24 }
 0x741   :  { %v8000_v50 = vpop.eup %7999 }
 0x742   :  { %v1540_v25 = vadd.f32 1.0, %v8000_v50  ;;  %v8002_v26 = vpop.eup %8001 }
 0x743   :  { %v1547_v27 = vadd.f32 1.0, %v8002_v26 }
 0x744   :  { %8003 = vrcp.f32 %v1540_v25 }
 0x745   :  { %8005 = vrcp.f32 %v1547_v27 }
 0x74e   :  { %v8004_v29 = vpop.eup %8003 }
 0x74f   :  { %v1551_v30 = vmul.f32 %v8004_v29, %v1550_v28  ;;  %v8006_v34 = vpop.eup %8005 }
 0x750   :  { %v1554_v35 = vsub.f32 1.0, %v8006_v34  ;;  %v1556_v40 = vmul.f32 %v8006_v34, %v1390_v6 }
 0x751   :  { %v1552_v31 = vadd.f32 %v1551_v30, %v8459_v15  ;;  %v1742_v15 = vld [vmem:[#allocation6 + $0xa0] sm:$0xf] }
 0x753   :  { %8007 = vtanh.f32 %v1552_v31 }
 0x75d   :  { %v8008_v38 = vpop.eup %8007 }
 0x75e   :  { %v1555_v39 = vmul.f32 %v8008_v38, %v1554_v35 }
 0x760   :  { %v8600_v42 = vadd.f32 %v1556_v40, %v1555_v39 }
 0x762   :  { %1558 = vst.msk [vmem:[#allocation2 + $0x30] sm:$0xff] %vm379_vm5, %v8600_v42  ;;  %6785 = vmatmul.mubr.msk.f32.vlgmr.msra.gmra.mrb[14].mxu0 %vm379_vm5, %v8600_v42  ;;  %7252 = vmatmul.mubr.msk.f32.vlgmr.msra.gmra.mrb[22].mxu1 %vm379_vm5, %v8600_v42 }
 0x763   :  { %7556 = vmatpush1.bf16.msra.mxu1 %v7555_v41  ;;  %7560 = vmatpush3.bf16.msra.mxu0 %v7557_v14 }
 0x764   :  { %7260 = vmatprep.mubr.msk.f32.mxu0 %vm379_vm5, %v1726_v10  ;;  %6790 = vmatprep.subr.msk.mxu1 %vm383_vm3, %v1741_v44 }
 0x765   :  { %7258 = vmatprep.subr.msk.mxu0 %vm383_vm3, %v1742_v15  ;;  %1868 = vmatprep.mubr.f32.mxu1 %v8317_v0 }
 0x767   :  { %6791 = vmatpush1.msk.msra.mxu1 %vm383_vm3, %v1740_v46  ;;  %7259 = vmatpush3.msk.msra.mxu0 %vm383_vm3, %v1742_v15 }
 0x768   :  { %6792 = vmatmul.mubr.msk.f32.vlgmr.msra.gmra.mrb[24].mxu1 %vm379_vm5, %v1726_v10  ;;  %7261 = vmatmul.mubr.msk.f32.vlgmr.msra.gmra.mrb[16].mxu0 %vm379_vm5, %v1727_v47 }
 0x769   :  { %7263 = vmatprep.mubr.msk.f32.mxu0 %vm379_vm5, %v1728_v5  ;;  %1874 = vmatprep.mubr.f32.mxu1 %v8317_v0  ;;  %v1732_v52 = vld [vmem:[#allocation2 + $0x30] sm:$0xff] }
 0x76a   :  { %7565 = vmatprep.subr.bf16.mxu0 %v8318_v45  ;;  %7562 = vmatprep.subr.bf16.mxu1 %v8635_v56 }
 0x76b   :  { %7564 = vmatpush1.bf16.msra.mxu1 %v8637_v57  ;;  %7567 = vmatpush3.bf16.msra.mxu0 %v8650_v1 }
 0x76c   :  { %6793 = vmatmul.mubr.msk.f32.gmra.mrb[26].mxu1 %vm379_vm5, %v1727_v47  ;;  %7264 = vmatmul.mubr.msk.f32.gmra.mrb[18].mxu0 %vm379_vm5, %v1729_v48 }
 0x76d   :  { %7266 = vmatprep.mubr.msk.f32.mxu0 %vm379_vm5, %v1730_v49  ;;  %1880 = vmatprep.mubr.f32.mxu1 %v8317_v0 }
 0x76e   :  { %6809 = vmatprep.subr.msk.mxu1 %vm383_vm3, %v8639_v58  ;;  %7276 = vmatprep.subr.mxu0 %v8317_v0 }
 0x76f   :  { %6810 = vmatpush1.msk.msra.mxu1 %vm383_vm3, %v8645_v60  ;;  %7277 = vmatpush3.msk.msra.mxu0 %vm383_vm3, %v8654_v2 }
 0x770   :  { %6794 = vmatmul.mubr.msk.f32.gmra.mrb[28].mxu1 %vm379_vm5, %v1728_v5  ;;  %7267 = vmatmul.mubr.msk.f32.gmra.mrb[20].mxu0 %vm379_vm5, %v1731_v51 }
 0x771   :  { %7269 = vmatprep.mubr.msk.f32.mxu0 %vm379_vm5, %v1732_v52  ;;  %1886 = vmatprep.mubr.f32.mxu1 %v8317_v0 }
 0x772   :  { %7569 = vmatprep.subr.bf16.mxu1 %v8635_v56  ;;  %7572 = vmatprep.subr.bf16.mxu0 %v8318_v45 }
 0x774   :  { %6795 = vmatmul.mubr.msk.f32.gmra.mrb[30].mxu1 %vm379_vm5, %v1729_v48 }
 0x775   :  { %1892 = vmatprep.mubr.f32.mxu1 %v8317_v0 }
 0x778   :  { %6796 = vmatmul.mubr.msk.f32.gmra.mrb[32].mxu1 %vm379_vm5, %v1730_v49 }
 0x779   :  { %1898 = vmatprep.mubr.f32.mxu1 %v8317_v0 }
 0x77c   :  { %6797 = vmatmul.mubr.msk.f32.gmra.mrb[34].mxu1 %vm379_vm5, %v1731_v51  ;;  %v8710_v51 = vld [vmem:[#allocation6 + $0x1cb] ss:$0 sm:$0xff] }
 0x77d   :  { %1904 = vmatprep.mubr.f32.mxu1 %v8317_v0 }
 0x780   :  { %6798 = vmatmul.mubr.msk.f32.gmra.mrb[36].mxu1 %vm379_vm5, %v1732_v52 }
 0x781   :  { %1910 = vmatprep.mubr.f32.mxu1 %v8317_v0 }
 0x835   :  { %v1628_v4 = vpop.f32.mrb[14].mxu0  ;;  %v1699_v6 = vpop.f32.mrb[22].mxu1 }
 0x836   :  { %v7815_v8 = vadd.f32 %v1628_v4, %v8466_v20  ;;  %v1630_v11 = vpop.f32.mrb[15].mxu0  ;;  %v7253_v9 = vpop.f32.mrb[23].mxu1  ;;  %v1717_v50 = vadd.f32 %v1699_v6, %v8473_v33 }
 0x837   :  { %v7816_v12 = vadd.f32 %v1630_v11, %v8469_v23 }
 0x838   :  { %v6788_v43 = vmul.f32 -1.442695, %v7815_v8 }
 0x839   :  { %v6789_v16 = vmul.f32 -1.442695, %v7816_v12 }
 0x83a   :  { %8009 = vpow2.f32 %v6788_v43 }
 0x83b   :  { %v8661_v14 = vpop.f32.mrb[16].mxu0  ;;  %8011 = vpow2.f32 %v6789_v16 }
 0x83c   :  { %v8663_v21 = vpop.f32.mrb[17].mxu0 }
 0x83f   :  { %v8665_v3 = vpop.f32.mrb[18].mxu0 }
 0x840   :  { %v8667_v17 = vpop.f32.mrb[19].mxu0 }
 0x843   :  { %v8669_v63 = vpop.f32.mrb[20].mxu0 }
 0x844   :  { %v8010_v22 = vpop.eup %8009  ;;  %v8671_v20 = vpop.f32.mrb[21].mxu0 }
 0x845   :  { %v1707_v32 = vadd.f32 1.0, %v8010_v22  ;;  %v8012_v24 = vpop.eup %8011 }
 0x846   :  { %v1714_v23 = vadd.f32 1.0, %v8012_v24 }
 0x847   :  { %8013 = vrcp.f32 %v1707_v32 }
 0x848   :  { %8015 = vrcp.f32 %v1714_v23 }
 0x851   :  { %v8014_v25 = vpop.eup %8013 }
 0x852   :  { %v1718_v26 = vmul.f32 %v8014_v25, %v1717_v50  ;;  %v8016_v28 = vpop.eup %8015 }
 0x853   :  { %v1721_v29 = vsub.f32 1.0, %v8016_v28  ;;  %v1723_v34 = vmul.f32 %v8016_v28, %v8600_v42 }
 0x854   :  { %v1719_v27 = vadd.f32 %v1718_v26, %v8457_v13  ;;  %v1753_v13 = vld [vmem:[#allocation6 + $0x1ca] ss:$8 sm:$0x7] }
 0x855   :  { %v8703_v38 = vrot.slane %v1753_v13, %v8461_v18  ;;  %v8706_v40 = vrot.slane %v1753_v13, %v8463_v19  ;;  %v8713_v52 = vrot.slane %v1753_v13, %v8444_v59 }
 0x856   :  { %8017 = vtanh.f32 %v1719_v27 }
 0x857   :  { %v1984_v7 = vadd.f32 %v8663_v21, %v8713_v52 }
 0x860   :  { %v8018_v30 = vpop.eup %8017 }
 0x861   :  { %v1722_v31 = vmul.f32 %v8018_v30, %v1721_v29 }
 0x863   :  { %v1724_v35 = vadd.f32 %v1723_v34, %v1722_v31  ;;  %v1989_v31 = vadd.f32 %v8661_v14, %v8713_v52 }
 0x865   :  { %1725 = vst.msk [vmem:[#allocation2 + $0x38] sm:$0xff] %vm379_vm5, %v1724_v35 }
 0x86c   :  { %v1733_v36 = vld [vmem:[#allocation2 + $0x38] sm:$0xff] }
 0x86d   :  { %6799 = vmatmul.mubr.msk.f32.gmra.mrb[38].mxu1 %vm379_vm5, %v1733_v36  ;;  %7270 = vmatmul.mubr.msk.f32.gmra.mrb[22].mxu0 %vm379_vm5, %v1733_v36 }
 0x86e   :  { %2095 = vmatprep.mubr.f32.mxu1 %v8317_v0  ;;  %7278 = vmatprep.mubr.msk.f32.mxu0 %vm8319_vm4, %v8317_v0 }
 0x871   :  { %2096 = vmatmul.mubr.f32.vlgmr.msra.gmra.mrb[24].mxu1 %v8317_v0  ;;  %7279 = vmatmul.mubr.f32.vlgmr.msra.gmra.mrb[24].mxu0 %v8317_v0 }
 0x872   :  { %7571 = vmatpush1.bf16.msra.mxu1 %v8637_v57  ;;  %7574 = vmatpush3.bf16.msra.mxu0 %v8650_v1 }
 0x873   :  { %6814 = vmatprep.subr.msk.mxu1 %vm383_vm3, %v8639_v58  ;;  %7285 = vmatprep.subr.mxu0 %v8317_v0 }
 0x874   :  { %2262 = vmatprep.mubr.f32.mxu1 %v8317_v0  ;;  %7287 = vmatprep.mubr.msk.f32.mxu0 %vm8319_vm4, %v8317_v0 }
 0x876   :  { %6815 = vmatpush1.msk.msra.mxu1 %vm383_vm3, %v8645_v60  ;;  %7286 = vmatpush3.msk.msra.mxu0 %vm383_vm3, %v8654_v2 }
 0x877   :  { %7576 = vmatprep.subr.bf16.mxu1 %v8635_v56  ;;  %7579 = vmatprep.subr.bf16.mxu0 %v8318_v45 }
 0x940   :  { %v8698_v33 = vpop.f32.mrb[22].mxu0 }
 0x941   :  { %v8700_v37 = vpop.f32.mrb[23].mxu0 }
 0x944   :  { %v2097_v39 = vpop.f32.mrb[24].mxu1  ;;  %v2168_v41 = vpop.f32.mrb[24].mxu0 }
 0x945   :  { %v7817_v42 = vadd.f32 %v2097_v39, %v8703_v38  ;;  %v2099_v44 = vpop.f32.mrb[25].mxu1  ;;  %v7280_v15 = vpop.f32.mrb[25].mxu0  ;;  %v2186_v54 = vadd.f32 %v2168_v41, %v8710_v51 }
 0x946   :  { %v7818_v46 = vadd.f32 %v2099_v44, %v8706_v40 }
 0x947   :  { %v6812_v10 = vmul.f32 -1.442695, %v7817_v42 }
 0x948   :  { %v6813_v47 = vmul.f32 -1.442695, %v7818_v46 }
 0x949   :  { %8019 = vpow2.f32 %v6812_v10 }
 0x94a   :  { %8021 = vpow2.f32 %v6813_v47 }
 0x953   :  { %v8020_v5 = vpop.eup %8019 }
 0x954   :  { %v2176_v48 = vadd.f32 1.0, %v8020_v5  ;;  %v8022_v49 = vpop.eup %8021 }
 0x955   :  { %v2183_v53 = vadd.f32 1.0, %v8022_v49 }
 0x956   :  { %8023 = vrcp.f32 %v2176_v48 }
 0x957   :  { %8025 = vrcp.f32 %v2183_v53 }
 0x960   :  { %v8024_v55 = vpop.eup %8023 }
 0x961   :  { %v2187_v61 = vmul.f32 %v8024_v55, %v2186_v54  ;;  %v8026_v4 = vpop.eup %8025 }
 0x962   :  { %v2190_v6 = vsub.f32 1.0, %v8026_v4  ;;  %v2192_v9 = vmul.f32 0.0, %v8026_v4  ;;  %v1994_v4 = vadd.f32 %v8667_v17, %v8713_v52 }
 0x963   :  { %v2188_v62 = vadd.f32 %v2187_v61, %v1984_v7 }
 0x965   :  { %8027 = vtanh.f32 %v2188_v62 }
 0x96f   :  { %v8028_v8 = vpop.eup %8027 }
 0x970   :  { %v2191_v11 = vmul.f32 %v8028_v8, %v2190_v6 }
 0x972   :  { %v2193_v43 = vadd.f32 %v2192_v9, %v2191_v11 }
 0x974   :  { %2194 = vst.msk [vmem:[#allocation3] sm:$0xff] %vm379_vm5, %v2193_v43  ;;  %6816 = vmatmul.mubr.msk.f32.vlgmr.msra.gmra.mrb[26].mxu1 %vm379_vm5, %v2193_v43  ;;  %7288 = vmatmul.mubr.msk.f32.vlgmr.msra.gmra.mrb[26].mxu0 %vm379_vm5, %v2193_v43 }
 0x975   :  { %7578 = vmatpush1.bf16.msra.mxu1 %v8637_v57  ;;  %7581 = vmatpush3.bf16.msra.mxu0 %v8650_v1 }
 0x976   :  { %6821 = vmatprep.subr.msk.mxu1 %vm383_vm3, %v8639_v58  ;;  %7294 = vmatprep.subr.mxu0 %v8317_v0 }
 0x977   :  { %2429 = vmatprep.mubr.f32.mxu1 %v8317_v0  ;;  %7296 = vmatprep.mubr.msk.f32.mxu0 %vm8319_vm4, %v8317_v0 }
 0x979   :  { %6822 = vmatpush1.msk.msra.mxu1 %vm383_vm3, %v8645_v60  ;;  %7295 = vmatpush3.msk.msra.mxu0 %vm383_vm3, %v8654_v2 }
 0x97a   :  { %7583 = vmatprep.subr.bf16.mxu1 %v8635_v56  ;;  %7586 = vmatprep.subr.bf16.mxu0 %v8318_v45 }
 0xa47   :  { %v2264_v12 = vpop.f32.mrb[26].mxu1  ;;  %v2335_v21 = vpop.f32.mrb[26].mxu0 }
 0xa48   :  { %v7819_v16 = vadd.f32 %v2264_v12, %v8703_v38  ;;  %v2266_v22 = vpop.f32.mrb[27].mxu1  ;;  %v7289_v32 = vpop.f32.mrb[27].mxu0  ;;  %v2353_v29 = vadd.f32 %v2335_v21, %v8710_v51 }
 0xa49   :  { %v7820_v23 = vadd.f32 %v2266_v22, %v8706_v40 }
 0xa4a   :  { %v6819_v24 = vmul.f32 -1.442695, %v7819_v16 }
 0xa4b   :  { %v6820_v50 = vmul.f32 -1.442695, %v7820_v23 }
 0xa4c   :  { %8029 = vpow2.f32 %v6819_v24 }
 0xa4d   :  { %8031 = vpow2.f32 %v6820_v50 }
 0xa56   :  { %v8030_v25 = vpop.eup %8029 }
 0xa57   :  { %v2343_v26 = vadd.f32 1.0, %v8030_v25  ;;  %v8032_v27 = vpop.eup %8031 }
 0xa58   :  { %v2350_v28 = vadd.f32 1.0, %v8032_v27 }
 0xa59   :  { %8033 = vrcp.f32 %v2343_v26 }
 0xa5a   :  { %8035 = vrcp.f32 %v2350_v28 }
 0xa63   :  { %v8034_v30 = vpop.eup %8033 }
 0xa64   :  { %v2354_v34 = vmul.f32 %v8034_v30, %v2353_v29  ;;  %v8036_v36 = vpop.eup %8035 }
 0xa65   :  { %v2357_v13 = vsub.f32 1.0, %v8036_v36  ;;  %v2359_v42 = vmul.f32 %v8036_v36, %v2193_v43 }
 0xa66   :  { %v2355_v35 = vadd.f32 %v2354_v34, %v1989_v31 }
 0xa68   :  { %8037 = vtanh.f32 %v2355_v35  ;;  %v1999_v35 = vadd.f32 %v8665_v3, %v8713_v52 }
 0xa72   :  { %v8038_v39 = vpop.eup %8037 }
 0xa73   :  { %v2358_v41 = vmul.f32 %v8038_v39, %v2357_v13 }
 0xa75   :  { %v2360_v44 = vadd.f32 %v2359_v42, %v2358_v41 }
 0xa77   :  { %2361 = vst.msk [vmem:[#allocation3 + $0x8] sm:$0xff] %vm379_vm5, %v2360_v44  ;;  %6823 = vmatmul.mubr.msk.f32.vlgmr.msra.gmra.mrb[28].mxu1 %vm379_vm5, %v2360_v44  ;;  %7297 = vmatmul.mubr.msk.f32.vlgmr.msra.gmra.mrb[28].mxu0 %vm379_vm5, %v2360_v44 }
 0xa78   :  { %7585 = vmatpush1.bf16.msra.mxu1 %v8637_v57  ;;  %7588 = vmatpush3.bf16.msra.mxu0 %v8650_v1 }
 0xa79   :  { %6828 = vmatprep.subr.msk.mxu1 %vm383_vm3, %v8639_v58  ;;  %7303 = vmatprep.subr.mxu0 %v8317_v0 }
 0xa7a   :  { %2596 = vmatprep.mubr.f32.mxu1 %v8317_v0  ;;  %7305 = vmatprep.mubr.msk.f32.mxu0 %vm8319_vm4, %v8317_v0 }
 0xa7c   :  { %6829 = vmatpush1.msk.msra.mxu1 %vm383_vm3, %v8645_v60  ;;  %7304 = vmatpush3.msk.msra.mxu0 %vm383_vm3, %v8654_v2 }
 0xa7d   :  { %7590 = vmatprep.subr.bf16.mxu1 %v8635_v56  ;;  %7593 = vmatprep.subr.bf16.mxu0 %v8318_v45 }
 0xb4a   :  { %v2431_v14 = vpop.f32.mrb[28].mxu1  ;;  %v2502_v15 = vpop.f32.mrb[28].mxu0 }
 0xb4b   :  { %v7821_v10 = vadd.f32 %v2431_v14, %v8703_v38  ;;  %v2433_v46 = vpop.f32.mrb[29].mxu1  ;;  %v7298_v47 = vpop.f32.mrb[29].mxu0  ;;  %v2520_v61 = vadd.f32 %v2502_v15, %v8710_v51 }
 0xb4c   :  { %v7822_v48 = vadd.f32 %v2433_v46, %v8706_v40 }
 0xb4d   :  { %v6826_v5 = vmul.f32 -1.442695, %v7821_v10 }
 0xb4e   :  { %v6827_v49 = vmul.f32 -1.442695, %v7822_v48 }
 0xb4f   :  { %8039 = vpow2.f32 %v6826_v5 }
 0xb50   :  { %8041 = vpow2.f32 %v6827_v49 }
 0xb59   :  { %v8040_v53 = vpop.eup %8039 }
 0xb5a   :  { %v2510_v54 = vadd.f32 1.0, %v8040_v53  ;;  %v8042_v55 = vpop.eup %8041 }
 0xb5b   :  { %v2517_v7 = vadd.f32 1.0, %v8042_v55 }
 0xb5c   :  { %8043 = vrcp.f32 %v2510_v54 }
 0xb5d   :  { %8045 = vrcp.f32 %v2517_v7 }
 0xb66   :  { %v8044_v62 = vpop.eup %8043 }
 0xb67   :  { %v2521_v6 = vmul.f32 %v8044_v62, %v2520_v61  ;;  %v8046_v11 = vpop.eup %8045 }
 0xb68   :  { %v2524_v9 = vsub.f32 1.0, %v8046_v11  ;;  %v2526_v21 = vmul.f32 %v8046_v11, %v2360_v44 }
 0xb69   :  { %v2522_v8 = vadd.f32 %v2521_v6, %v1994_v4  ;;  %v2004_v6 = vadd.f32 %v8671_v20, %v8713_v52 }
 0xb6b   :  { %8047 = vtanh.f32 %v2522_v8 }
 0xb75   :  { %v8048_v43 = vpop.eup %8047 }
 0xb76   :  { %v2525_v12 = vmul.f32 %v8048_v43, %v2524_v9 }
 0xb78   :  { %v2527_v16 = vadd.f32 %v2526_v21, %v2525_v12 }
 0xb7a   :  { %2528 = vst.msk [vmem:[#allocation3 + $0x10] sm:$0xff] %vm379_vm5, %v2527_v16  ;;  %6830 = vmatmul.mubr.msk.f32.vlgmr.msra.gmra.mrb[30].mxu1 %vm379_vm5, %v2527_v16  ;;  %7306 = vmatmul.mubr.msk.f32.vlgmr.msra.gmra.mrb[30].mxu0 %vm379_vm5, %v2527_v16 }
 0xb7b   :  { %7592 = vmatpush1.bf16.msra.mxu1 %v8637_v57  ;;  %7595 = vmatpush3.bf16.msra.mxu0 %v8650_v1 }
 0xb7c   :  { %6835 = vmatprep.subr.msk.mxu1 %vm383_vm3, %v8639_v58  ;;  %7312 = vmatprep.subr.mxu0 %v8317_v0 }
 0xb7d   :  { %2763 = vmatprep.mubr.f32.mxu1 %v8317_v0  ;;  %7314 = vmatprep.mubr.msk.f32.mxu0 %vm8319_vm4, %v8317_v0 }
 0xb7f   :  { %6836 = vmatpush1.msk.msra.mxu1 %vm383_vm3, %v8645_v60  ;;  %7313 = vmatpush3.msk.msra.mxu0 %vm383_vm3, %v8654_v2 }
 0xb80   :  { %7597 = vmatprep.subr.bf16.mxu1 %v8635_v56  ;;  %7600 = vmatprep.subr.bf16.mxu0 %v8318_v45 }
 0xc4d   :  { %v2598_v17 = vpop.f32.mrb[30].mxu1  ;;  %v2669_v22 = vpop.f32.mrb[30].mxu0 }
 0xc4e   :  { %v7823_v32 = vadd.f32 %v2598_v17, %v8703_v38  ;;  %v2600_v24 = vpop.f32.mrb[31].mxu1  ;;  %v7307_v23 = vpop.f32.mrb[31].mxu0  ;;  %v2687_v31 = vadd.f32 %v2669_v22, %v8710_v51 }
 0xc4f   :  { %v7824_v25 = vadd.f32 %v2600_v24, %v8706_v40 }
 0xc50   :  { %v6833_v50 = vmul.f32 -1.442695, %v7823_v32 }
 0xc51   :  { %v6834_v26 = vmul.f32 -1.442695, %v7824_v25 }
 0xc52   :  { %8049 = vpow2.f32 %v6833_v50 }
 0xc53   :  { %8051 = vpow2.f32 %v6834_v26 }
 0xc5c   :  { %v8050_v27 = vpop.eup %8049 }
 0xc5d   :  { %v2677_v28 = vadd.f32 1.0, %v8050_v27  ;;  %v8052_v29 = vpop.eup %8051 }
 0xc5e   :  { %v2684_v30 = vadd.f32 1.0, %v8052_v29 }
 0xc5f   :  { %8053 = vrcp.f32 %v2677_v28 }
 0xc60   :  { %8055 = vrcp.f32 %v2684_v30 }
 0xc69   :  { %v8054_v34 = vpop.eup %8053 }
 0xc6a   :  { %v2688_v36 = vmul.f32 %v8054_v34, %v2687_v31  ;;  %v8056_v39 = vpop.eup %8055  ;;  %v2009_v34 = vadd.f32 %v8669_v63, %v8713_v52  ;;  %v3373_v63 = vld [vmem:[#allocation6 + $0xf8] sm:$0xff] }
 0xc6b   :  { %v2691_v41 = vsub.f32 1.0, %v8056_v39  ;;  %v2693_v14 = vmul.f32 %v8056_v39, %v2527_v16 }
 0xc6c   :  { %v2689_v13 = vadd.f32 %v2688_v36, %v1999_v35 }
 0xc6e   :  { %8057 = vtanh.f32 %v2689_v13 }
 0xc78   :  { %v8058_v42 = vpop.eup %8057 }
 0xc79   :  { %v2692_v44 = vmul.f32 %v8058_v42, %v2691_v41 }
 0xc7b   :  { %v2694_v15 = vadd.f32 %v2693_v14, %v2692_v44 }
 0xc7d   :  { %2695 = vst.msk [vmem:[#allocation3 + $0x18] sm:$0xff] %vm379_vm5, %v2694_v15  ;;  %6837 = vmatmul.mubr.msk.f32.vlgmr.msra.gmra.mrb[32].mxu1 %vm379_vm5, %v2694_v15  ;;  %7315 = vmatmul.mubr.msk.f32.vlgmr.msra.gmra.mrb[32].mxu0 %vm379_vm5, %v2694_v15 }
 0xc7e   :  { %7599 = vmatpush1.bf16.msra.mxu1 %v8637_v57  ;;  %7602 = vmatpush3.bf16.msra.mxu0 %v8650_v1 }
 0xc7f   :  { %6842 = vmatprep.subr.msk.mxu1 %vm383_vm3, %v8639_v58  ;;  %7321 = vmatprep.subr.mxu0 %v8317_v0 }
 0xc80   :  { %2930 = vmatprep.mubr.f32.mxu1 %v8317_v0  ;;  %7323 = vmatprep.mubr.msk.f32.mxu0 %vm8319_vm4, %v8317_v0 }
 0xc82   :  { %6843 = vmatpush1.msk.msra.mxu1 %vm383_vm3, %v8645_v60  ;;  %7322 = vmatpush3.msk.msra.mxu0 %vm383_vm3, %v8654_v2 }
 0xc83   :  { %7604 = vmatprep.subr.bf16.mxu1 %v8635_v56  ;;  %7607 = vmatprep.subr.bf16.mxu0 %v8318_v45 }
 0xd50   :  { %v2765_v3 = vpop.f32.mrb[32].mxu1  ;;  %v2836_v10 = vpop.f32.mrb[32].mxu0 }
 0xd51   :  { %v7825_v46 = vadd.f32 %v2765_v3, %v8703_v38  ;;  %v2767_v47 = vpop.f32.mrb[33].mxu1  ;;  %v7316_v5 = vpop.f32.mrb[33].mxu0  ;;  %v2854_v62 = vadd.f32 %v2836_v10, %v8710_v51  ;;  %v3377_v3 = vld [vmem:[#allocation6 + $0x118] sm:$0xff] }
 0xd52   :  { %v7826_v49 = vadd.f32 %v2767_v47, %v8706_v40 }
 0xd53   :  { %v6840_v48 = vmul.f32 -1.442695, %v7825_v46 }
 0xd54   :  { %v6841_v53 = vmul.f32 -1.442695, %v7826_v49 }
 0xd55   :  { %8059 = vpow2.f32 %v6840_v48 }
 0xd56   :  { %8061 = vpow2.f32 %v6841_v53 }
 0xd5f   :  { %v8060_v54 = vpop.eup %8059 }
 0xd60   :  { %v2844_v55 = vadd.f32 1.0, %v8060_v54  ;;  %v8062_v7 = vpop.eup %8061 }
 0xd61   :  { %v2851_v61 = vadd.f32 1.0, %v8062_v7 }
 0xd62   :  { %8063 = vrcp.f32 %v2844_v55 }
 0xd63   :  { %8065 = vrcp.f32 %v2851_v61 }
 0xd6c   :  { %v8064_v4 = vpop.eup %8063 }
 0xd6d   :  { %v2855_v8 = vmul.f32 %v8064_v4, %v2854_v62  ;;  %v8066_v9 = vpop.eup %8065  ;;  %v2014_v4 = vadd.f32 %v8700_v37, %v8713_v52  ;;  %v3380_v37 = vld [vmem:[#allocation6 + $0x130] sm:$0xf] }
 0xd6e   :  { %v2858_v43 = vsub.f32 1.0, %v8066_v9  ;;  %v2860_v16 = vmul.f32 %v8066_v9, %v2694_v15  ;;  %v3374_v15 = vld [vmem:[#allocation6 + $0x100] sm:$0xff] }
 0xd6f   :  { %v2856_v11 = vadd.f32 %v2855_v8, %v2004_v6  ;;  %v7621_v10 = vpack.c.bf16 %v3377_v3, %v3374_v15 }
 0xd71   :  { %8067 = vtanh.f32 %v2856_v11 }
 0xd7b   :  { %v8068_v12 = vpop.eup %8067 }
 0xd7c   :  { %v2859_v21 = vmul.f32 %v8068_v12, %v2858_v43  ;;  %v3372_v43 = vld [vmem:[#allocation6 + $0xf0] sm:$0xff]  ;;  %v3375_v12 = vld [vmem:[#allocation6 + $0x108] sm:$0xff] }
 0xd7e   :  { %v2861_v17 = vadd.f32 %v2860_v16, %v2859_v21 }
 0xd80   :  { %2862 = vst.msk [vmem:[#allocation3 + $0x20] sm:$0xff] %vm379_vm5, %v2861_v17  ;;  %6844 = vmatmul.mubr.msk.f32.vlgmr.msra.gmra.mrb[34].mxu1 %vm379_vm5, %v2861_v17  ;;  %7324 = vmatmul.mubr.msk.f32.vlgmr.msra.gmra.mrb[34].mxu0 %vm379_vm5, %v2861_v17 }
 0xd81   :  { %7606 = vmatpush1.bf16.msra.mxu1 %v8637_v57  ;;  %7609 = vmatpush3.bf16.msra.mxu0 %v8650_v1 }
 0xd82   :  { %6849 = vmatprep.subr.msk.mxu1 %vm383_vm3, %v8639_v58  ;;  %7330 = vmatprep.subr.mxu0 %v8317_v0 }
 0xd83   :  { %3097 = vmatprep.mubr.f32.mxu1 %v8317_v0  ;;  %7332 = vmatprep.mubr.msk.f32.mxu0 %vm8319_vm4, %v8317_v0 }
 0xd85   :  { %6850 = vmatpush1.msk.msra.mxu1 %vm383_vm3, %v8645_v60  ;;  %7331 = vmatpush3.msk.msra.mxu0 %vm383_vm3, %v8654_v2 }
 0xd86   :  { %7611 = vmatprep.subr.bf16.mxu1 %v8635_v56  ;;  %7614 = vmatprep.subr.bf16.mxu0 %v8318_v45 }
 0xe53   :  { %v2932_v20 = vpop.f32.mrb[34].mxu1  ;;  %v3003_v22 = vpop.f32.mrb[34].mxu0 }
 0xe54   :  { %v7827_v32 = vadd.f32 %v2932_v20, %v8703_v38  ;;  %v2934_v24 = vpop.f32.mrb[35].mxu1  ;;  %v7325_v23 = vpop.f32.mrb[35].mxu0  ;;  %v3021_v56 = vadd.f32 %v3003_v22, %v8710_v51  ;;  %v7619_v20 = vpack.c.bf16 %v3375_v12, %v3372_v43 }
 0xe55   :  { %v7828_v25 = vadd.f32 %v2934_v24, %v8706_v40  ;;  %v3364_v24 = vld [vmem:[#allocation3] sm:$0xff]  ;;  %v3378_v23 = vld [vmem:[#allocation6 + $0x120] sm:$0xf] }
 0xe56   :  { %v6847_v50 = vmul.f32 -1.442695, %v7827_v32  ;;  %v3379_v32 = vld [vmem:[#allocation6 + $0x128] sm:$0xf] }
 0xe57   :  { %v6848_v26 = vmul.f32 -1.442695, %v7828_v25  ;;  %v3366_v25 = vld [vmem:[#allocation3 + $0x10] sm:$0xff] }
 0xe58   :  { %8069 = vpow2.f32 %v6847_v50  ;;  %v3365_v50 = vld [vmem:[#allocation3 + $0x8] sm:$0xff] }
 0xe59   :  { %8071 = vpow2.f32 %v6848_v26  ;;  %v3367_v26 = vld [vmem:[#allocation3 + $0x18] sm:$0xff] }
 0xe62   :  { %v8070_v27 = vpop.eup %8069 }
 0xe63   :  { %v3011_v28 = vadd.f32 1.0, %v8070_v27  ;;  %v8072_v29 = vpop.eup %8071  ;;  %v3368_v27 = vld [vmem:[#allocation3 + $0x20] sm:$0xff] }
 0xe64   :  { %v3018_v30 = vadd.f32 1.0, %v8072_v29 }
 0xe65   :  { %8073 = vrcp.f32 %v3011_v28 }
 0xe66   :  { %8075 = vrcp.f32 %v3018_v30 }
 0xe6f   :  { %v8074_v31 = vpop.eup %8073 }
 0xe70   :  { %v3022_v35 = vmul.f32 %v8074_v31, %v3021_v56  ;;  %v8076_v13 = vpop.eup %8075  ;;  %v3382_v56 = vld [vmem:[#allocation6 + $0x140] sm:$0xff]  ;;  %v3385_v31 = vld [vmem:[#allocation6 + $0x158] sm:$0x3] }
 0xe71   :  { %v3025_v39 = vsub.f32 1.0, %v8076_v13  ;;  %v3027_v44 = vmul.f32 %v8076_v13, %v2861_v17 }
 0xe72   :  { %v3023_v36 = vadd.f32 %v3022_v35, %v2009_v34  ;;  %v3381_v34 = vld [vmem:[#allocation6 + $0x138] sm:$0xff]  ;;  %v8888_v35 = vpack.c.bf16 %v3385_v31, %v3382_v56 }
 0xe74   :  { %8077 = vtanh.f32 %v3023_v36  ;;  %v3384_v36 = vld [vmem:[#allocation6 + $0x150] sm:$0x3] }
 0xe75   :  { %v8890_v13 = vpack.c.bf16 %v3384_v36, %v3381_v34 }
 0xe7e   :  { %v8078_v41 = vpop.eup %8077 }
 0xe7f   :  { %v3026_v42 = vmul.f32 %v8078_v41, %v3025_v39  ;;  %v3383_v39 = vld [vmem:[#allocation6 + $0x148] sm:$0xff]  ;;  %v3386_v41 = vld [vmem:[#allocation6 + $0x160] sm:$0x3] }
 0xe81   :  { %v3028_v14 = vadd.f32 %v3027_v44, %v3026_v42  ;;  %v8901_v42 = vpack.c.bf16 %v3386_v41, %v3383_v39 }
 0xe83   :  { %3029 = vst.msk [vmem:[#allocation3 + $0x28] sm:$0xff] %vm379_vm5, %v3028_v14  ;;  %6851 = vmatmul.mubr.msk.f32.vlgmr.msra.gmra.mrb[36].mxu1 %vm379_vm5, %v3028_v14  ;;  %7333 = vmatmul.mubr.msk.f32.vlgmr.msra.gmra.mrb[36].mxu0 %vm379_vm5, %v3028_v14 }
 0xe84   :  { %7613 = vmatpush1.bf16.msra.mxu1 %v8637_v57  ;;  %7616 = vmatpush3.bf16.msra.mxu0 %v8650_v1  ;;  %v3376_v57 = vld [vmem:[#allocation6 + $0x110] sm:$0xff] }
 0xe85   :  { %6856 = vmatprep.subr.msk.mxu1 %vm383_vm3, %v8639_v58  ;;  %7339 = vmatprep.subr.mxu0 %v8317_v0  ;;  %v7617_v1 = vpack.c.bf16 %v3376_v57, %v3373_v63 }
 0xe86   :  { %3264 = vmatprep.mubr.f32.mxu1 %v8317_v0  ;;  %7341 = vmatprep.mubr.msk.f32.mxu0 %vm8319_vm4, %v8317_v0 }
 0xe88   :  { %6857 = vmatpush1.msk.msra.mxu1 %vm383_vm3, %v8645_v60  ;;  %7340 = vmatpush3.msk.msra.mxu0 %vm383_vm3, %v8654_v2 }
 0xe89   :  { %7618 = vmatprep.subr.bf16.mxu0 %v7617_v1  ;;  %7622 = vmatprep.subr.bf16.mxu1 %v7621_v10 }
 0xe8a   :  { %v3369_v28 = vld [vmem:[#allocation3 + $0x28] sm:$0xff] }
 0xf56   :  { %v3099_v58 = vpop.f32.mrb[36].mxu1  ;;  %v3170_v46 = vpop.f32.mrb[36].mxu0 }
 0xf57   :  { %v7829_v47 = vadd.f32 %v3099_v58, %v8703_v38  ;;  %v3101_v5 = vpop.f32.mrb[37].mxu1  ;;  %v7334_v48 = vpop.f32.mrb[37].mxu0  ;;  %v3188_v61 = vadd.f32 %v3170_v46, %v8710_v51 }
 0xf58   :  { %v7830_v60 = vadd.f32 %v3101_v5, %v8706_v40 }
 0xf59   :  { %v6854_v49 = vmul.f32 -1.442695, %v7829_v47 }
 0xf5a   :  { %v6855_v53 = vmul.f32 -1.442695, %v7830_v60 }
 0xf5b   :  { %8079 = vpow2.f32 %v6854_v49 }
 0xf5c   :  { %8081 = vpow2.f32 %v6855_v53 }
 0xf65   :  { %v8080_v2 = vpop.eup %8079 }
 0xf66   :  { %v3178_v54 = vadd.f32 1.0, %v8080_v2  ;;  %v8082_v55 = vpop.eup %8081 }
 0xf67   :  { %v3185_v7 = vadd.f32 1.0, %v8082_v55  ;;  %v2019_v55 = vadd.f32 %v8698_v33, %v8713_v52  ;;  %v3388_v33 = vld [vmem:[#allocation6 + $0x1cc] ss:$8 sm:$0x7] }
 0xf68   :  { %8083 = vrcp.f32 %v3178_v54  ;;  %v8951_v12 = vrot.slane %v3388_v33, %v8461_v18 }
 0xf69   :  { %8085 = vrcp.f32 %v3185_v7 }
 0xf72   :  { %v8084_v62 = vpop.eup %8083 }
 0xf73   :  { %v3189_v6 = vmul.f32 %v8084_v62, %v3188_v61  ;;  %v8086_v11 = vpop.eup %8085 }
 0xf74   :  { %v3192_v9 = vsub.f32 1.0, %v8086_v11  ;;  %v3194_v17 = vmul.f32 %v8086_v11, %v3028_v14 }
 0xf75   :  { %v3190_v8 = vadd.f32 %v3189_v6, %v2014_v4 }
 0xf77   :  { %8087 = vtanh.f32 %v3190_v8 }
 0xf81   :  { %v8088_v21 = vpop.eup %8087 }
 0xf82   :  { %v3193_v16 = vmul.f32 %v8088_v21, %v3192_v9 }
 0xf84   :  { %v8848_v22 = vadd.f32 %v3194_v17, %v3193_v16  ;;  %v8954_v16 = vrot.slane %v3388_v33, %v8463_v19 }
 0xf86   :  { %3196 = vst.msk [vmem:[#allocation3 + $0x30] sm:$0xff] %vm379_vm5, %v8848_v22  ;;  %6858 = vmatmul.mubr.msk.f32.vlgmr.msra.gmra.mrb[38].mxu1 %vm379_vm5, %v8848_v22  ;;  %7342 = vmatmul.mubr.msk.f32.vlgmr.msra.gmra.mrb[38].mxu0 %vm379_vm5, %v8848_v22 }
 0xf87   :  { %7620 = vmatpush1.bf16.msra.mxu0 %v7619_v20  ;;  %7624 = vmatpush3.bf16.msra.mxu1 %v7621_v10 }
 0xf88   :  { %7350 = vmatprep.mubr.msk.f32.mxu1 %vm379_vm5, %v3364_v24  ;;  %6863 = vmatprep.subr.msk.mxu0 %vm383_vm3, %v3379_v32 }
 0xf89   :  { %7348 = vmatprep.subr.msk.mxu1 %vm383_vm3, %v3380_v37  ;;  %3503 = vmatprep.mubr.f32.mxu0 %v8317_v0 }
 0xf8b   :  { %6864 = vmatpush1.msk.msra.mxu0 %vm383_vm3, %v3378_v23  ;;  %7349 = vmatpush3.msk.msra.mxu1 %vm383_vm3, %v3380_v37 }
 0xf8c   :  { %6865 = vmatmul.mubr.msk.f32.vlgmr.msra.gmra.mrb[40].mxu0 %vm379_vm5, %v3364_v24  ;;  %7351 = vmatmul.mubr.msk.f32.vlgmr.msra.gmra.mrb[40].mxu1 %vm379_vm5, %v3365_v50 }
 0xf8d   :  { %7353 = vmatprep.mubr.msk.f32.mxu1 %vm379_vm5, %v3366_v25  ;;  %3509 = vmatprep.mubr.f32.mxu0 %v8317_v0  ;;  %v3370_v29 = vld [vmem:[#allocation3 + $0x30] sm:$0xff] }
 0xf8e   :  { %7631 = vmatprep.subr.bf16.mxu1 %v8318_v45  ;;  %7627 = vmatprep.subr.msk.bf16.mxu0 %vm8884_vm7, %v8888_v35 }
 0xf8f   :  { %7630 = vmatpush1.bf16.msk.msra.mxu0 %vm8884_vm7, %v8890_v13  ;;  %7634 = vmatpush3.bf16.msk.msra.mxu1 %vm8884_vm7, %v8901_v42 }
 0xf90   :  { %6866 = vmatmul.mubr.msk.f32.gmra.mrb[42].mxu0 %vm379_vm5, %v3365_v50  ;;  %7354 = vmatmul.mubr.msk.f32.gmra.mrb[42].mxu1 %vm379_vm5, %v3367_v26 }
 0xf91   :  { %7356 = vmatprep.mubr.msk.f32.mxu1 %vm379_vm5, %v3368_v27  ;;  %3515 = vmatprep.mubr.f32.mxu0 %v8317_v0 }
 0xf92   :  { %7637 = vmatprep.subr.msk.bf16.mxu0 %vm8884_vm7, %v8888_v35  ;;  %7641 = vmatprep.subr.bf16.mxu1 %v8318_v45 }
 0xf94   :  { %6867 = vmatmul.mubr.msk.f32.gmra.mrb[44].mxu0 %vm379_vm5, %v3366_v25  ;;  %7357 = vmatmul.mubr.msk.f32.gmra.mrb[44].mxu1 %vm379_vm5, %v3369_v28 }
 0xf95   :  { %7359 = vmatprep.mubr.msk.f32.mxu1 %vm379_vm5, %v3370_v29  ;;  %3521 = vmatprep.mubr.f32.mxu0 %v8317_v0 }
 0xf98   :  { %6868 = vmatmul.mubr.msk.f32.gmra.mrb[46].mxu0 %vm379_vm5, %v3367_v26 }
 0xf99   :  { %3527 = vmatprep.mubr.f32.mxu0 %v8317_v0 }
 0xf9c   :  { %6869 = vmatmul.mubr.msk.f32.gmra.mrb[48].mxu0 %vm379_vm5, %v3368_v27  ;;  %v8958_v27 = vld [vmem:[#allocation6 + $0x1cd] ss:$0 sm:$0xff] }
 0xf9d   :  { %3533 = vmatprep.mubr.f32.mxu0 %v8317_v0 }
 0xfa0   :  { %6870 = vmatmul.mubr.msk.f32.gmra.mrb[50].mxu0 %vm379_vm5, %v3369_v28  ;;  %v8961_v28 = vrot.slane %v3388_v33, %v8444_v59 }
 0xfa1   :  { %3539 = vmatprep.mubr.f32.mxu0 %v8317_v0 }
 0xfa4   :  { %6871 = vmatmul.mubr.msk.f32.gmra.mrb[52].mxu0 %vm379_vm5, %v3370_v29 }
 0xfa5   :  { %3545 = vmatprep.mubr.f32.mxu0 %v8317_v0 }
0x1059   :  { %v3266_v44 = vpop.f32.mrb[38].mxu1  ;;  %v3337_v14 = vpop.f32.mrb[38].mxu0 }
0x105a   :  { %v7831_v63 = vadd.f32 %v3266_v44, %v8703_v38  ;;  %v3268_v57 = vpop.f32.mrb[39].mxu1  ;;  %v7343_v15 = vpop.f32.mrb[39].mxu0  ;;  %v3355_v2 = vadd.f32 %v3337_v14, %v8710_v51 }
0x105b   :  { %v7832_v3 = vadd.f32 %v3268_v57, %v8706_v40 }
0x105c   :  { %v6861_v1 = vmul.f32 -1.442695, %v7831_v63 }
0x105d   :  { %v6862_v46 = vmul.f32 -1.442695, %v7832_v3 }
0x105e   :  { %8089 = vpow2.f32 %v6861_v1 }
0x105f   :  { %v8909_v10 = vpop.f32.mrb[40].mxu1  ;;  %8091 = vpow2.f32 %v6862_v46 }
0x1060   :  { %v8911_v58 = vpop.f32.mrb[41].mxu1 }
0x1061   :  { %v3619_v34 = vadd.f32 %v8911_v58, %v8961_v28 }
0x1063   :  { %v8913_v47 = vpop.f32.mrb[42].mxu1 }
0x1064   :  { %v8915_v5 = vpop.f32.mrb[43].mxu1 }
0x1067   :  { %v8917_v48 = vpop.f32.mrb[44].mxu1 }
0x1068   :  { %v8090_v49 = vpop.eup %8089  ;;  %v8919_v38 = vpop.f32.mrb[45].mxu1 }
0x1069   :  { %v3345_v60 = vadd.f32 1.0, %v8090_v49  ;;  %v8092_v53 = vpop.eup %8091 }
0x106a   :  { %v3352_v40 = vadd.f32 1.0, %v8092_v53 }
0x106b   :  { %8093 = vrcp.f32 %v3345_v60 }
0x106c   :  { %8095 = vrcp.f32 %v3352_v40 }
0x1075   :  { %v8094_v54 = vpop.eup %8093 }
0x1076   :  { %v3356_v7 = vmul.f32 %v8094_v54, %v3355_v2  ;;  %v8096_v62 = vpop.eup %8095 }
0x1077   :  { %v3359_v4 = vsub.f32 1.0, %v8096_v62  ;;  %v3361_v11 = vmul.f32 %v8096_v62, %v8848_v22 }
0x1078   :  { %v3357_v61 = vadd.f32 %v3356_v7, %v2019_v55 }
0x107a   :  { %8097 = vtanh.f32 %v3357_v61 }
0x1084   :  { %v8098_v6 = vpop.eup %8097 }
0x1085   :  { %v3360_v8 = vmul.f32 %v8098_v6, %v3359_v4  ;;  %v3624_v4 = vadd.f32 %v8909_v10, %v8961_v28 }
0x1087   :  { %v3362_v9 = vadd.f32 %v3361_v11, %v3360_v8 }
0x1089   :  { %3363 = vst.msk [vmem:[#allocation3 + $0x38] sm:$0xff] %vm379_vm5, %v3362_v9 }
0x1090   :  { %v3371_v43 = vld [vmem:[#allocation3 + $0x38] sm:$0xff] }
0x1091   :  { %6872 = vmatmul.mubr.msk.f32.gmra.mrb[54].mxu0 %vm379_vm5, %v3371_v43  ;;  %7360 = vmatmul.mubr.msk.f32.gmra.mrb[46].mxu1 %vm379_vm5, %v3371_v43 }
0x1092   :  { %3733 = vmatprep.mubr.f32.mxu0 %v8317_v0  ;;  %7366 = vmatprep.mubr.msk.f32.mxu1 %vm8319_vm4, %v8317_v0 }
0x1095   :  { %3734 = vmatmul.mubr.f32.vlgmr.msra.gmra.mrb[40].mxu0 %v8317_v0  ;;  %7367 = vmatmul.mubr.f32.vlgmr.msra.gmra.mrb[48].mxu1 %v8317_v0 }
0x1096   :  { %7640 = vmatpush1.bf16.msk.msra.mxu0 %vm8884_vm7, %v8890_v13  ;;  %7644 = vmatpush3.bf16.msk.msra.mxu1 %vm8884_vm7, %v8901_v42 }
0x1097   :  { %3900 = vmatprep.mubr.f32.mxu0 %v8317_v0  ;;  %7373 = vmatprep.mubr.msk.f32.mxu1 %vm8319_vm4, %v8317_v0 }
0x1098   :  { %7647 = vmatprep.subr.msk.bf16.mxu0 %vm8884_vm7, %v8888_v35  ;;  %7651 = vmatprep.subr.bf16.mxu1 %v8318_v45 }
0x1164   :  { %v8946_v51 = vpop.f32.mrb[46].mxu1 }
0x1165   :  { %v8948_v52 = vpop.f32.mrb[47].mxu1 }
0x1168   :  { %v3735_v21 = vpop.f32.mrb[40].mxu0  ;;  %v3806_v17 = vpop.f32.mrb[48].mxu1 }
0x1169   :  { %v7833_v20 = vadd.f32 %v3735_v21, %v8951_v12  ;;  %v3737_v22 = vpop.f32.mrb[41].mxu0  ;;  %v7368_v32 = vpop.f32.mrb[49].mxu1  ;;  %v3824_v56 = vadd.f32 %v3806_v17, %v8958_v27 }
0x116a   :  { %v7834_v24 = vadd.f32 %v3737_v22, %v8954_v16 }
0x116b   :  { %v6885_v37 = vmul.f32 -1.442695, %v7833_v20 }
0x116c   :  { %v6886_v23 = vmul.f32 -1.442695, %v7834_v24 }
0x116d   :  { %8099 = vpow2.f32 %v6885_v37 }
0x116e   :  { %8101 = vpow2.f32 %v6886_v23 }
0x1177   :  { %v8100_v50 = vpop.eup %8099 }
0x1178   :  { %v3814_v25 = vadd.f32 1.0, %v8100_v50  ;;  %v8102_v26 = vpop.eup %8101 }
0x1179   :  { %v3821_v29 = vadd.f32 1.0, %v8102_v26 }
0x117a   :  { %8103 = vrcp.f32 %v3814_v25 }
0x117b   :  { %8105 = vrcp.f32 %v3821_v29 }
0x1184   :  { %v8104_v31 = vpop.eup %8103 }
0x1185   :  { %v3825_v36 = vmul.f32 %v8104_v31, %v3824_v56  ;;  %v8106_v41 = vpop.eup %8105 }
0x1186   :  { %v3828_v44 = vsub.f32 1.0, %v8106_v41  ;;  %v3830_v57 = vmul.f32 0.0, %v8106_v41 }
0x1187   :  { %v3826_v39 = vadd.f32 %v3825_v36, %v3619_v34  ;;  %v3629_v36 = vadd.f32 %v8915_v5, %v8961_v28 }
0x1189   :  { %8107 = vtanh.f32 %v3826_v39 }
0x1193   :  { %v8108_v14 = vpop.eup %8107 }
0x1194   :  { %v3829_v63 = vmul.f32 %v8108_v14, %v3828_v44 }
0x1196   :  { %v3831_v15 = vadd.f32 %v3830_v57, %v3829_v63 }
0x1198   :  { %3832 = vst.msk [vmem:[#allocation2] sm:$0xff] %vm3657_vm8, %v3831_v15  ;;  %6889 = vmatmul.mubr.msk.f32.vlgmr.msra.gmra.mrb[42].mxu0 %vm3657_vm8, %v3831_v15  ;;  %7374 = vmatmul.mubr.msk.f32.vlgmr.msra.gmra.mrb[50].mxu1 %vm3657_vm8, %v3831_v15 }
0x1199   :  { %7650 = vmatpush1.bf16.msk.msra.mxu0 %vm8884_vm7, %v8890_v13  ;;  %7654 = vmatpush3.bf16.msk.msra.mxu1 %vm8884_vm7, %v8901_v42 }
0x119a   :  { %4067 = vmatprep.mubr.f32.mxu0 %v8317_v0  ;;  %7380 = vmatprep.mubr.msk.f32.mxu1 %vm8319_vm4, %v8317_v0 }
0x119b   :  { %7657 = vmatprep.subr.msk.bf16.mxu0 %vm8884_vm7, %v8888_v35  ;;  %7661 = vmatprep.subr.bf16.mxu1 %v8318_v45 }
0x126b   :  { %v3902_v1 = vpop.f32.mrb[42].mxu0  ;;  %v3973_v3 = vpop.f32.mrb[50].mxu1 }
0x126c   :  { %v7835_v58 = vadd.f32 %v3902_v1, %v8951_v12  ;;  %v3904_v46 = vpop.f32.mrb[43].mxu0  ;;  %v7375_v49 = vpop.f32.mrb[51].mxu1  ;;  %v3991_v61 = vadd.f32 %v3973_v3, %v8958_v27 }
0x126d   :  { %v7836_v53 = vadd.f32 %v3904_v46, %v8954_v16 }
0x126e   :  { %v6892_v60 = vmul.f32 -1.442695, %v7835_v58 }
0x126f   :  { %v6893_v40 = vmul.f32 -1.442695, %v7836_v53 }
0x1270   :  { %8109 = vpow2.f32 %v6892_v60 }
0x1271   :  { %8111 = vpow2.f32 %v6893_v40 }
0x127a   :  { %v8110_v2 = vpop.eup %8109 }
0x127b   :  { %v3981_v54 = vadd.f32 1.0, %v8110_v2  ;;  %v8112_v55 = vpop.eup %8111 }
0x127c   :  { %v3988_v7 = vadd.f32 1.0, %v8112_v55 }
0x127d   :  { %8113 = vrcp.f32 %v3981_v54 }
0x127e   :  { %8115 = vrcp.f32 %v3988_v7 }
0x1287   :  { %v8114_v62 = vpop.eup %8113 }
0x1288   :  { %v3992_v6 = vmul.f32 %v8114_v62, %v3991_v61  ;;  %v8116_v11 = vpop.eup %8115 }
0x1289   :  { %v3995_v9 = vsub.f32 1.0, %v8116_v11  ;;  %v3997_v21 = vmul.f32 %v8116_v11, %v3831_v15 }
0x128a   :  { %v3993_v8 = vadd.f32 %v3992_v6, %v3624_v4  ;;  %v3634_v4 = vadd.f32 %v8913_v47, %v8961_v28 }
0x128c   :  { %8117 = vtanh.f32 %v3993_v8 }
0x1296   :  { %v8118_v43 = vpop.eup %8117 }
0x1297   :  { %v3996_v33 = vmul.f32 %v8118_v43, %v3995_v9 }
0x1299   :  { %v3998_v17 = vadd.f32 %v3997_v21, %v3996_v33 }
0x129b   :  { %3999 = vst.msk [vmem:[#allocation2 + $0x8] sm:$0xff] %vm3657_vm8, %v3998_v17  ;;  %6896 = vmatmul.mubr.msk.f32.vlgmr.msra.gmra.mrb[44].mxu0 %vm3657_vm8, %v3998_v17  ;;  %7381 = vmatmul.mubr.msk.f32.vlgmr.msra.gmra.mrb[52].mxu1 %vm3657_vm8, %v3998_v17 }
0x129c   :  { %7660 = vmatpush1.bf16.msk.msra.mxu0 %vm8884_vm7, %v8890_v13  ;;  %7664 = vmatpush3.bf16.msk.msra.mxu1 %vm8884_vm7, %v8901_v42 }
0x129d   :  { %4234 = vmatprep.mubr.f32.mxu0 %v8317_v0  ;;  %7387 = vmatprep.mubr.msk.f32.mxu1 %vm8319_vm4, %v8317_v0 }
0x129e   :  { %7667 = vmatprep.subr.msk.bf16.mxu0 %vm8884_vm7, %v8888_v35  ;;  %7671 = vmatprep.subr.bf16.mxu1 %v8318_v45 }
0x136e   :  { %v4069_v10 = vpop.f32.mrb[44].mxu0  ;;  %v4140_v20 = vpop.f32.mrb[52].mxu1 }
0x136f   :  { %v7837_v22 = vadd.f32 %v4069_v10, %v8951_v12  ;;  %v4071_v32 = vpop.f32.mrb[45].mxu0  ;;  %v7382_v37 = vpop.f32.mrb[53].mxu1  ;;  %v4158_v31 = vadd.f32 %v4140_v20, %v8958_v27 }
0x1370   :  { %v7838_v23 = vadd.f32 %v4071_v32, %v8954_v16 }
0x1371   :  { %v6899_v24 = vmul.f32 -1.442695, %v7837_v22 }
0x1372   :  { %v6900_v50 = vmul.f32 -1.442695, %v7838_v23 }
0x1373   :  { %8119 = vpow2.f32 %v6899_v24 }
0x1374   :  { %8121 = vpow2.f32 %v6900_v50 }
0x137d   :  { %v8120_v25 = vpop.eup %8119 }
0x137e   :  { %v4148_v26 = vadd.f32 1.0, %v8120_v25  ;;  %v8122_v29 = vpop.eup %8121 }
0x137f   :  { %v4155_v56 = vadd.f32 1.0, %v8122_v29 }
0x1380   :  { %8123 = vrcp.f32 %v4148_v26 }
0x1381   :  { %8125 = vrcp.f32 %v4155_v56 }
0x138a   :  { %v8124_v34 = vpop.eup %8123 }
0x138b   :  { %v4159_v39 = vmul.f32 %v8124_v34, %v4158_v31  ;;  %v8126_v44 = vpop.eup %8125  ;;  %v3639_v34 = vadd.f32 %v8919_v38, %v8961_v28 }
0x138c   :  { %v4162_v14 = vsub.f32 1.0, %v8126_v44  ;;  %v4164_v15 = vmul.f32 %v8126_v44, %v3998_v17 }
0x138d   :  { %v4160_v41 = vadd.f32 %v4159_v39, %v3629_v36 }
0x138f   :  { %8127 = vtanh.f32 %v4160_v41 }
0x1399   :  { %v8128_v63 = vpop.eup %8127 }
0x139a   :  { %v4163_v57 = vmul.f32 %v8128_v63, %v4162_v14 }
0x139c   :  { %v4165_v1 = vadd.f32 %v4164_v15, %v4163_v57 }
0x139e   :  { %4166 = vst.msk [vmem:[#allocation2 + $0x10] sm:$0xff] %vm3657_vm8, %v4165_v1  ;;  %6903 = vmatmul.mubr.msk.f32.vlgmr.msra.gmra.mrb[46].mxu0 %vm3657_vm8, %v4165_v1  ;;  %7388 = vmatmul.mubr.msk.f32.vlgmr.msra.gmra.mrb[54].mxu1 %vm3657_vm8, %v4165_v1 }
0x139f   :  { %7670 = vmatpush1.bf16.msk.msra.mxu0 %vm8884_vm7, %v8890_v13  ;;  %7674 = vmatpush3.bf16.msk.msra.mxu1 %vm8884_vm7, %v8901_v42 }
0x13a0   :  { %4401 = vmatprep.mubr.f32.mxu0 %v8317_v0  ;;  %7394 = vmatprep.mubr.msk.f32.mxu1 %vm8319_vm4, %v8317_v0 }
0x13a1   :  { %7677 = vmatprep.subr.msk.bf16.mxu0 %vm8884_vm7, %v8888_v35  ;;  %7681 = vmatprep.subr.bf16.mxu1 %v8318_v45 }
0x1471   :  { %v4236_v5 = vpop.f32.mrb[46].mxu0  ;;  %v4307_v3 = vpop.f32.mrb[54].mxu1 }
0x1472   :  { %v7839_v58 = vadd.f32 %v4236_v5, %v8951_v12  ;;  %v4238_v46 = vpop.f32.mrb[47].mxu0  ;;  %v7389_v49 = vpop.f32.mrb[55].mxu1  ;;  %v4325_v61 = vadd.f32 %v4307_v3, %v8958_v27 }
0x1473   :  { %v7840_v53 = vadd.f32 %v4238_v46, %v8954_v16 }
0x1474   :  { %v6906_v60 = vmul.f32 -1.442695, %v7839_v58 }
0x1475   :  { %v6907_v40 = vmul.f32 -1.442695, %v7840_v53 }
0x1476   :  { %8129 = vpow2.f32 %v6906_v60 }
0x1477   :  { %8131 = vpow2.f32 %v6907_v40 }
0x1480   :  { %v8130_v2 = vpop.eup %8129 }
0x1481   :  { %v4315_v54 = vadd.f32 1.0, %v8130_v2  ;;  %v8132_v55 = vpop.eup %8131 }
0x1482   :  { %v4322_v7 = vadd.f32 1.0, %v8132_v55 }
0x1483   :  { %8133 = vrcp.f32 %v4315_v54 }
0x1484   :  { %8135 = vrcp.f32 %v4322_v7  ;;  %v3644_v7 = vadd.f32 %v8917_v48, %v8961_v28  ;;  %v5011_v48 = vld [vmem:[#allocation6 + $0x170] sm:$0xff] }
0x148d   :  { %v8134_v62 = vpop.eup %8133 }
0x148e   :  { %v4326_v6 = vmul.f32 %v8134_v62, %v4325_v61  ;;  %v8136_v11 = vpop.eup %8135 }
0x148f   :  { %v4329_v9 = vsub.f32 1.0, %v8136_v11  ;;  %v4331_v21 = vmul.f32 %v8136_v11, %v4165_v1 }
0x1490   :  { %v4327_v8 = vadd.f32 %v4326_v6, %v3634_v4 }
0x1492   :  { %8137 = vtanh.f32 %v4327_v8 }
0x149c   :  { %v8138_v43 = vpop.eup %8137 }
0x149d   :  { %v4330_v33 = vmul.f32 %v8138_v43, %v4329_v9 }
0x149f   :  { %v4332_v17 = vadd.f32 %v4331_v21, %v4330_v33  ;;  %v5014_v33 = vld [vmem:[#allocation6 + $0x188] sm:$0x3]  ;;  %v5012_v21 = vld [vmem:[#allocation6 + $0x178] sm:$0xff] }
0x14a1   :  { %4333 = vst.msk [vmem:[#allocation2 + $0x18] sm:$0xff] %vm3657_vm8, %v4332_v17  ;;  %6910 = vmatmul.mubr.msk.f32.vlgmr.msra.gmra.mrb[48].mxu0 %vm3657_vm8, %v4332_v17  ;;  %7395 = vmatmul.mubr.msk.f32.vlgmr.msra.gmra.mrb[56].mxu1 %vm3657_vm8, %v4332_v17 }
0x14a2   :  { %7680 = vmatpush1.bf16.msk.msra.mxu0 %vm8884_vm7, %v8890_v13  ;;  %7684 = vmatpush3.bf16.msk.msra.mxu1 %vm8884_vm7, %v8901_v42 }
0x14a3   :  { %4568 = vmatprep.mubr.f32.mxu0 %v8317_v0  ;;  %7401 = vmatprep.mubr.msk.f32.mxu1 %vm8319_vm4, %v8317_v0 }
0x14a4   :  { %7687 = vmatprep.subr.msk.bf16.mxu0 %vm8884_vm7, %v8888_v35  ;;  %7691 = vmatprep.subr.bf16.mxu1 %v8318_v45 }
0x1574   :  { %v4403_v47 = vpop.f32.mrb[48].mxu0  ;;  %v4474_v10 = vpop.f32.mrb[56].mxu1 }
0x1575   :  { %v7841_v20 = vadd.f32 %v4403_v47, %v8951_v12  ;;  %v4405_v22 = vpop.f32.mrb[49].mxu0  ;;  %v7396_v32 = vpop.f32.mrb[57].mxu1  ;;  %v4492_v56 = vadd.f32 %v4474_v10, %v8958_v27  ;;  %v5015_v47 = vld [vmem:[#allocation6 + $0x190] sm:$0x3] }
0x1576   :  { %v7842_v24 = vadd.f32 %v4405_v22, %v8954_v16  ;;  %v7711_v10 = vpack.c.bf16 %v5015_v47, %v5012_v21 }
0x1577   :  { %v6913_v37 = vmul.f32 -1.442695, %v7841_v20 }
0x1578   :  { %v6914_v23 = vmul.f32 -1.442695, %v7842_v24 }
0x1579   :  { %8139 = vpow2.f32 %v6913_v37 }
0x157a   :  { %8141 = vpow2.f32 %v6914_v23 }
0x1583   :  { %v8140_v50 = vpop.eup %8139 }
0x1584   :  { %v4482_v25 = vadd.f32 1.0, %v8140_v50  ;;  %v8142_v26 = vpop.eup %8141 }
0x1585   :  { %v4489_v29 = vadd.f32 1.0, %v8142_v26 }
0x1586   :  { %8143 = vrcp.f32 %v4482_v25 }
0x1587   :  { %8145 = vrcp.f32 %v4489_v29 }
0x1590   :  { %v8144_v31 = vpop.eup %8143 }
0x1591   :  { %v4493_v36 = vmul.f32 %v8144_v31, %v4492_v56  ;;  %v8146_v41 = vpop.eup %8145 }
0x1592   :  { %v4496_v44 = vsub.f32 1.0, %v8146_v41  ;;  %v4498_v57 = vmul.f32 %v8146_v41, %v4332_v17  ;;  %v7705_v17 = vpack.c.bf16 %v5014_v33, %v5011_v48 }
0x1593   :  { %v4494_v39 = vadd.f32 %v4493_v36, %v3639_v34  ;;  %v3649_v34 = vadd.f32 %v8948_v52, %v8961_v28  ;;  %v5002_v52 = vld [vmem:[#allocation2] sm:$0xff] }
0x1595   :  { %8147 = vtanh.f32 %v4494_v39 }
0x159f   :  { %v8148_v14 = vpop.eup %8147 }
0x15a0   :  { %v4497_v63 = vmul.f32 %v8148_v14, %v4496_v44  ;;  %v5010_v14 = vld [vmem:[#allocation6 + $0x168] sm:$0xff] }
0x15a2   :  { %v4499_v15 = vadd.f32 %v4498_v57, %v4497_v63  ;;  %v5013_v63 = vld [vmem:[#allocation6 + $0x180] sm:$0x3] }
0x15a4   :  { %4500 = vst.msk [vmem:[#allocation2 + $0x20] sm:$0xff] %vm3657_vm8, %v4499_v15  ;;  %6917 = vmatmul.mubr.msk.f32.vlgmr.msra.gmra.mrb[50].mxu0 %vm3657_vm8, %v4499_v15  ;;  %7402 = vmatmul.mubr.msk.f32.vlgmr.msra.gmra.mrb[58].mxu1 %vm3657_vm8, %v4499_v15 }
0x15a5   :  { %7690 = vmatpush1.bf16.msk.msra.mxu0 %vm8884_vm7, %v8890_v13  ;;  %7694 = vmatpush3.bf16.msk.msra.mxu1 %vm8884_vm7, %v8901_v42 }
0x15a6   :  { %4735 = vmatprep.mubr.f32.mxu0 %v8317_v0  ;;  %7408 = vmatprep.mubr.msk.f32.mxu1 %vm8319_vm4, %v8317_v0 }
0x15a7   :  { %7697 = vmatprep.subr.msk.bf16.mxu0 %vm8884_vm7, %v8888_v35  ;;  %7701 = vmatprep.subr.bf16.mxu1 %v8318_v45 }
0x1677   :  { %v4570_v38 = vpop.f32.mrb[50].mxu0  ;;  %v4641_v1 = vpop.f32.mrb[58].mxu1 }
0x1678   :  { %v7843_v5 = vadd.f32 %v4570_v38, %v8951_v12  ;;  %v4572_v3 = vpop.f32.mrb[51].mxu0  ;;  %v7403_v58 = vpop.f32.mrb[59].mxu1  ;;  %v4659_v35 = vadd.f32 %v4641_v1, %v8958_v27  ;;  %v7708_v1 = vpack.c.bf16 %v5013_v63, %v5010_v14 }
0x1679   :  { %v7844_v49 = vadd.f32 %v4572_v3, %v8954_v16  ;;  %v5003_v3 = vld [vmem:[#allocation2 + $0x8] sm:$0xff]  ;;  %v5004_v58 = vld [vmem:[#allocation2 + $0x10] sm:$0xff] }
0x167a   :  { %v6920_v46 = vmul.f32 -1.442695, %v7843_v5 }
0x167b   :  { %v6921_v60 = vmul.f32 -1.442695, %v7844_v49  ;;  %v5006_v49 = vld [vmem:[#allocation2 + $0x20] sm:$0xff] }
0x167c   :  { %8149 = vpow2.f32 %v6920_v46  ;;  %v5005_v46 = vld [vmem:[#allocation2 + $0x18] sm:$0xff] }
0x167d   :  { %8151 = vpow2.f32 %v6921_v60 }
0x1686   :  { %v8150_v53 = vpop.eup %8149 }
0x1687   :  { %v4649_v40 = vadd.f32 1.0, %v8150_v53  ;;  %v8152_v2 = vpop.eup %8151 }
0x1688   :  { %v4656_v54 = vadd.f32 1.0, %v8152_v2  ;;  %v5020_v2 = vld [vmem:[#allocation6 + $0x1b8] sm:$0x3] }
0x1689   :  { %8153 = vrcp.f32 %v4649_v40  ;;  %v5017_v40 = vld [vmem:[#allocation6 + $0x1a0] sm:$0xff] }
0x168a   :  { %8155 = vrcp.f32 %v4656_v54  ;;  %v5016_v54 = vld [vmem:[#allocation6 + $0x198] sm:$0xff] }
0x1693   :  { %v8154_v55 = vpop.eup %8153 }
0x1694   :  { %v4660_v61 = vmul.f32 %v8154_v55, %v4659_v35  ;;  %v8156_v4 = vpop.eup %8155  ;;  %v9127_v35 = vpack.c.bf16 %v5020_v2, %v5017_v40  ;;  %v5019_v55 = vld [vmem:[#allocation6 + $0x1b0] sm:$0x3] }
0x1695   :  { %v4663_v6 = vsub.f32 1.0, %v8156_v4  ;;  %v4665_v9 = vmul.f32 %v8156_v4, %v4499_v15 }
0x1696   :  { %v4661_v62 = vadd.f32 %v4660_v61, %v3644_v7  ;;  %v9129_v7 = vpack.c.bf16 %v5019_v55, %v5016_v54  ;;  %v5018_v61 = vld [vmem:[#allocation6 + $0x1a8] sm:$0xff] }
0x1698   :  { %8157 = vtanh.f32 %v4661_v62  ;;  %v5021_v62 = vld [vmem:[#allocation6 + $0x1c0] sm:$0x3] }
0x1699   :  { %v9140_v4 = vpack.c.bf16 %v5021_v62, %v5018_v61 }
0x16a2   :  { %v8158_v8 = vpop.eup %8157 }
0x16a3   :  { %v4664_v11 = vmul.f32 %v8158_v8, %v4663_v6 }
0x16a5   :  { %v4666_v43 = vadd.f32 %v4665_v9, %v4664_v11 }
0x16a7   :  { %4667 = vst.msk [vmem:[#allocation2 + $0x28] sm:$0xff] %vm3657_vm8, %v4666_v43  ;;  %6924 = vmatmul.mubr.msk.f32.vlgmr.msra.gmra.mrb[52].mxu0 %vm3657_vm8, %v4666_v43  ;;  %7409 = vmatmul.mubr.msk.f32.vlgmr.msra.gmra.mrb[60].mxu1 %vm3657_vm8, %v4666_v43 }
0x16a8   :  { %7700 = vmatpush1.bf16.msk.msra.mxu0 %vm8884_vm7, %v8890_v13  ;;  %7704 = vmatpush3.bf16.msk.msra.mxu1 %vm8884_vm7, %v8901_v42 }
0x16a9   :  { %4902 = vmatprep.mubr.f32.mxu0 %v8317_v0  ;;  %7415 = vmatprep.mubr.msk.f32.mxu1 %vm8319_vm4, %v8317_v0 }
0x16aa   :  { %7707 = vmatprep.subr.msk.bf16.mxu1 %vm8884_vm7, %v7705_v17  ;;  %7713 = vmatprep.subr.msk.bf16.mxu0 %vm8884_vm7, %v7711_v10 }
0x16ae   :  { %v5007_v60 = vld [vmem:[#allocation2 + $0x28] sm:$0xff] }
0x177a   :  { %v4737_v13 = vpop.f32.mrb[52].mxu0  ;;  %v4808_v20 = vpop.f32.mrb[60].mxu1 }
0x177b   :  { %v7845_v42 = vadd.f32 %v4737_v13, %v8951_v12  ;;  %v4739_v22 = vpop.f32.mrb[53].mxu0  ;;  %v7410_v32 = vpop.f32.mrb[61].mxu1  ;;  %v4826_v56 = vadd.f32 %v4808_v20, %v8958_v27 }
0x177c   :  { %v7846_v24 = vadd.f32 %v4739_v22, %v8954_v16 }
0x177d   :  { %v6927_v37 = vmul.f32 -1.442695, %v7845_v42 }
0x177e   :  { %v6928_v23 = vmul.f32 -1.442695, %v7846_v24 }
0x177f   :  { %8159 = vpow2.f32 %v6927_v37 }
0x1780   :  { %8161 = vpow2.f32 %v6928_v23  ;;  %v3654_v23 = vadd.f32 %v8946_v51, %v8961_v28  ;;  %v5023_v51 = vld [vmem:[#allocation6 + $0x1ce] ss:$8 sm:$0x7] }
0x1781   :  { %v9193_v14 = vrot.slane %v5023_v51, %v8463_v19  ;;  %v9200_v19 = vrot.slane %v5023_v51, %v8444_v59 }
0x1789   :  { %v8160_v50 = vpop.eup %8159 }
0x178a   :  { %v4816_v25 = vadd.f32 1.0, %v8160_v50  ;;  %v8162_v26 = vpop.eup %8161 }
0x178b   :  { %v4823_v29 = vadd.f32 1.0, %v8162_v26 }
0x178c   :  { %8163 = vrcp.f32 %v4816_v25 }
0x178d   :  { %8165 = vrcp.f32 %v4823_v29 }
0x1796   :  { %v8164_v31 = vpop.eup %8163 }
0x1797   :  { %v4827_v36 = vmul.f32 %v8164_v31, %v4826_v56  ;;  %v8166_v41 = vpop.eup %8165 }
0x1798   :  { %v4830_v44 = vsub.f32 1.0, %v8166_v41  ;;  %v4832_v38 = vmul.f32 %v8166_v41, %v4666_v43  ;;  %v9190_v41 = vrot.slane %v5023_v51, %v8461_v18 }
0x1799   :  { %v4828_v39 = vadd.f32 %v4827_v36, %v3649_v34 }
0x179b   :  { %8167 = vtanh.f32 %v4828_v39 }
0x17a5   :  { %v8168_v57 = vpop.eup %8167 }
0x17a6   :  { %v4831_v15 = vmul.f32 %v8168_v57, %v4830_v44 }
0x17a8   :  { %v9092_v5 = vadd.f32 %v4832_v38, %v4831_v15 }
0x17aa   :  { %4834 = vst.msk [vmem:[#allocation2 + $0x30] sm:$0xff] %vm3657_vm8, %v9092_v5  ;;  %6931 = vmatmul.mubr.msk.f32.vlgmr.msra.gmra.mrb[54].mxu0 %vm3657_vm8, %v9092_v5  ;;  %7416 = vmatmul.mubr.msk.f32.vlgmr.msra.gmra.mrb[62].mxu1 %vm3657_vm8, %v9092_v5 }
0x17ab   :  { %7710 = vmatpush1.bf16.msk.msra.mxu1 %vm8884_vm7, %v7708_v1  ;;  %7716 = vmatpush3.bf16.msk.msra.mxu0 %vm8884_vm7, %v7711_v10 }
0x17ac   :  { %7422 = vmatprep.mubr.msk.f32.mxu0 %vm3657_vm8, %v5002_v52  ;;  %5138 = vmatprep.mubr.f32.mxu1 %v8317_v0 }
0x17ad   :  { %7723 = vmatprep.subr.bf16.mxu0 %v8318_v45  ;;  %7719 = vmatprep.subr.msk.bf16.mxu1 %vm8884_vm7, %v9127_v35 }
0x17ae   :  { %6938 = vmatmul.mubr.msk.f32.vlgmr.msra.gmra.mrb[64].mxu1 %vm3657_vm8, %v5002_v52  ;;  %7423 = vmatmul.mubr.msk.f32.vlgmr.msra.gmra.mrb[56].mxu0 %vm3657_vm8, %v5003_v3 }
0x17af   :  { %7425 = vmatprep.mubr.msk.f32.mxu0 %vm3657_vm8, %v5004_v58  ;;  %5144 = vmatprep.mubr.f32.mxu1 %v8317_v0 }
0x17b0   :  { %7722 = vmatpush1.bf16.msk.msra.mxu1 %vm8884_vm7, %v9129_v7  ;;  %7726 = vmatpush3.bf16.msk.msra.mxu0 %vm8884_vm7, %v9140_v4 }
0x17b1   :  { %v5008_v53 = vld [vmem:[#allocation2 + $0x30] sm:$0xff]  ;;  %7729 = vmatprep.subr.msk.bf16.mxu1 %vm8884_vm7, %v9127_v35  ;;  %7733 = vmatprep.subr.bf16.mxu0 %v8318_v45 }
0x17b2   :  { %6939 = vmatmul.mubr.msk.f32.gmra.mrb[66].mxu1 %vm3657_vm8, %v5003_v3  ;;  %7426 = vmatmul.mubr.msk.f32.gmra.mrb[58].mxu0 %vm3657_vm8, %v5005_v46 }
0x17b3   :  { %7428 = vmatprep.mubr.msk.f32.mxu0 %vm3657_vm8, %v5006_v49  ;;  %5150 = vmatprep.mubr.f32.mxu1 %v8317_v0 }
0x17b6   :  { %6940 = vmatmul.mubr.msk.f32.gmra.mrb[68].mxu1 %vm3657_vm8, %v5004_v58  ;;  %7429 = vmatmul.mubr.msk.f32.gmra.mrb[60].mxu0 %vm3657_vm8, %v5007_v60 }
0x17b7   :  { %7431 = vmatprep.mubr.msk.f32.mxu0 %vm3657_vm8, %v5008_v53  ;;  %5156 = vmatprep.mubr.f32.mxu1 %v8317_v0 }
0x17ba   :  { %6941 = vmatmul.mubr.msk.f32.gmra.mrb[70].mxu1 %vm3657_vm8, %v5005_v46  ;;  %v9197_v46 = vld [vmem:[#allocation6 + $0x1cf] ss:$0 sm:$0xff] }
0x17bb   :  { %5162 = vmatprep.mubr.f32.mxu1 %v8317_v0 }
0x17be   :  { %6942 = vmatmul.mubr.msk.f32.gmra.mrb[72].mxu1 %vm3657_vm8, %v5006_v49 }
0x17bf   :  { %5168 = vmatprep.mubr.f32.mxu1 %v8317_v0 }
0x17c2   :  { %6943 = vmatmul.mubr.msk.f32.gmra.mrb[74].mxu1 %vm3657_vm8, %v5007_v60 }
0x17c3   :  { %5174 = vmatprep.mubr.f32.mxu1 %v8317_v0 }
0x17c6   :  { %6944 = vmatmul.mubr.msk.f32.gmra.mrb[76].mxu1 %vm3657_vm8, %v5008_v53 }
0x17c7   :  { %5180 = vmatprep.mubr.f32.mxu1 %v8317_v0 }
0x187d   :  { %v4904_v6 = vpop.f32.mrb[54].mxu0  ;;  %v4975_v8 = vpop.f32.mrb[62].mxu1 }
0x187e   :  { %v7847_v11 = vadd.f32 %v4904_v6, %v8951_v12  ;;  %v4906_v9 = vpop.f32.mrb[55].mxu0  ;;  %v7417_v43 = vpop.f32.mrb[63].mxu1  ;;  %v4993_v37 = vadd.f32 %v4975_v8, %v8958_v27 }
0x187f   :  { %v7848_v33 = vadd.f32 %v4906_v9, %v8954_v16 }
0x1880   :  { %v6934_v48 = vmul.f32 -1.442695, %v7847_v11 }
0x1881   :  { %v9148_v21 = vpop.f32.mrb[56].mxu0  ;;  %v6935_v47 = vmul.f32 -1.442695, %v7848_v33 }
0x1882   :  { %8169 = vpow2.f32 %v6934_v48  ;;  %v9150_v17 = vpop.f32.mrb[57].mxu0 }
0x1883   :  { %8171 = vpow2.f32 %v6935_v47  ;;  %v5254_v40 = vadd.f32 %v9150_v17, %v9200_v19 }
0x1885   :  { %v9152_v10 = vpop.f32.mrb[58].mxu0 }
0x1886   :  { %v9154_v13 = vpop.f32.mrb[59].mxu0 }
0x1889   :  { %v9156_v20 = vpop.f32.mrb[60].mxu0 }
0x188a   :  { %v9158_v42 = vpop.f32.mrb[61].mxu0 }
0x188c   :  { %v8170_v12 = vpop.eup %8169 }
0x188d   :  { %v4983_v22 = vadd.f32 1.0, %v8170_v12  ;;  %v8172_v32 = vpop.eup %8171 }
0x188e   :  { %v4990_v16 = vadd.f32 1.0, %v8172_v32 }
0x188f   :  { %8173 = vrcp.f32 %v4983_v22 }
0x1890   :  { %8175 = vrcp.f32 %v4990_v16 }
0x1899   :  { %v8174_v24 = vpop.eup %8173 }
0x189a   :  { %v4994_v50 = vmul.f32 %v8174_v24, %v4993_v37  ;;  %v8176_v26 = vpop.eup %8175 }
0x189b   :  { %v4997_v29 = vsub.f32 1.0, %v8176_v26  ;;  %v4999_v34 = vmul.f32 %v8176_v26, %v9092_v5 }
0x189c   :  { %v4995_v25 = vadd.f32 %v4994_v50, %v3654_v23  ;;  %v5259_v50 = vadd.f32 %v9148_v21, %v9200_v19 }
0x189e   :  { %8177 = vtanh.f32 %v4995_v25 }
0x18a8   :  { %v8178_v56 = vpop.eup %8177 }
0x18a9   :  { %v4998_v31 = vmul.f32 %v8178_v56, %v4997_v29 }
0x18ab   :  { %v5000_v36 = vadd.f32 %v4999_v34, %v4998_v31 }
0x18ad   :  { %5001 = vst.msk [vmem:[#allocation2 + $0x38] sm:$0xff] %vm3657_vm8, %v5000_v36 }
0x18b4   :  { %v5009_v39 = vld [vmem:[#allocation2 + $0x38] sm:$0xff] }
0x18b5   :  { %6945 = vmatmul.mubr.msk.f32.gmra.mrb[78].mxu1 %vm3657_vm8, %v5009_v39  ;;  %7432 = vmatmul.mubr.msk.f32.gmra.mrb[62].mxu0 %vm3657_vm8, %v5009_v39 }
0x18b6   :  { %5365 = vmatprep.mubr.f32.mxu1 %v8317_v0  ;;  %7438 = vmatprep.mubr.msk.f32.mxu0 %vm8319_vm4, %v8317_v0 }
0x18b9   :  { %5366 = vmatmul.mubr.f32.vlgmr.msra.gmra.mrb[64].mxu1 %v8317_v0  ;;  %7439 = vmatmul.mubr.f32.vlgmr.msra.gmra.mrb[64].mxu0 %v8317_v0 }
0x18ba   :  { %7732 = vmatpush1.bf16.msk.msra.mxu1 %vm8884_vm7, %v9129_v7  ;;  %7736 = vmatpush3.bf16.msk.msra.mxu0 %vm8884_vm7, %v9140_v4 }
0x18bb   :  { %5531 = vmatprep.mubr.f32.mxu1 %v8317_v0  ;;  %7445 = vmatprep.mubr.msk.f32.mxu0 %vm8319_vm4, %v8317_v0 }
0x18bc   :  { %7739 = vmatprep.subr.msk.bf16.mxu1 %vm8884_vm7, %v9127_v35  ;;  %7743 = vmatprep.subr.bf16.mxu0 %v8318_v45 }
0x1988   :  { %v9185_v27 = vpop.f32.mrb[62].mxu0 }
0x1989   :  { %v9187_v28 = vpop.f32.mrb[63].mxu0 }
0x198c   :  { %v5367_v44 = vpop.f32.mrb[64].mxu1  ;;  %v5438_v63 = vpop.f32.mrb[64].mxu0 }
0x198d   :  { %v7849_v57 = vadd.f32 %v5367_v44, %v9190_v41  ;;  %v5369_v15 = vpop.f32.mrb[65].mxu1  ;;  %v7440_v38 = vpop.f32.mrb[65].mxu0  ;;  %v5456_v60 = vadd.f32 %v5438_v63, %v9197_v46 }
0x198e   :  { %v7850_v5 = vadd.f32 %v5369_v15, %v9193_v14 }
0x198f   :  { %v6958_v1 = vmul.f32 -1.442695, %v7849_v57 }
0x1990   :  { %v6959_v52 = vmul.f32 -1.442695, %v7850_v5 }
0x1991   :  { %8179 = vpow2.f32 %v6958_v1 }
0x1992   :  { %8181 = vpow2.f32 %v6959_v52 }
0x199b   :  { %v8180_v3 = vpop.eup %8179 }
0x199c   :  { %v5446_v58 = vadd.f32 1.0, %v8180_v3  ;;  %v8182_v18 = vpop.eup %8181 }
0x199d   :  { %v5453_v49 = vadd.f32 1.0, %v8182_v18 }
0x199e   :  { %8183 = vrcp.f32 %v5446_v58 }
0x199f   :  { %8185 = vrcp.f32 %v5453_v49 }
0x19a8   :  { %v8184_v53 = vpop.eup %8183 }
0x19a9   :  { %v5457_v2 = vmul.f32 %v8184_v53, %v5456_v60  ;;  %v8186_v55 = vpop.eup %8185  ;;  %v5264_v60 = vadd.f32 %v9154_v13, %v9200_v19 }
0x19aa   :  { %v5460_v61 = vsub.f32 1.0, %v8186_v55  ;;  %v5462_v8 = vmul.f32 0.0, %v8186_v55 }
0x19ab   :  { %v5458_v54 = vadd.f32 %v5457_v2, %v5254_v40 }
0x19ad   :  { %8187 = vtanh.f32 %v5458_v54 }
0x19b7   :  { %v8188_v62 = vpop.eup %8187 }
0x19b8   :  { %v5461_v6 = vmul.f32 %v8188_v62, %v5460_v61 }
0x19ba   :  { %v5463_v11 = vadd.f32 %v5462_v8, %v5461_v6 }
0x19bc   :  { %6962 = vmatmul.mubr.msk.f32.vlgmr.msra.gmra.mrb[66].mxu1 %vm3657_vm8, %v5463_v11  ;;  %7446 = vmatmul.mubr.msk.f32.vlgmr.msra.gmra.mrb[66].mxu0 %vm3657_vm8, %v5463_v11 }
0x19bd   :  { %7742 = vmatpush1.bf16.msk.msra.mxu1 %vm8884_vm7, %v9129_v7  ;;  %7746 = vmatpush3.bf16.msk.msra.mxu0 %vm8884_vm7, %v9140_v4 }
0x19be   :  { %5697 = vmatprep.mubr.f32.mxu1 %v8317_v0  ;;  %7452 = vmatprep.mubr.msk.f32.mxu0 %vm8319_vm4, %v8317_v0 }
0x19bf   :  { %7749 = vmatprep.subr.msk.bf16.mxu1 %vm8884_vm7, %v9127_v35  ;;  %7753 = vmatprep.subr.bf16.mxu0 %v8318_v45 }
0x1a8f   :  { %v5533_v59 = vpop.f32.mrb[66].mxu1  ;;  %v5604_v9 = vpop.f32.mrb[66].mxu0 }
0x1a90   :  { %v7851_v43 = vadd.f32 %v5533_v59, %v9190_v41  ;;  %v5535_v48 = vpop.f32.mrb[67].mxu1  ;;  %v7447_v33 = vpop.f32.mrb[67].mxu0  ;;  %v5622_v24 = vadd.f32 %v5604_v9, %v9197_v46 }
0x1a91   :  { %v7852_v47 = vadd.f32 %v5535_v48, %v9193_v14 }
0x1a92   :  { %v6965_v17 = vmul.f32 -1.442695, %v7851_v43 }
0x1a93   :  { %v6966_v12 = vmul.f32 -1.442695, %v7852_v47 }
0x1a94   :  { %8189 = vpow2.f32 %v6965_v17 }
0x1a95   :  { %8191 = vpow2.f32 %v6966_v12 }
0x1a9e   :  { %v8190_v22 = vpop.eup %8189 }
0x1a9f   :  { %v5612_v32 = vadd.f32 1.0, %v8190_v22  ;;  %v8192_v16 = vpop.eup %8191 }
0x1aa0   :  { %v5619_v37 = vadd.f32 1.0, %v8192_v16 }
0x1aa1   :  { %8193 = vrcp.f32 %v5612_v32 }
0x1aa2   :  { %8195 = vrcp.f32 %v5619_v37  ;;  %v5269_v37 = vadd.f32 %v9152_v10, %v9200_v19 }
0x1aab   :  { %v8194_v23 = vpop.eup %8193 }
0x1aac   :  { %v5623_v25 = vmul.f32 %v8194_v23, %v5622_v24  ;;  %v8196_v29 = vpop.eup %8195 }
0x1aad   :  { %v5626_v56 = vsub.f32 1.0, %v8196_v29  ;;  %v5628_v36 = vmul.f32 %v8196_v29, %v5463_v11 }
0x1aae   :  { %v5624_v26 = vadd.f32 %v5623_v25, %v5259_v50 }
0x1ab0   :  { %8197 = vtanh.f32 %v5624_v26 }
0x1aba   :  { %v8198_v31 = vpop.eup %8197 }
0x1abb   :  { %v5627_v34 = vmul.f32 %v8198_v31, %v5626_v56 }
0x1abd   :  { %v5629_v39 = vadd.f32 %v5628_v36, %v5627_v34 }
0x1abf   :  { %6969 = vmatmul.mubr.msk.f32.vlgmr.msra.gmra.mrb[68].mxu1 %vm3657_vm8, %v5629_v39  ;;  %7453 = vmatmul.mubr.msk.f32.vlgmr.msra.gmra.mrb[68].mxu0 %vm3657_vm8, %v5629_v39 }
0x1ac0   :  { %7752 = vmatpush1.bf16.msk.msra.mxu1 %vm8884_vm7, %v9129_v7  ;;  %7756 = vmatpush3.bf16.msk.msra.mxu0 %vm8884_vm7, %v9140_v4 }
0x1ac1   :  { %5863 = vmatprep.mubr.f32.mxu1 %v8317_v0  ;;  %7459 = vmatprep.mubr.msk.f32.mxu0 %vm8319_vm4, %v8317_v0 }
0x1ac2   :  { %7759 = vmatprep.subr.msk.bf16.mxu1 %vm8884_vm7, %v9127_v35  ;;  %7763 = vmatprep.subr.bf16.mxu0 %v8318_v45 }
0x1b92   :  { %v5699_v21 = vpop.f32.mrb[68].mxu1  ;;  %v5770_v51 = vpop.f32.mrb[68].mxu0 }
0x1b93   :  { %v7853_v44 = vadd.f32 %v5699_v21, %v9190_v41  ;;  %v5701_v63 = vpop.f32.mrb[69].mxu1  ;;  %v7454_v57 = vpop.f32.mrb[69].mxu0  ;;  %v5788_v18 = vadd.f32 %v5770_v51, %v9197_v46 }
0x1b94   :  { %v7854_v38 = vadd.f32 %v5701_v63, %v9193_v14 }
0x1b95   :  { %v6972_v15 = vmul.f32 -1.442695, %v7853_v44 }
0x1b96   :  { %v6973_v1 = vmul.f32 -1.442695, %v7854_v38 }
0x1b97   :  { %8199 = vpow2.f32 %v6972_v15 }
0x1b98   :  { %8201 = vpow2.f32 %v6973_v1 }
0x1ba1   :  { %v8200_v5 = vpop.eup %8199 }
0x1ba2   :  { %v5778_v52 = vadd.f32 1.0, %v8200_v5  ;;  %v8202_v3 = vpop.eup %8201 }
0x1ba3   :  { %v5785_v58 = vadd.f32 1.0, %v8202_v3  ;;  %v5274_v3 = vadd.f32 %v9158_v42, %v9200_v19 }
0x1ba4   :  { %8203 = vrcp.f32 %v5778_v52 }
0x1ba5   :  { %8205 = vrcp.f32 %v5785_v58 }
0x1bae   :  { %v8204_v49 = vpop.eup %8203 }
0x1baf   :  { %v5789_v53 = vmul.f32 %v8204_v49, %v5788_v18  ;;  %v8206_v2 = vpop.eup %8205 }
0x1bb0   :  { %v5792_v54 = vsub.f32 1.0, %v8206_v2  ;;  %v5794_v62 = vmul.f32 %v8206_v2, %v5629_v39 }
0x1bb1   :  { %v5790_v40 = vadd.f32 %v5789_v53, %v5264_v60 }
0x1bb3   :  { %8207 = vtanh.f32 %v5790_v40 }
0x1bbd   :  { %v8208_v55 = vpop.eup %8207 }
0x1bbe   :  { %v5793_v61 = vmul.f32 %v8208_v55, %v5792_v54 }
0x1bc0   :  { %v5795_v6 = vadd.f32 %v5794_v62, %v5793_v61 }
0x1bc2   :  { %6976 = vmatmul.mubr.msk.f32.vlgmr.msra.gmra.mrb[70].mxu1 %vm3657_vm8, %v5795_v6  ;;  %7460 = vmatmul.mubr.msk.f32.vlgmr.msra.gmra.mrb[70].mxu0 %vm3657_vm8, %v5795_v6 }
0x1bc3   :  { %7762 = vmatpush1.bf16.msk.msra.mxu1 %vm8884_vm7, %v9129_v7  ;;  %7766 = vmatpush3.bf16.msk.msra.mxu0 %vm8884_vm7, %v9140_v4 }
0x1bc4   :  { %6029 = vmatprep.mubr.f32.mxu1 %v8317_v0  ;;  %7466 = vmatprep.mubr.msk.f32.mxu0 %vm8319_vm4, %v8317_v0 }
0x1bc5   :  { %7769 = vmatprep.subr.msk.bf16.mxu1 %vm8884_vm7, %v9127_v35  ;;  %7773 = vmatprep.subr.bf16.mxu0 %v8318_v45 }
0x1c95   :  { %v5865_v13 = vpop.f32.mrb[70].mxu1  ;;  %v5936_v8 = vpop.f32.mrb[70].mxu0 }
0x1c96   :  { %v7855_v11 = vadd.f32 %v5865_v13, %v9190_v41  ;;  %v5867_v59 = vpop.f32.mrb[71].mxu1  ;;  %v7461_v9 = vpop.f32.mrb[71].mxu0  ;;  %v5954_v32 = vadd.f32 %v5936_v8, %v9197_v46 }
0x1c97   :  { %v7856_v48 = vadd.f32 %v5867_v59, %v9193_v14 }
0x1c98   :  { %v6979_v43 = vmul.f32 -1.442695, %v7855_v11 }
0x1c99   :  { %v6980_v33 = vmul.f32 -1.442695, %v7856_v48 }
0x1c9a   :  { %8209 = vpow2.f32 %v6979_v43 }
0x1c9b   :  { %8211 = vpow2.f32 %v6980_v33 }
0x1ca4   :  { %v8210_v17 = vpop.eup %8209 }
0x1ca5   :  { %v5944_v47 = vadd.f32 1.0, %v8210_v17  ;;  %v8212_v12 = vpop.eup %8211  ;;  %v5279_v17 = vadd.f32 %v9156_v20, %v9200_v19 }
0x1ca6   :  { %v5951_v22 = vadd.f32 1.0, %v8212_v12 }
0x1ca7   :  { %8213 = vrcp.f32 %v5944_v47 }
0x1ca8   :  { %8215 = vrcp.f32 %v5951_v22 }
0x1cb1   :  { %v8214_v16 = vpop.eup %8213 }
0x1cb2   :  { %v5955_v24 = vmul.f32 %v8214_v16, %v5954_v32  ;;  %v8216_v50 = vpop.eup %8215 }
0x1cb3   :  { %v5958_v25 = vsub.f32 1.0, %v8216_v50  ;;  %v5960_v56 = vmul.f32 %v8216_v50, %v5795_v6 }
0x1cb4   :  { %v5956_v23 = vadd.f32 %v5955_v24, %v5269_v37 }
0x1cb6   :  { %8217 = vtanh.f32 %v5956_v23 }
0x1cc0   :  { %v8218_v26 = vpop.eup %8217 }
0x1cc1   :  { %v5959_v29 = vmul.f32 %v8218_v26, %v5958_v25 }
0x1cc3   :  { %v5961_v31 = vadd.f32 %v5960_v56, %v5959_v29 }
0x1cc5   :  { %6983 = vmatmul.mubr.msk.f32.vlgmr.msra.gmra.mrb[72].mxu1 %vm3657_vm8, %v5961_v31  ;;  %7467 = vmatmul.mubr.msk.f32.vlgmr.msra.gmra.mrb[72].mxu0 %vm3657_vm8, %v5961_v31 }
0x1cc6   :  { %7772 = vmatpush1.bf16.msk.msra.mxu1 %vm8884_vm7, %v9129_v7  ;;  %7776 = vmatpush3.bf16.msk.msra.mxu0 %vm8884_vm7, %v9140_v4 }
0x1cc7   :  { %6195 = vmatprep.mubr.f32.mxu1 %v8317_v0  ;;  %7473 = vmatprep.mubr.msk.f32.mxu0 %vm8319_vm4, %v8317_v0 }
0x1cc8   :  { %7779 = vmatprep.subr.msk.bf16.mxu1 %vm8884_vm7, %v9127_v35  ;;  %7783 = vmatprep.subr.bf16.mxu0 %v8318_v45 }
0x1d98   :  { %v6031_v10 = vpop.f32.mrb[72].mxu1  ;;  %v6102_v34 = vpop.f32.mrb[72].mxu0 }
0x1d99   :  { %v7857_v36 = vadd.f32 %v6031_v10, %v9190_v41  ;;  %v6033_v39 = vpop.f32.mrb[73].mxu1  ;;  %v7468_v21 = vpop.f32.mrb[73].mxu0  ;;  %v6120_v5 = vadd.f32 %v6102_v34, %v9197_v46 }
0x1d9a   :  { %v7858_v44 = vadd.f32 %v6033_v39, %v9193_v14  ;;  %v5284_v21 = vadd.f32 %v9187_v28, %v9200_v19 }
0x1d9b   :  { %v6986_v51 = vmul.f32 -1.442695, %v7857_v36 }
0x1d9c   :  { %v6987_v63 = vmul.f32 -1.442695, %v7858_v44 }
0x1d9d   :  { %8219 = vpow2.f32 %v6986_v51 }
0x1d9e   :  { %8221 = vpow2.f32 %v6987_v63 }
0x1da7   :  { %v8220_v57 = vpop.eup %8219 }
0x1da8   :  { %v6110_v15 = vadd.f32 1.0, %v8220_v57  ;;  %v8222_v38 = vpop.eup %8221 }
0x1da9   :  { %v6117_v1 = vadd.f32 1.0, %v8222_v38 }
0x1daa   :  { %8223 = vrcp.f32 %v6110_v15 }
0x1dab   :  { %8225 = vrcp.f32 %v6117_v1 }
0x1db4   :  { %v8224_v52 = vpop.eup %8223 }
0x1db5   :  { %v6121_v58 = vmul.f32 %v8224_v52, %v6120_v5  ;;  %v8226_v49 = vpop.eup %8225  ;;  %v6626_v52 = vld [vmem:[#allocation6 + $0x1e0] sm:$0xff] }
0x1db6   :  { %v6124_v60 = vsub.f32 1.0, %v8226_v49  ;;  %v6126_v2 = vmul.f32 %v8226_v49, %v5961_v31 }
0x1db7   :  { %v6122_v18 = vadd.f32 %v6121_v58, %v5274_v3  ;;  %v6627_v3 = vld [vmem:[#allocation6 + $0x1f8] sm:$0x3] }
0x1db8   :  { %v7798_v28 = vpack.c.bf16 %v6627_v3, %v6626_v52 }
0x1db9   :  { %8227 = vtanh.f32 %v6122_v18 }
0x1dc3   :  { %v8228_v53 = vpop.eup %8227 }
0x1dc4   :  { %v6125_v40 = vmul.f32 %v8228_v53, %v6124_v60 }
0x1dc6   :  { %v6127_v54 = vadd.f32 %v6126_v2, %v6125_v40 }
0x1dc8   :  { %6990 = vmatmul.mubr.msk.f32.vlgmr.msra.gmra.mrb[74].mxu1 %vm3657_vm8, %v6127_v54  ;;  %7474 = vmatmul.mubr.msk.f32.vlgmr.msra.gmra.mrb[74].mxu0 %vm3657_vm8, %v6127_v54 }
0x1dc9   :  { %7782 = vmatpush1.bf16.msk.msra.mxu1 %vm8884_vm7, %v9129_v7  ;;  %7786 = vmatpush3.bf16.msk.msra.mxu0 %vm8884_vm7, %v9140_v4 }
0x1dca   :  { %6361 = vmatprep.mubr.f32.mxu1 %v8317_v0  ;;  %7480 = vmatprep.mubr.msk.f32.mxu0 %vm8319_vm4, %v8317_v0 }
0x1dcb   :  { %7789 = vmatprep.subr.msk.bf16.mxu1 %vm8884_vm7, %v9127_v35  ;;  %7793 = vmatprep.subr.bf16.mxu0 %v8318_v45 }
0x1e9b   :  { %v6197_v42 = vpop.f32.mrb[74].mxu1  ;;  %v6268_v55 = vpop.f32.mrb[74].mxu0 }
0x1e9c   :  { %v7859_v61 = vadd.f32 %v6197_v42, %v9190_v41  ;;  %v6199_v62 = vpop.f32.mrb[75].mxu1  ;;  %v7475_v6 = vpop.f32.mrb[75].mxu0  ;;  %v6286_v35 = vadd.f32 %v6268_v55, %v9197_v46 }
0x1e9d   :  { %v7860_v8 = vadd.f32 %v6199_v62, %v9193_v14  ;;  %v5289_v6 = vadd.f32 %v9185_v27, %v9200_v19 }
0x1e9e   :  { %v6993_v13 = vmul.f32 -1.442695, %v7859_v61 }
0x1e9f   :  { %v6994_v11 = vmul.f32 -1.442695, %v7860_v8 }
0x1ea0   :  { %8229 = vpow2.f32 %v6993_v13 }
0x1ea1   :  { %8231 = vpow2.f32 %v6994_v11 }
0x1eaa   :  { %v8230_v59 = vpop.eup %8229 }
0x1eab   :  { %v6276_v9 = vadd.f32 1.0, %v8230_v59  ;;  %v8232_v43 = vpop.eup %8231 }
0x1eac   :  { %v6283_v48 = vadd.f32 1.0, %v8232_v43 }
0x1ead   :  { %8233 = vrcp.f32 %v6276_v9 }
0x1eae   :  { %8235 = vrcp.f32 %v6283_v48  ;;  %v6628_v48 = vld [vmem:[#allocation6 + $0x1fa] ss:$0 sm:$0xff] }
0x1eb7   :  { %v8234_v33 = vpop.eup %8233 }
0x1eb8   :  { %v6287_v47 = vmul.f32 %v8234_v33, %v6286_v35  ;;  %v8236_v22 = vpop.eup %8235 }
0x1eb9   :  { %v6290_v32 = vsub.f32 1.0, %v8236_v22  ;;  %v6292_v24 = vmul.f32 %v8236_v22, %v6127_v54 }
0x1eba   :  { %v6288_v12 = vadd.f32 %v6287_v47, %v5279_v17 }
0x1ebc   :  { %8237 = vtanh.f32 %v6288_v12 }
0x1ec6   :  { %v8238_v16 = vpop.eup %8237 }
0x1ec7   :  { %v6291_v37 = vmul.f32 %v8238_v16, %v6290_v32 }
0x1ec9   :  { %v6293_v23 = vadd.f32 %v6292_v24, %v6291_v37 }
0x1ecb   :  { %6997 = vmatmul.mubr.msk.f32.vlgmr.msra.gmra.mrb[76].mxu1 %vm3657_vm8, %v6293_v23  ;;  %7481 = vmatmul.mubr.msk.f32.vlgmr.msra.gmra.mrb[76].mxu0 %vm3657_vm8, %v6293_v23 }
0x1ecc   :  { %7792 = vmatpush1.bf16.msk.msra.mxu1 %vm8884_vm7, %v9129_v7  ;;  %7796 = vmatpush3.bf16.msk.msra.mxu0 %vm8884_vm7, %v9140_v4 }
0x1ecd   :  { %6527 = vmatprep.mubr.f32.mxu1 %v8317_v0  ;;  %7487 = vmatprep.mubr.msk.f32.mxu0 %vm8319_vm4, %v8317_v0 }
0x1ece   :  { %7797 = vmatprep.subr.bf16.mxu0 %v8318_v45 }
0x1f9e   :  { %v6363_v20 = vpop.f32.mrb[76].mxu1  ;;  %v6434_v50 = vpop.f32.mrb[76].mxu0 }
0x1f9f   :  { %v7861_v25 = vadd.f32 %v6363_v20, %v9190_v41  ;;  %v6365_v26 = vpop.f32.mrb[77].mxu1  ;;  %v7482_v29 = vpop.f32.mrb[77].mxu0  ;;  %v6452_v39 = vadd.f32 %v6434_v50, %v9197_v46 }
0x1fa0   :  { %v7862_v7 = vadd.f32 %v6365_v26, %v9193_v14 }
0x1fa1   :  { %v7000_v56 = vmul.f32 -1.442695, %v7861_v25 }
0x1fa2   :  { %v7001_v31 = vmul.f32 -1.442695, %v7862_v7 }
0x1fa3   :  { %8239 = vpow2.f32 %v7000_v56 }
0x1fa4   :  { %8241 = vpow2.f32 %v7001_v31 }
0x1fad   :  { %v8240_v4 = vpop.eup %8239 }
0x1fae   :  { %v6442_v10 = vadd.f32 1.0, %v8240_v4  ;;  %v8242_v34 = vpop.eup %8241 }
0x1faf   :  { %v6449_v36 = vadd.f32 1.0, %v8242_v34 }
0x1fb0   :  { %8243 = vrcp.f32 %v6442_v10 }
0x1fb1   :  { %8245 = vrcp.f32 %v6449_v36 }
0x1fba   :  { %v8244_v45 = vpop.eup %8243 }
0x1fbb   :  { %v6453_v51 = vmul.f32 %v8244_v45, %v6452_v39  ;;  %v8246_v63 = vpop.eup %8245 }
0x1fbc   :  { %v6456_v57 = vsub.f32 1.0, %v8246_v63  ;;  %v6458_v1 = vmul.f32 %v8246_v63, %v6293_v23 }
0x1fbd   :  { %v6454_v44 = vadd.f32 %v6453_v51, %v5284_v21 }
0x1fbf   :  { %8247 = vtanh.f32 %v6454_v44 }
0x1fc9   :  { %v8248_v15 = vpop.eup %8247 }
0x1fca   :  { %v6457_v38 = vmul.f32 %v8248_v15, %v6456_v57 }
0x1fcc   :  { %v6459_v5 = vadd.f32 %v6458_v1, %v6457_v38 }
0x1fce   :  { %7004 = vmatmul.mubr.msk.f32.vlgmr.msra.gmra.mrb[78].mxu1 %vm3657_vm8, %v6459_v5  ;;  %7488 = vmatmul.mubr.msk.f32.vlgmr.msra.gmra.mrb[78].mxu0 %vm3657_vm8, %v6459_v5 }
0x1fcf   :  { %7494 = vmatprep.mubr.msk.f32.mxu0 %vm8319_vm4, %v8317_v0  ;;  %7800 = vmatpush3.bf16.msk.msra.mxu0 %vm8884_vm7, %v7798_v28 }
0x20a1   :  { %v6529_v58 = vpop.f32.mrb[78].mxu1  ;;  %v6600_v18 = vpop.f32.mrb[78].mxu0 }
0x20a2   :  { %v7863_v49 = vadd.f32 %v6529_v58, %v9190_v41  ;;  %v6531_v60 = vpop.f32.mrb[79].mxu1  ;;  %v7489_v53 = vpop.f32.mrb[79].mxu0  ;;  %v6618_v30 = vadd.f32 %v6600_v18, %v9197_v46 }
0x20a3   :  { %v7864_v2 = vadd.f32 %v6531_v60, %v9193_v14 }
0x20a4   :  { %v7007_v40 = vmul.f32 -1.442695, %v7863_v49 }
0x20a5   :  { %v7008_v54 = vmul.f32 -1.442695, %v7864_v2 }
0x20a6   :  { %8249 = vpow2.f32 %v7007_v40 }
0x20a7   :  { %8251 = vpow2.f32 %v7008_v54 }
0x20b0   :  { %v8250_v42 = vpop.eup %8249 }
0x20b1   :  { %v6608_v0 = vadd.f32 1.0, %v8250_v42  ;;  %v8252_v55 = vpop.eup %8251 }
0x20b2   :  { %v6615_v61 = vadd.f32 1.0, %v8252_v55 }
0x20b3   :  { %8253 = vrcp.f32 %v6608_v0 }
0x20b4   :  { %8255 = vrcp.f32 %v6615_v61 }
0x20bd   :  { %v8254_v62 = vpop.eup %8253 }
0x20be   :  { %v6619_v41 = vmul.f32 %v8254_v62, %v6618_v30  ;;  %v8256_v8 = vpop.eup %8255 }
0x20bf   :  { %v6622_v14 = vsub.f32 1.0, %v8256_v8  ;;  %v6624_v9 = vmul.f32 %v8256_v8, %v6459_v5 }
0x20c0   :  { %v6620_v13 = vadd.f32 %v6619_v41, %v5289_v6 }
0x20c2   :  { %8257 = vtanh.f32 %v6620_v13 }
0x20cc   :  { %v8258_v11 = vpop.eup %8257 }
0x20cd   :  { %v6623_v59 = vmul.f32 %v8258_v11, %v6622_v14 }
0x20cf   :  { %v6625_v43 = vadd.f32 %v6624_v9, %v6623_v59 }
0x20d1   :  { %7495 = vmatmul.mubr.msk.f32.vlgmr.msra.gmra.mrb[80].mxu0 %vm3657_vm8, %v6625_v43 }
0x21a4   :  { %v6701_v35 = vpop.f32.mrb[80].mxu0 }
0x21a5   :  { %v6705_v33 = vadd.f32 %v6701_v35, %v6628_v48  ;;  %v7496_v46 = vpop.f32.mrb[81].mxu0 }
0x21a7   :  { %v7011_v17 = vmul.f32 -1.442695, %v6705_v33 }
0x21a9   :  { %8259 = vpow2.f32 %v7011_v17 }
0x21b3   :  { %v8260_v47 = vpop.eup %8259 }
0x21b4   :  { %v6709_v27 = vadd.f32 1.0, %v8260_v47 }
0x21b6   :  { %8261 = vrcp.f32 %v6709_v27 }
0x21c0   :  { %v8262_v19 = vpop.eup %8261 }
0x21c1   :  { %6713 = vst.msk [vmem:[%s9339_s2] sm:$0x3] %vm6712_vm9, %v8262_v19 }
0x21c2   :  { %6718 = vsyncpa [#allocation5], 1 }
0x21c3   :  { %6719 = vsyncpa [#allocation7], 1 }

</bundles_post_ra>
